<compile_context>
chip_gen: v7x
topology: tpu7x:2x2x1
jax: 0.10.0
libtpu: 0.0.40
codegen_flags: <defaults>
</compile_context>

<pallas_src>
import functools
import math

import jax
import jax.numpy as jnp
from jax.experimental import pallas as pl
from jax.experimental.pallas import tpu as pltpu


def _layernorm(x, gamma, beta, eps=1e-5):
    mu = jnp.mean(x, axis=-1, keepdims=True)
    var = jnp.mean((x - mu) ** 2, axis=-1, keepdims=True)
    return (x - mu) * jax.lax.rsqrt(var + eps) * gamma + beta


def _mab_block(q_in, k_in, valid, wqh, bqh, wkh, bkh, wvh, bvh,
               wo, bo, g0, be0, g1, be1):
    """One MAB on VMEM-resident values (head-batched, all math in f32)."""
    f32 = jnp.float32
    num_heads = wqh.shape[0]
    dh = wqh.shape[2]
    nq, e_dim = q_in.shape
    nk = k_in.shape[0]

    # Per-head projections as head-batched matmuls (heads on the leading
    # batch axis -> no lane slicing / tiny per-head relayouts).
    qb = jnp.broadcast_to(q_in[None], (num_heads, nq, e_dim))
    kb = jnp.broadcast_to(k_in[None], (num_heads, nk, e_dim))
    Qh = jnp.einsum("hqe,hed->hqd", qb, wqh, preferred_element_type=f32) + bqh
    Kh = jnp.einsum("hke,hed->hkd", kb, wkh, preferred_element_type=f32) + bkh
    Vh = jnp.einsum("hke,hed->hkd", kb, wvh, preferred_element_type=f32) + bvh

    dots = jnp.einsum("hqd,hkd->hqk", Qh, Kh,
                      preferred_element_type=f32) * (1.0 / math.sqrt(dh))
    neg = -jnp.finfo(f32).max                   # torch masked_fill_(-FLT_MAX)
    dots = jnp.where(valid[None], dots, neg)
    dots = dots - jnp.max(dots, axis=-1, keepdims=True)
    e = jnp.exp(dots)
    # EUP approximate reciprocal instead of a VPU divide (free bundle slot).
    attn = e * pl.reciprocal(jnp.sum(e, axis=-1, keepdims=True), approx=True)

    ctx = Qh + jnp.einsum("hqk,hkd->hqd", attn, Vh, preferred_element_type=f32)
    # Single head-merge back to [Nq, E] (one unavoidable relayout per layer).
    merged = jnp.concatenate([ctx[h] for h in range(num_heads)], axis=-1)

    h0 = _layernorm(merged, g0, be0)                              # ln0
    ff = jnp.dot(h0, wo, preferred_element_type=f32) + bo
    h1 = h0 + jnp.maximum(ff, 0.0)                                # + relu(fc_o)
    return _layernorm(h1, g1, be1)                                # ln1


def set_transformer_kernel(x_ref, mcol_ref, mrow_ref, s_ref,
                           ew_ref, eb_ref, eg_ref, ebe_ref,
                           wqh_ref, bqh_ref, wkh_ref, bkh_ref, wvh_ref, bvh_ref,
                           wo_ref, bo_ref, g0_ref, be0_ref, g1_ref, be1_ref,
                           o_ref, *, num_sab, num_seeds):
    """Full forward for one batch element; everything stays in VMEM."""
    f32 = jnp.float32
    x = x_ref[0].astype(f32)                    # [N, D_in]
    mcol = mcol_ref[0]                          # [N, 1]  (1.0 = valid)
    mrow = mrow_ref[0]                          # [1, N]

    # Embed: Linear -> LayerNorm -> ReLU   (Dropout is identity in eval).
    h = jnp.dot(x, ew_ref[...], preferred_element_type=f32) + eb_ref[...]
    h = jnp.maximum(_layernorm(h, eg_ref[...], ebe_ref[...]), 0.0)

    # torch.bmm(mask_a, mask_b^T) == 1.0; masks are exact {0,1} so >0.5 is
    # equivalent and robust.
    valid_xx = (mcol * mrow) > 0.5              # [N, N]

    def layer(l, q, k, valid):
        return _mab_block(q, k, valid,
                          wqh_ref[l], bqh_ref[l], wkh_ref[l], bkh_ref[l],
                          wvh_ref[l], bvh_ref[l], wo_ref[l], bo_ref[l],
                          g0_ref[l], be0_ref[l], g1_ref[l], be1_ref[l])

    for l in range(num_sab):                    # SAB encoders: MAB(h, h, m, m)
        h = layer(l, h, h, valid_xx)

    # PMA: seeds attend to the encoded set; the seed-side mask is all ones.
    seeds = s_ref[0].astype(f32)                # [num_seeds, E]
    valid_sx = jnp.broadcast_to(mrow > 0.5, (num_seeds, h.shape[0]))
    out = layer(num_sab, seeds, h, valid_sx)
    # num_seeds == 1  ->  the trailing SAB is nn.Identity().
    o_ref[0] = out.astype(o_ref.dtype)


def set_transformer_forward(x, mask, params, num_heads, num_seeds):
    B, N, D = x.shape
    emb = params["embed"]
    E = emb["w"].shape[1]
    mab = params["mab"]
    L = mab["wq"].shape[0]                      # num_sab SABs + 1 PMA MAB
    num_sab = L - 1
    dh = E // num_heads

    # Wrapper-side layout plumbing: split Q/K/V weights per head so the kernel
    # can use head-batched einsums with no in-kernel reshapes.
    #   wq[l, e, h*dh + d] -> wqh[l, h, e, d]
    def split_w(w):
        return jnp.transpose(w.reshape(L, E, num_heads, dh), (0, 2, 1, 3))

    def split_b(b):
        return jnp.transpose(b.reshape(L, 1, num_heads, dh), (0, 2, 1, 3))

    mrow = jnp.swapaxes(mask, 1, 2)             # [B, 1, N]

    def per_batch(shape):
        zeros = (0,) * (len(shape) - 1)
        return pl.BlockSpec(shape, lambda b: (b,) + zeros)

    def const(arr):
        zeros = (0,) * arr.ndim
        return pl.BlockSpec(arr.shape, lambda b: zeros)

    inputs = (
        x, mask, mrow, params["pma_S"],
        emb["w"], emb["b"], emb["g"], emb["be"],
        split_w(mab["wq"]), split_b(mab["bq"]),
        split_w(mab["wk"]), split_b(mab["bk"]),
        split_w(mab["wv"]), split_b(mab["bv"]),
        mab["wo"], mab["bo"], mab["g0"], mab["be0"], mab["g1"], mab["be1"],
    )
    in_specs = [per_batch((1, N, D)),
                per_batch((1, N, 1)),
                per_batch((1, 1, N))] + [const(a) for a in inputs[3:]]

    out = pl.pallas_call(
        functools.partial(set_transformer_kernel,
                          num_sab=num_sab, num_seeds=num_seeds),
        out_shape=jax.ShapeDtypeStruct((B, num_seeds, E), jnp.float32),
        grid=(B,),
        in_specs=in_specs,
        out_specs=per_batch((1, num_seeds, E)),
        compiler_params=pltpu.CompilerParams(
            dimension_semantics=("parallel",)),
    )(*inputs)
    return jnp.transpose(out, (1, 0, 2))        # [num_seeds, B, E]


# ---------------------------------------------------------------------------
# Deterministic parameter construction (matches the PyTorch inits)
# ---------------------------------------------------------------------------
def init_linear(key, fan_in, fan_out, kaiming_relu=False):
    kw, kb = jax.random.split(key)
    if kaiming_relu:   # nn.init.kaiming_uniform_(nonlinearity='relu'), zero bias
        bound = math.sqrt(6.0 / fan_in)
        b = jnp.zeros((1, fan_out), jnp.float32)
    else:              # PyTorch nn.Linear default init
        bound = 1.0 / math.sqrt(fan_in)
        b = jax.random.uniform(kb, (1, fan_out), jnp.float32, -bound, bound)
    w = jax.random.uniform(kw, (fan_in, fan_out), jnp.float32, -bound, bound)
    return w, b


def init_mab(key, dim_q, dim_k, dim_v):
    ks = jax.random.split(key, 4)
    wq, bq = init_linear(ks[0], dim_q, dim_v)
    wk, bk = init_linear(ks[1], dim_k, dim_v)
    wv, bv = init_linear(ks[2], dim_k, dim_v)
    wo, bo = init_linear(ks[3], dim_v, dim_v)
    ones = jnp.ones((1, dim_v), jnp.float32)
    zeros = jnp.zeros((1, dim_v), jnp.float32)
    return dict(wq=wq, bq=bq, wk=wk, bk=bk, wv=wv, bv=bv, wo=wo, bo=bo,
                g0=ones, be0=zeros, g1=ones, be1=zeros)


if __name__ == "__main__":
    B, N, D_IN = 2, 8, 4
    EMBD, HEADS, NUM_SAB, NUM_SEEDS = 32, 4, 2, 1  # num_points=0 -> SAB encoders

    root = jax.random.PRNGKey(0)
    k_embed, k_enc, k_pma_s, k_pma_mab, k_x = jax.random.split(root, 5)

    ew, eb = init_linear(k_embed, D_IN, EMBD, kaiming_relu=True)
    mabs = [init_mab(k, EMBD, EMBD, EMBD)
            for k in jax.random.split(k_enc, NUM_SAB)]
    mabs.append(init_mab(k_pma_mab, EMBD, EMBD, EMBD))   # PMA's MAB goes last
    stacked = {name: jnp.stack([m[name] for m in mabs]) for name in mabs[0]}

    # PMA seed S: xavier_uniform_ on a (1, num_seeds, dim) tensor
    fan_in, fan_out = NUM_SEEDS * EMBD, 1 * EMBD
    s_bound = math.sqrt(6.0 / (fan_in + fan_out))
    pma_S = jax.random.uniform(k_pma_s, (1, NUM_SEEDS, EMBD),
                               jnp.float32, -s_bound, s_bound)

    params = {
        "embed": dict(w=ew, b=eb,
                      g=jnp.ones((1, EMBD), jnp.float32),
                      be=jnp.zeros((1, EMBD), jnp.float32)),
        "mab": stacked,
        "pma_S": pma_S,
    }

    x = jax.random.normal(k_x, (B, N, D_IN), jnp.float32)
    lengths = jnp.array([N, N - 3])
    mask = (jnp.arange(N)[None, :] < lengths[:, None]).astype(jnp.float32)[..., None]

    fwd = jax.jit(set_transformer_forward, static_argnums=(3, 4))
    out = jax.block_until_ready(fwd(x, mask, params, HEADS, NUM_SEEDS))
    assert out.shape == (NUM_SEEDS, B, EMBD), out.shape
    assert bool(jnp.all(jnp.isfinite(out)))
    print("KERNEL_OK")
</pallas_src>

<mosaic_0001>
module attributes {stable_mosaic.version = 11 : i64} {
  func.func @set_transformer_kernel(%arg0: i32, %arg1: memref<1x8x4xf32, #tpu.memory_space<vmem>>, %arg2: memref<1x8x1xf32, #tpu.memory_space<vmem>>, %arg3: memref<1x1x8xf32, #tpu.memory_space<vmem>>, %arg4: memref<1x1x32xf32, #tpu.memory_space<vmem>>, %arg5: memref<4x32xf32, #tpu.memory_space<vmem>>, %arg6: memref<1x32xf32, #tpu.memory_space<vmem>>, %arg7: memref<1x32xf32, #tpu.memory_space<vmem>>, %arg8: memref<1x32xf32, #tpu.memory_space<vmem>>, %arg9: memref<3x4x32x8xf32, #tpu.memory_space<vmem>>, %arg10: memref<3x4x1x8xf32, #tpu.memory_space<vmem>>, %arg11: memref<3x4x32x8xf32, #tpu.memory_space<vmem>>, %arg12: memref<3x4x1x8xf32, #tpu.memory_space<vmem>>, %arg13: memref<3x4x32x8xf32, #tpu.memory_space<vmem>>, %arg14: memref<3x4x1x8xf32, #tpu.memory_space<vmem>>, %arg15: memref<3x32x32xf32, #tpu.memory_space<vmem>>, %arg16: memref<3x1x32xf32, #tpu.memory_space<vmem>>, %arg17: memref<3x1x32xf32, #tpu.memory_space<vmem>>, %arg18: memref<3x1x32xf32, #tpu.memory_space<vmem>>, %arg19: memref<3x1x32xf32, #tpu.memory_space<vmem>>, %arg20: memref<3x1x32xf32, #tpu.memory_space<vmem>>, %arg21: memref<1x1x32xf32, #tpu.memory_space<vmem>>) attributes {dimension_semantics = [#tpu.dimension_semantics<parallel>], iteration_bounds = array<i64: 2>, scalar_prefetch = 0 : i64, scratch_operands = 0 : i64, tpu.core_type = #tpu.core_type<tc>, window_params = [{transform_indices = @transform_0, window_bounds = array<i64: 1, 8, 4>}, {transform_indices = @transform_1, window_bounds = array<i64: 1, 8, 1>}, {transform_indices = @transform_2, window_bounds = array<i64: 1, 1, 8>}, {pipeline_mode = #tpu.pipeline_mode<synchronous>, transform_indices = @transform_3, window_bounds = array<i64: 1, 1, 32>}, {pipeline_mode = #tpu.pipeline_mode<synchronous>, transform_indices = @transform_4, window_bounds = array<i64: 4, 32>}, {pipeline_mode = #tpu.pipeline_mode<synchronous>, transform_indices = @transform_5, window_bounds = array<i64: 1, 32>}, {pipeline_mode = #tpu.pipeline_mode<synchronous>, transform_indices = @transform_6, window_bounds = array<i64: 1, 32>}, {pipeline_mode = #tpu.pipeline_mode<synchronous>, transform_indices = @transform_7, window_bounds = array<i64: 1, 32>}, {pipeline_mode = #tpu.pipeline_mode<synchronous>, transform_indices = @transform_8, window_bounds = array<i64: 3, 4, 32, 8>}, {pipeline_mode = #tpu.pipeline_mode<synchronous>, transform_indices = @transform_9, window_bounds = array<i64: 3, 4, 1, 8>}, {pipeline_mode = #tpu.pipeline_mode<synchronous>, transform_indices = @transform_10, window_bounds = array<i64: 3, 4, 32, 8>}, {pipeline_mode = #tpu.pipeline_mode<synchronous>, transform_indices = @transform_11, window_bounds = array<i64: 3, 4, 1, 8>}, {pipeline_mode = #tpu.pipeline_mode<synchronous>, transform_indices = @transform_12, window_bounds = array<i64: 3, 4, 32, 8>}, {pipeline_mode = #tpu.pipeline_mode<synchronous>, transform_indices = @transform_13, window_bounds = array<i64: 3, 4, 1, 8>}, {pipeline_mode = #tpu.pipeline_mode<synchronous>, transform_indices = @transform_14, window_bounds = array<i64: 3, 32, 32>}, {pipeline_mode = #tpu.pipeline_mode<synchronous>, transform_indices = @transform_15, window_bounds = array<i64: 3, 1, 32>}, {pipeline_mode = #tpu.pipeline_mode<synchronous>, transform_indices = @transform_16, window_bounds = array<i64: 3, 1, 32>}, {pipeline_mode = #tpu.pipeline_mode<synchronous>, transform_indices = @transform_17, window_bounds = array<i64: 3, 1, 32>}, {pipeline_mode = #tpu.pipeline_mode<synchronous>, transform_indices = @transform_18, window_bounds = array<i64: 3, 1, 32>}, {pipeline_mode = #tpu.pipeline_mode<synchronous>, transform_indices = @transform_19, window_bounds = array<i64: 3, 1, 32>}, {transform_indices = @transform_20, window_bounds = array<i64: 1, 1, 32>}]} {
    %c0 = arith.constant 0 : index
    %c0_0 = arith.constant 0 : index
    %c0_1 = arith.constant 0 : index
    %0 = vector.load %arg1[%c0, %c0_0, %c0_1] : memref<1x8x4xf32, #tpu.memory_space<vmem>>, vector<1x8x4xf32>
    %1 = vector.shape_cast %0 : vector<1x8x4xf32> to vector<8x4xf32>
    %c0_2 = arith.constant 0 : index
    %c0_3 = arith.constant 0 : index
    %c0_4 = arith.constant 0 : index
    %2 = vector.load %arg2[%c0_2, %c0_3, %c0_4] : memref<1x8x1xf32, #tpu.memory_space<vmem>>, vector<1x8x1xf32>
    %3 = vector.shape_cast %2 : vector<1x8x1xf32> to vector<8x1xf32>
    %c0_5 = arith.constant 0 : index
    %c0_6 = arith.constant 0 : index
    %c0_7 = arith.constant 0 : index
    %4 = vector.load %arg3[%c0_5, %c0_6, %c0_7] : memref<1x1x8xf32, #tpu.memory_space<vmem>>, vector<1x1x8xf32>
    %5 = vector.shape_cast %4 : vector<1x1x8xf32> to vector<1x8xf32>
    %c0_8 = arith.constant 0 : index
    %c0_9 = arith.constant 0 : index
    %6 = vector.load %arg5[%c0_8, %c0_9] : memref<4x32xf32, #tpu.memory_space<vmem>>, vector<4x32xf32>
    %cst = arith.constant dense<0.000000e+00> : vector<8x32xf32>
    %7 = tpu.matmul %1, %6, %cst {dimension_numbers = #tpu.dot_dimension_numbers<[1], [0], [0], [1], [0, 0, 1, 1], [], []>} : vector<8x4xf32>, vector<4x32xf32>, vector<8x32xf32> -> vector<8x32xf32>
    %c0_10 = arith.constant 0 : index
    %c0_11 = arith.constant 0 : index
    %8 = vector.load %arg6[%c0_10, %c0_11] : memref<1x32xf32, #tpu.memory_space<vmem>>, vector<1x32xf32>
    %9 = vector.broadcast %8 : vector<1x32xf32> to vector<8x32xf32>
    %10 = arith.addf %7, %9 : vector<8x32xf32>
    %c0_12 = arith.constant 0 : index
    %c0_13 = arith.constant 0 : index
    %11 = vector.load %arg7[%c0_12, %c0_13] : memref<1x32xf32, #tpu.memory_space<vmem>>, vector<1x32xf32>
    %c0_14 = arith.constant 0 : index
    %c0_15 = arith.constant 0 : index
    %12 = vector.load %arg8[%c0_14, %c0_15] : memref<1x32xf32, #tpu.memory_space<vmem>>, vector<1x32xf32>
    %cst_16 = arith.constant dense<0.000000e+00> : vector<8xf32>
    %13 = vector.multi_reduction <add>, %10, %cst_16 [1] : vector<8x32xf32> to vector<8xf32>
    %14 = vector.shape_cast %13 : vector<8xf32> to vector<8x1xf32>
    %cst_17 = arith.constant 3.200000e+01 : f32
    %15 = vector.broadcast %cst_17 : f32 to vector<8x1xf32>
    %16 = arith.divf %14, %15 : vector<8x1xf32>
    %17 = vector.broadcast %16 : vector<8x1xf32> to vector<8x32xf32>
    %18 = arith.subf %10, %17 : vector<8x32xf32>
    %19 = arith.mulf %18, %18 : vector<8x32xf32>
    %cst_18 = arith.constant dense<0.000000e+00> : vector<8xf32>
    %20 = vector.multi_reduction <add>, %19, %cst_18 [1] : vector<8x32xf32> to vector<8xf32>
    %21 = vector.shape_cast %20 : vector<8xf32> to vector<8x1xf32>
    %cst_19 = arith.constant 3.200000e+01 : f32
    %22 = vector.broadcast %cst_19 : f32 to vector<8x1xf32>
    %23 = arith.divf %21, %22 : vector<8x1xf32>
    %24 = vector.broadcast %16 : vector<8x1xf32> to vector<8x32xf32>
    %25 = arith.subf %10, %24 : vector<8x32xf32>
    %cst_20 = arith.constant 9.99999974E-6 : f32
    %26 = vector.broadcast %cst_20 : f32 to vector<8x1xf32>
    %27 = arith.addf %23, %26 : vector<8x1xf32>
    %28 = math.rsqrt %27 : vector<8x1xf32>
    %29 = vector.broadcast %28 : vector<8x1xf32> to vector<8x32xf32>
    %30 = arith.mulf %25, %29 : vector<8x32xf32>
    %31 = vector.broadcast %11 : vector<1x32xf32> to vector<8x32xf32>
    %32 = arith.mulf %30, %31 : vector<8x32xf32>
    %33 = vector.broadcast %12 : vector<1x32xf32> to vector<8x32xf32>
    %34 = arith.addf %32, %33 : vector<8x32xf32>
    %cst_21 = arith.constant 0.000000e+00 : f32
    %35 = vector.broadcast %cst_21 : f32 to vector<8x32xf32>
    %36 = arith.maximumf %34, %35 : vector<8x32xf32>
    %37 = vector.broadcast %3 : vector<8x1xf32> to vector<8x8xf32>
    %38 = vector.broadcast %5 : vector<1x8xf32> to vector<8x8xf32>
    %39 = arith.mulf %37, %38 : vector<8x8xf32>
    %cst_22 = arith.constant 5.000000e-01 : f32
    %40 = vector.broadcast %cst_22 : f32 to vector<8x8xf32>
    %41 = arith.cmpf ogt, %39, %40 : vector<8x8xf32>
    %c0_23 = arith.constant 0 : index
    %c0_24 = arith.constant 0 : index
    %c0_25 = arith.constant 0 : index
    %c0_26 = arith.constant 0 : index
    %42 = vector.load %arg9[%c0_23, %c0_24, %c0_25, %c0_26] : memref<3x4x32x8xf32, #tpu.memory_space<vmem>>, vector<1x4x32x8xf32>
    %43 = vector.shape_cast %42 : vector<1x4x32x8xf32> to vector<4x32x8xf32>
    %c0_27 = arith.constant 0 : index
    %c0_28 = arith.constant 0 : index
    %c0_29 = arith.constant 0 : index
    %c0_30 = arith.constant 0 : index
    %44 = vector.load %arg10[%c0_27, %c0_28, %c0_29, %c0_30] : memref<3x4x1x8xf32, #tpu.memory_space<vmem>>, vector<1x4x1x8xf32>
    %45 = vector.shape_cast %44 : vector<1x4x1x8xf32> to vector<4x1x8xf32>
    %c0_31 = arith.constant 0 : index
    %c0_32 = arith.constant 0 : index
    %c0_33 = arith.constant 0 : index
    %c0_34 = arith.constant 0 : index
    %46 = vector.load %arg11[%c0_31, %c0_32, %c0_33, %c0_34] : memref<3x4x32x8xf32, #tpu.memory_space<vmem>>, vector<1x4x32x8xf32>
    %47 = vector.shape_cast %46 : vector<1x4x32x8xf32> to vector<4x32x8xf32>
    %c0_35 = arith.constant 0 : index
    %c0_36 = arith.constant 0 : index
    %c0_37 = arith.constant 0 : index
    %c0_38 = arith.constant 0 : index
    %48 = vector.load %arg12[%c0_35, %c0_36, %c0_37, %c0_38] : memref<3x4x1x8xf32, #tpu.memory_space<vmem>>, vector<1x4x1x8xf32>
    %49 = vector.shape_cast %48 : vector<1x4x1x8xf32> to vector<4x1x8xf32>
    %c0_39 = arith.constant 0 : index
    %c0_40 = arith.constant 0 : index
    %c0_41 = arith.constant 0 : index
    %c0_42 = arith.constant 0 : index
    %50 = vector.load %arg13[%c0_39, %c0_40, %c0_41, %c0_42] : memref<3x4x32x8xf32, #tpu.memory_space<vmem>>, vector<1x4x32x8xf32>
    %51 = vector.shape_cast %50 : vector<1x4x32x8xf32> to vector<4x32x8xf32>
    %c0_43 = arith.constant 0 : index
    %c0_44 = arith.constant 0 : index
    %c0_45 = arith.constant 0 : index
    %c0_46 = arith.constant 0 : index
    %52 = vector.load %arg14[%c0_43, %c0_44, %c0_45, %c0_46] : memref<3x4x1x8xf32, #tpu.memory_space<vmem>>, vector<1x4x1x8xf32>
    %53 = vector.shape_cast %52 : vector<1x4x1x8xf32> to vector<4x1x8xf32>
    %c0_47 = arith.constant 0 : index
    %c0_48 = arith.constant 0 : index
    %c0_49 = arith.constant 0 : index
    %54 = vector.load %arg15[%c0_47, %c0_48, %c0_49] : memref<3x32x32xf32, #tpu.memory_space<vmem>>, vector<1x32x32xf32>
    %55 = vector.shape_cast %54 : vector<1x32x32xf32> to vector<32x32xf32>
    %c0_50 = arith.constant 0 : index
    %c0_51 = arith.constant 0 : index
    %c0_52 = arith.constant 0 : index
    %56 = vector.load %arg16[%c0_50, %c0_51, %c0_52] : memref<3x1x32xf32, #tpu.memory_space<vmem>>, vector<1x1x32xf32>
    %57 = vector.shape_cast %56 : vector<1x1x32xf32> to vector<1x32xf32>
    %c0_53 = arith.constant 0 : index
    %c0_54 = arith.constant 0 : index
    %c0_55 = arith.constant 0 : index
    %58 = vector.load %arg17[%c0_53, %c0_54, %c0_55] : memref<3x1x32xf32, #tpu.memory_space<vmem>>, vector<1x1x32xf32>
    %59 = vector.shape_cast %58 : vector<1x1x32xf32> to vector<1x32xf32>
    %c0_56 = arith.constant 0 : index
    %c0_57 = arith.constant 0 : index
    %c0_58 = arith.constant 0 : index
    %60 = vector.load %arg18[%c0_56, %c0_57, %c0_58] : memref<3x1x32xf32, #tpu.memory_space<vmem>>, vector<1x1x32xf32>
    %61 = vector.shape_cast %60 : vector<1x1x32xf32> to vector<1x32xf32>
    %c0_59 = arith.constant 0 : index
    %c0_60 = arith.constant 0 : index
    %c0_61 = arith.constant 0 : index
    %62 = vector.load %arg19[%c0_59, %c0_60, %c0_61] : memref<3x1x32xf32, #tpu.memory_space<vmem>>, vector<1x1x32xf32>
    %63 = vector.shape_cast %62 : vector<1x1x32xf32> to vector<1x32xf32>
    %c0_62 = arith.constant 0 : index
    %c0_63 = arith.constant 0 : index
    %c0_64 = arith.constant 0 : index
    %64 = vector.load %arg20[%c0_62, %c0_63, %c0_64] : memref<3x1x32xf32, #tpu.memory_space<vmem>>, vector<1x1x32xf32>
    %65 = vector.shape_cast %64 : vector<1x1x32xf32> to vector<1x32xf32>
    %66 = vector.shape_cast %36 : vector<8x32xf32> to vector<1x8x32xf32>
    %67 = vector.shape_cast %66 : vector<1x8x32xf32> to vector<1x8x32xf32>
    %68 = vector.broadcast %67 : vector<1x8x32xf32> to vector<4x8x32xf32>
    %69 = vector.shape_cast %36 : vector<8x32xf32> to vector<1x8x32xf32>
    %70 = vector.shape_cast %69 : vector<1x8x32xf32> to vector<1x8x32xf32>
    %71 = vector.broadcast %70 : vector<1x8x32xf32> to vector<4x8x32xf32>
    "tpu.trace_start"() <{level = 10 : i32, message = "hqe,hed->hqd"}> : () -> ()
    %cst_65 = arith.constant dense<0.000000e+00> : vector<4x8x8xf32>
    %72 = tpu.matmul %68, %43, %cst_65 {dimension_numbers = #tpu.dot_dimension_numbers<[2], [1], [1], [2], [0, 0, 0, 1, 1, 2], [0], [0]>} : vector<4x8x32xf32>, vector<4x32x8xf32>, vector<4x8x8xf32> -> vector<4x8x8xf32>
    "tpu.trace_stop"() : () -> ()
    %73 = vector.broadcast %45 : vector<4x1x8xf32> to vector<4x8x8xf32>
    %74 = arith.addf %72, %73 : vector<4x8x8xf32>
    "tpu.trace_start"() <{level = 10 : i32, message = "hke,hed->hkd"}> : () -> ()
    %cst_66 = arith.constant dense<0.000000e+00> : vector<4x8x8xf32>
    %75 = tpu.matmul %71, %47, %cst_66 {dimension_numbers = #tpu.dot_dimension_numbers<[2], [1], [1], [2], [0, 0, 0, 1, 1, 2], [0], [0]>} : vector<4x8x32xf32>, vector<4x32x8xf32>, vector<4x8x8xf32> -> vector<4x8x8xf32>
    "tpu.trace_stop"() : () -> ()
    %76 = vector.broadcast %49 : vector<4x1x8xf32> to vector<4x8x8xf32>
    %77 = arith.addf %75, %76 : vector<4x8x8xf32>
    "tpu.trace_start"() <{level = 10 : i32, message = "hke,hed->hkd"}> : () -> ()
    %cst_67 = arith.constant dense<0.000000e+00> : vector<4x8x8xf32>
    %78 = tpu.matmul %71, %51, %cst_67 {dimension_numbers = #tpu.dot_dimension_numbers<[2], [1], [1], [2], [0, 0, 0, 1, 1, 2], [0], [0]>} : vector<4x8x32xf32>, vector<4x32x8xf32>, vector<4x8x8xf32> -> vector<4x8x8xf32>
    "tpu.trace_stop"() : () -> ()
    %79 = vector.broadcast %53 : vector<4x1x8xf32> to vector<4x8x8xf32>
    %80 = arith.addf %78, %79 : vector<4x8x8xf32>
    "tpu.trace_start"() <{level = 10 : i32, message = "hqd,hkd->hqk"}> : () -> ()
    %cst_68 = arith.constant dense<0.000000e+00> : vector<4x8x8xf32>
    %81 = tpu.matmul %74, %77, %cst_68 {dimension_numbers = #tpu.dot_dimension_numbers<[2], [2], [1], [1], [0, 0, 0, 1, 1, 1], [0], [0]>} : vector<4x8x8xf32>, vector<4x8x8xf32>, vector<4x8x8xf32> -> vector<4x8x8xf32>
    "tpu.trace_stop"() : () -> ()
    %cst_69 = arith.constant 0.353553385 : f32
    %82 = vector.broadcast %cst_69 : f32 to vector<4x8x8xf32>
    %83 = arith.mulf %81, %82 : vector<4x8x8xf32>
    %84 = vector.shape_cast %41 : vector<8x8xi1> to vector<1x8x8xi1>
    %cst_70 = arith.constant -3.40282347E+38 : f32
    %85 = vector.shape_cast %84 : vector<1x8x8xi1> to vector<1x8x8xi1>
    %86 = vector.broadcast %85 : vector<1x8x8xi1> to vector<4x8x8xi1>
    %87 = vector.broadcast %cst_70 : f32 to vector<4x8x8xf32>
    %88 = arith.select %86, %83, %87 : vector<4x8x8xi1>, vector<4x8x8xf32>
    %cst_71 = arith.constant dense<0xFF800000> : vector<4x8xf32>
    %89 = vector.multi_reduction <maximumf>, %88, %cst_71 [2] : vector<4x8x8xf32> to vector<4x8xf32>
    %90 = vector.shape_cast %89 : vector<4x8xf32> to vector<4x8x1xf32>
    %91 = vector.broadcast %90 : vector<4x8x1xf32> to vector<4x8x8xf32>
    %92 = arith.subf %88, %91 : vector<4x8x8xf32>
    %93 = math.exp %92 : vector<4x8x8xf32>
    %cst_72 = arith.constant dense<0.000000e+00> : vector<4x8xf32>
    %94 = vector.multi_reduction <add>, %93, %cst_72 [2] : vector<4x8x8xf32> to vector<4x8xf32>
    %95 = vector.shape_cast %94 : vector<4x8xf32> to vector<4x8x1xf32>
    %96 = tpu.reciprocal %95 {approx = true} : vector<4x8x1xf32> -> vector<4x8x1xf32>
    %97 = vector.broadcast %96 : vector<4x8x1xf32> to vector<4x8x8xf32>
    %98 = arith.mulf %93, %97 : vector<4x8x8xf32>
    "tpu.trace_start"() <{level = 10 : i32, message = "hqk,hkd->hqd"}> : () -> ()
    %cst_73 = arith.constant dense<0.000000e+00> : vector<4x8x8xf32>
    %99 = tpu.matmul %98, %80, %cst_73 {dimension_numbers = #tpu.dot_dimension_numbers<[2], [1], [1], [2], [0, 0, 0, 1, 1, 2], [0], [0]>} : vector<4x8x8xf32>, vector<4x8x8xf32>, vector<4x8x8xf32> -> vector<4x8x8xf32>
    "tpu.trace_stop"() : () -> ()
    %100 = arith.addf %74, %99 : vector<4x8x8xf32>
    %101 = vector.extract_strided_slice %100 {offsets = [0, 0, 0], sizes = [1, 8, 8], strides = [1, 1, 1]} : vector<4x8x8xf32> to vector<1x8x8xf32>
    %102 = vector.shape_cast %101 : vector<1x8x8xf32> to vector<8x8xf32>
    %103 = vector.extract_strided_slice %100 {offsets = [1, 0, 0], sizes = [1, 8, 8], strides = [1, 1, 1]} : vector<4x8x8xf32> to vector<1x8x8xf32>
    %104 = vector.shape_cast %103 : vector<1x8x8xf32> to vector<8x8xf32>
    %105 = vector.extract_strided_slice %100 {offsets = [2, 0, 0], sizes = [1, 8, 8], strides = [1, 1, 1]} : vector<4x8x8xf32> to vector<1x8x8xf32>
    %106 = vector.shape_cast %105 : vector<1x8x8xf32> to vector<8x8xf32>
    %107 = vector.extract_strided_slice %100 {offsets = [3, 0, 0], sizes = [1, 8, 8], strides = [1, 1, 1]} : vector<4x8x8xf32> to vector<1x8x8xf32>
    %108 = vector.shape_cast %107 : vector<1x8x8xf32> to vector<8x8xf32>
    %109 = tpu.concatenate %102, %104, %106, %108 in 1 : vector<8x8xf32>, vector<8x8xf32>, vector<8x8xf32>, vector<8x8xf32> -> vector<8x32xf32>
    %cst_74 = arith.constant dense<0.000000e+00> : vector<8xf32>
    %110 = vector.multi_reduction <add>, %109, %cst_74 [1] : vector<8x32xf32> to vector<8xf32>
    %111 = vector.shape_cast %110 : vector<8xf32> to vector<8x1xf32>
    %cst_75 = arith.constant 3.200000e+01 : f32
    %112 = vector.broadcast %cst_75 : f32 to vector<8x1xf32>
    %113 = arith.divf %111, %112 : vector<8x1xf32>
    %114 = vector.broadcast %113 : vector<8x1xf32> to vector<8x32xf32>
    %115 = arith.subf %109, %114 : vector<8x32xf32>
    %116 = arith.mulf %115, %115 : vector<8x32xf32>
    %cst_76 = arith.constant dense<0.000000e+00> : vector<8xf32>
    %117 = vector.multi_reduction <add>, %116, %cst_76 [1] : vector<8x32xf32> to vector<8xf32>
    %118 = vector.shape_cast %117 : vector<8xf32> to vector<8x1xf32>
    %cst_77 = arith.constant 3.200000e+01 : f32
    %119 = vector.broadcast %cst_77 : f32 to vector<8x1xf32>
    %120 = arith.divf %118, %119 : vector<8x1xf32>
    %121 = vector.broadcast %113 : vector<8x1xf32> to vector<8x32xf32>
    %122 = arith.subf %109, %121 : vector<8x32xf32>
    %cst_78 = arith.constant 9.99999974E-6 : f32
    %123 = vector.broadcast %cst_78 : f32 to vector<8x1xf32>
    %124 = arith.addf %120, %123 : vector<8x1xf32>
    %125 = math.rsqrt %124 : vector<8x1xf32>
    %126 = vector.broadcast %125 : vector<8x1xf32> to vector<8x32xf32>
    %127 = arith.mulf %122, %126 : vector<8x32xf32>
    %128 = vector.broadcast %59 : vector<1x32xf32> to vector<8x32xf32>
    %129 = arith.mulf %127, %128 : vector<8x32xf32>
    %130 = vector.broadcast %61 : vector<1x32xf32> to vector<8x32xf32>
    %131 = arith.addf %129, %130 : vector<8x32xf32>
    %cst_79 = arith.constant dense<0.000000e+00> : vector<8x32xf32>
    %132 = tpu.matmul %131, %55, %cst_79 {dimension_numbers = #tpu.dot_dimension_numbers<[1], [0], [0], [1], [0, 0, 1, 1], [], []>} : vector<8x32xf32>, vector<32x32xf32>, vector<8x32xf32> -> vector<8x32xf32>
    %133 = vector.broadcast %57 : vector<1x32xf32> to vector<8x32xf32>
    %134 = arith.addf %132, %133 : vector<8x32xf32>
    %cst_80 = arith.constant 0.000000e+00 : f32
    %135 = vector.broadcast %cst_80 : f32 to vector<8x32xf32>
    %136 = arith.maximumf %134, %135 : vector<8x32xf32>
    %137 = arith.addf %131, %136 : vector<8x32xf32>
    %cst_81 = arith.constant dense<0.000000e+00> : vector<8xf32>
    %138 = vector.multi_reduction <add>, %137, %cst_81 [1] : vector<8x32xf32> to vector<8xf32>
    %139 = vector.shape_cast %138 : vector<8xf32> to vector<8x1xf32>
    %cst_82 = arith.constant 3.200000e+01 : f32
    %140 = vector.broadcast %cst_82 : f32 to vector<8x1xf32>
    %141 = arith.divf %139, %140 : vector<8x1xf32>
    %142 = vector.broadcast %141 : vector<8x1xf32> to vector<8x32xf32>
    %143 = arith.subf %137, %142 : vector<8x32xf32>
    %144 = arith.mulf %143, %143 : vector<8x32xf32>
    %cst_83 = arith.constant dense<0.000000e+00> : vector<8xf32>
    %145 = vector.multi_reduction <add>, %144, %cst_83 [1] : vector<8x32xf32> to vector<8xf32>
    %146 = vector.shape_cast %145 : vector<8xf32> to vector<8x1xf32>
    %cst_84 = arith.constant 3.200000e+01 : f32
    %147 = vector.broadcast %cst_84 : f32 to vector<8x1xf32>
    %148 = arith.divf %146, %147 : vector<8x1xf32>
    %149 = vector.broadcast %141 : vector<8x1xf32> to vector<8x32xf32>
    %150 = arith.subf %137, %149 : vector<8x32xf32>
    %cst_85 = arith.constant 9.99999974E-6 : f32
    %151 = vector.broadcast %cst_85 : f32 to vector<8x1xf32>
    %152 = arith.addf %148, %151 : vector<8x1xf32>
    %153 = math.rsqrt %152 : vector<8x1xf32>
    %154 = vector.broadcast %153 : vector<8x1xf32> to vector<8x32xf32>
    %155 = arith.mulf %150, %154 : vector<8x32xf32>
    %156 = vector.broadcast %63 : vector<1x32xf32> to vector<8x32xf32>
    %157 = arith.mulf %155, %156 : vector<8x32xf32>
    %158 = vector.broadcast %65 : vector<1x32xf32> to vector<8x32xf32>
    %159 = arith.addf %157, %158 : vector<8x32xf32>
    %c1 = arith.constant 1 : index
    %c0_86 = arith.constant 0 : index
    %c0_87 = arith.constant 0 : index
    %c0_88 = arith.constant 0 : index
    %160 = vector.load %arg9[%c1, %c0_86, %c0_87, %c0_88] : memref<3x4x32x8xf32, #tpu.memory_space<vmem>>, vector<1x4x32x8xf32>
    %161 = vector.shape_cast %160 : vector<1x4x32x8xf32> to vector<4x32x8xf32>
    %c1_89 = arith.constant 1 : index
    %c0_90 = arith.constant 0 : index
    %c0_91 = arith.constant 0 : index
    %c0_92 = arith.constant 0 : index
    %162 = vector.load %arg10[%c1_89, %c0_90, %c0_91, %c0_92] : memref<3x4x1x8xf32, #tpu.memory_space<vmem>>, vector<1x4x1x8xf32>
    %163 = vector.shape_cast %162 : vector<1x4x1x8xf32> to vector<4x1x8xf32>
    %c1_93 = arith.constant 1 : index
    %c0_94 = arith.constant 0 : index
    %c0_95 = arith.constant 0 : index
    %c0_96 = arith.constant 0 : index
    %164 = vector.load %arg11[%c1_93, %c0_94, %c0_95, %c0_96] : memref<3x4x32x8xf32, #tpu.memory_space<vmem>>, vector<1x4x32x8xf32>
    %165 = vector.shape_cast %164 : vector<1x4x32x8xf32> to vector<4x32x8xf32>
    %c1_97 = arith.constant 1 : index
    %c0_98 = arith.constant 0 : index
    %c0_99 = arith.constant 0 : index
    %c0_100 = arith.constant 0 : index
    %166 = vector.load %arg12[%c1_97, %c0_98, %c0_99, %c0_100] : memref<3x4x1x8xf32, #tpu.memory_space<vmem>>, vector<1x4x1x8xf32>
    %167 = vector.shape_cast %166 : vector<1x4x1x8xf32> to vector<4x1x8xf32>
    %c1_101 = arith.constant 1 : index
    %c0_102 = arith.constant 0 : index
    %c0_103 = arith.constant 0 : index
    %c0_104 = arith.constant 0 : index
    %168 = vector.load %arg13[%c1_101, %c0_102, %c0_103, %c0_104] : memref<3x4x32x8xf32, #tpu.memory_space<vmem>>, vector<1x4x32x8xf32>
    %169 = vector.shape_cast %168 : vector<1x4x32x8xf32> to vector<4x32x8xf32>
    %c1_105 = arith.constant 1 : index
    %c0_106 = arith.constant 0 : index
    %c0_107 = arith.constant 0 : index
    %c0_108 = arith.constant 0 : index
    %170 = vector.load %arg14[%c1_105, %c0_106, %c0_107, %c0_108] : memref<3x4x1x8xf32, #tpu.memory_space<vmem>>, vector<1x4x1x8xf32>
    %171 = vector.shape_cast %170 : vector<1x4x1x8xf32> to vector<4x1x8xf32>
    %c1_109 = arith.constant 1 : index
    %c0_110 = arith.constant 0 : index
    %c0_111 = arith.constant 0 : index
    %172 = vector.load %arg15[%c1_109, %c0_110, %c0_111] : memref<3x32x32xf32, #tpu.memory_space<vmem>>, vector<1x32x32xf32>
    %173 = vector.shape_cast %172 : vector<1x32x32xf32> to vector<32x32xf32>
    %c1_112 = arith.constant 1 : index
    %c0_113 = arith.constant 0 : index
    %c0_114 = arith.constant 0 : index
    %174 = vector.load %arg16[%c1_112, %c0_113, %c0_114] : memref<3x1x32xf32, #tpu.memory_space<vmem>>, vector<1x1x32xf32>
    %175 = vector.shape_cast %174 : vector<1x1x32xf32> to vector<1x32xf32>
    %c1_115 = arith.constant 1 : index
    %c0_116 = arith.constant 0 : index
    %c0_117 = arith.constant 0 : index
    %176 = vector.load %arg17[%c1_115, %c0_116, %c0_117] : memref<3x1x32xf32, #tpu.memory_space<vmem>>, vector<1x1x32xf32>
    %177 = vector.shape_cast %176 : vector<1x1x32xf32> to vector<1x32xf32>
    %c1_118 = arith.constant 1 : index
    %c0_119 = arith.constant 0 : index
    %c0_120 = arith.constant 0 : index
    %178 = vector.load %arg18[%c1_118, %c0_119, %c0_120] : memref<3x1x32xf32, #tpu.memory_space<vmem>>, vector<1x1x32xf32>
    %179 = vector.shape_cast %178 : vector<1x1x32xf32> to vector<1x32xf32>
    %c1_121 = arith.constant 1 : index
    %c0_122 = arith.constant 0 : index
    %c0_123 = arith.constant 0 : index
    %180 = vector.load %arg19[%c1_121, %c0_122, %c0_123] : memref<3x1x32xf32, #tpu.memory_space<vmem>>, vector<1x1x32xf32>
    %181 = vector.shape_cast %180 : vector<1x1x32xf32> to vector<1x32xf32>
    %c1_124 = arith.constant 1 : index
    %c0_125 = arith.constant 0 : index
    %c0_126 = arith.constant 0 : index
    %182 = vector.load %arg20[%c1_124, %c0_125, %c0_126] : memref<3x1x32xf32, #tpu.memory_space<vmem>>, vector<1x1x32xf32>
    %183 = vector.shape_cast %182 : vector<1x1x32xf32> to vector<1x32xf32>
    %184 = vector.shape_cast %159 : vector<8x32xf32> to vector<1x8x32xf32>
    %185 = vector.shape_cast %184 : vector<1x8x32xf32> to vector<1x8x32xf32>
    %186 = vector.broadcast %185 : vector<1x8x32xf32> to vector<4x8x32xf32>
    %187 = vector.shape_cast %159 : vector<8x32xf32> to vector<1x8x32xf32>
    %188 = vector.shape_cast %187 : vector<1x8x32xf32> to vector<1x8x32xf32>
    %189 = vector.broadcast %188 : vector<1x8x32xf32> to vector<4x8x32xf32>
    "tpu.trace_start"() <{level = 10 : i32, message = "hqe,hed->hqd"}> : () -> ()
    %cst_127 = arith.constant dense<0.000000e+00> : vector<4x8x8xf32>
    %190 = tpu.matmul %186, %161, %cst_127 {dimension_numbers = #tpu.dot_dimension_numbers<[2], [1], [1], [2], [0, 0, 0, 1, 1, 2], [0], [0]>} : vector<4x8x32xf32>, vector<4x32x8xf32>, vector<4x8x8xf32> -> vector<4x8x8xf32>
    "tpu.trace_stop"() : () -> ()
    %191 = vector.broadcast %163 : vector<4x1x8xf32> to vector<4x8x8xf32>
    %192 = arith.addf %190, %191 : vector<4x8x8xf32>
    "tpu.trace_start"() <{level = 10 : i32, message = "hke,hed->hkd"}> : () -> ()
    %cst_128 = arith.constant dense<0.000000e+00> : vector<4x8x8xf32>
    %193 = tpu.matmul %189, %165, %cst_128 {dimension_numbers = #tpu.dot_dimension_numbers<[2], [1], [1], [2], [0, 0, 0, 1, 1, 2], [0], [0]>} : vector<4x8x32xf32>, vector<4x32x8xf32>, vector<4x8x8xf32> -> vector<4x8x8xf32>
    "tpu.trace_stop"() : () -> ()
    %194 = vector.broadcast %167 : vector<4x1x8xf32> to vector<4x8x8xf32>
    %195 = arith.addf %193, %194 : vector<4x8x8xf32>
    "tpu.trace_start"() <{level = 10 : i32, message = "hke,hed->hkd"}> : () -> ()
    %cst_129 = arith.constant dense<0.000000e+00> : vector<4x8x8xf32>
    %196 = tpu.matmul %189, %169, %cst_129 {dimension_numbers = #tpu.dot_dimension_numbers<[2], [1], [1], [2], [0, 0, 0, 1, 1, 2], [0], [0]>} : vector<4x8x32xf32>, vector<4x32x8xf32>, vector<4x8x8xf32> -> vector<4x8x8xf32>
    "tpu.trace_stop"() : () -> ()
    %197 = vector.broadcast %171 : vector<4x1x8xf32> to vector<4x8x8xf32>
    %198 = arith.addf %196, %197 : vector<4x8x8xf32>
    "tpu.trace_start"() <{level = 10 : i32, message = "hqd,hkd->hqk"}> : () -> ()
    %cst_130 = arith.constant dense<0.000000e+00> : vector<4x8x8xf32>
    %199 = tpu.matmul %192, %195, %cst_130 {dimension_numbers = #tpu.dot_dimension_numbers<[2], [2], [1], [1], [0, 0, 0, 1, 1, 1], [0], [0]>} : vector<4x8x8xf32>, vector<4x8x8xf32>, vector<4x8x8xf32> -> vector<4x8x8xf32>
    "tpu.trace_stop"() : () -> ()
    %cst_131 = arith.constant 0.353553385 : f32
    %200 = vector.broadcast %cst_131 : f32 to vector<4x8x8xf32>
    %201 = arith.mulf %199, %200 : vector<4x8x8xf32>
    %202 = vector.shape_cast %41 : vector<8x8xi1> to vector<1x8x8xi1>
    %cst_132 = arith.constant -3.40282347E+38 : f32
    %203 = vector.shape_cast %202 : vector<1x8x8xi1> to vector<1x8x8xi1>
    %204 = vector.broadcast %203 : vector<1x8x8xi1> to vector<4x8x8xi1>
    %205 = vector.broadcast %cst_132 : f32 to vector<4x8x8xf32>
    %206 = arith.select %204, %201, %205 : vector<4x8x8xi1>, vector<4x8x8xf32>
    %cst_133 = arith.constant dense<0xFF800000> : vector<4x8xf32>
    %207 = vector.multi_reduction <maximumf>, %206, %cst_133 [2] : vector<4x8x8xf32> to vector<4x8xf32>
    %208 = vector.shape_cast %207 : vector<4x8xf32> to vector<4x8x1xf32>
    %209 = vector.broadcast %208 : vector<4x8x1xf32> to vector<4x8x8xf32>
    %210 = arith.subf %206, %209 : vector<4x8x8xf32>
    %211 = math.exp %210 : vector<4x8x8xf32>
    %cst_134 = arith.constant dense<0.000000e+00> : vector<4x8xf32>
    %212 = vector.multi_reduction <add>, %211, %cst_134 [2] : vector<4x8x8xf32> to vector<4x8xf32>
    %213 = vector.shape_cast %212 : vector<4x8xf32> to vector<4x8x1xf32>
    %214 = tpu.reciprocal %213 {approx = true} : vector<4x8x1xf32> -> vector<4x8x1xf32>
    %215 = vector.broadcast %214 : vector<4x8x1xf32> to vector<4x8x8xf32>
    %216 = arith.mulf %211, %215 : vector<4x8x8xf32>
    "tpu.trace_start"() <{level = 10 : i32, message = "hqk,hkd->hqd"}> : () -> ()
    %cst_135 = arith.constant dense<0.000000e+00> : vector<4x8x8xf32>
    %217 = tpu.matmul %216, %198, %cst_135 {dimension_numbers = #tpu.dot_dimension_numbers<[2], [1], [1], [2], [0, 0, 0, 1, 1, 2], [0], [0]>} : vector<4x8x8xf32>, vector<4x8x8xf32>, vector<4x8x8xf32> -> vector<4x8x8xf32>
    "tpu.trace_stop"() : () -> ()
    %218 = arith.addf %192, %217 : vector<4x8x8xf32>
    %219 = vector.extract_strided_slice %218 {offsets = [0, 0, 0], sizes = [1, 8, 8], strides = [1, 1, 1]} : vector<4x8x8xf32> to vector<1x8x8xf32>
    %220 = vector.shape_cast %219 : vector<1x8x8xf32> to vector<8x8xf32>
    %221 = vector.extract_strided_slice %218 {offsets = [1, 0, 0], sizes = [1, 8, 8], strides = [1, 1, 1]} : vector<4x8x8xf32> to vector<1x8x8xf32>
    %222 = vector.shape_cast %221 : vector<1x8x8xf32> to vector<8x8xf32>
    %223 = vector.extract_strided_slice %218 {offsets = [2, 0, 0], sizes = [1, 8, 8], strides = [1, 1, 1]} : vector<4x8x8xf32> to vector<1x8x8xf32>
    %224 = vector.shape_cast %223 : vector<1x8x8xf32> to vector<8x8xf32>
    %225 = vector.extract_strided_slice %218 {offsets = [3, 0, 0], sizes = [1, 8, 8], strides = [1, 1, 1]} : vector<4x8x8xf32> to vector<1x8x8xf32>
    %226 = vector.shape_cast %225 : vector<1x8x8xf32> to vector<8x8xf32>
    %227 = tpu.concatenate %220, %222, %224, %226 in 1 : vector<8x8xf32>, vector<8x8xf32>, vector<8x8xf32>, vector<8x8xf32> -> vector<8x32xf32>
    %cst_136 = arith.constant dense<0.000000e+00> : vector<8xf32>
    %228 = vector.multi_reduction <add>, %227, %cst_136 [1] : vector<8x32xf32> to vector<8xf32>
    %229 = vector.shape_cast %228 : vector<8xf32> to vector<8x1xf32>
    %cst_137 = arith.constant 3.200000e+01 : f32
    %230 = vector.broadcast %cst_137 : f32 to vector<8x1xf32>
    %231 = arith.divf %229, %230 : vector<8x1xf32>
    %232 = vector.broadcast %231 : vector<8x1xf32> to vector<8x32xf32>
    %233 = arith.subf %227, %232 : vector<8x32xf32>
    %234 = arith.mulf %233, %233 : vector<8x32xf32>
    %cst_138 = arith.constant dense<0.000000e+00> : vector<8xf32>
    %235 = vector.multi_reduction <add>, %234, %cst_138 [1] : vector<8x32xf32> to vector<8xf32>
    %236 = vector.shape_cast %235 : vector<8xf32> to vector<8x1xf32>
    %cst_139 = arith.constant 3.200000e+01 : f32
    %237 = vector.broadcast %cst_139 : f32 to vector<8x1xf32>
    %238 = arith.divf %236, %237 : vector<8x1xf32>
    %239 = vector.broadcast %231 : vector<8x1xf32> to vector<8x32xf32>
    %240 = arith.subf %227, %239 : vector<8x32xf32>
    %cst_140 = arith.constant 9.99999974E-6 : f32
    %241 = vector.broadcast %cst_140 : f32 to vector<8x1xf32>
    %242 = arith.addf %238, %241 : vector<8x1xf32>
    %243 = math.rsqrt %242 : vector<8x1xf32>
    %244 = vector.broadcast %243 : vector<8x1xf32> to vector<8x32xf32>
    %245 = arith.mulf %240, %244 : vector<8x32xf32>
    %246 = vector.broadcast %177 : vector<1x32xf32> to vector<8x32xf32>
    %247 = arith.mulf %245, %246 : vector<8x32xf32>
    %248 = vector.broadcast %179 : vector<1x32xf32> to vector<8x32xf32>
    %249 = arith.addf %247, %248 : vector<8x32xf32>
    %cst_141 = arith.constant dense<0.000000e+00> : vector<8x32xf32>
    %250 = tpu.matmul %249, %173, %cst_141 {dimension_numbers = #tpu.dot_dimension_numbers<[1], [0], [0], [1], [0, 0, 1, 1], [], []>} : vector<8x32xf32>, vector<32x32xf32>, vector<8x32xf32> -> vector<8x32xf32>
    %251 = vector.broadcast %175 : vector<1x32xf32> to vector<8x32xf32>
    %252 = arith.addf %250, %251 : vector<8x32xf32>
    %cst_142 = arith.constant 0.000000e+00 : f32
    %253 = vector.broadcast %cst_142 : f32 to vector<8x32xf32>
    %254 = arith.maximumf %252, %253 : vector<8x32xf32>
    %255 = arith.addf %249, %254 : vector<8x32xf32>
    %cst_143 = arith.constant dense<0.000000e+00> : vector<8xf32>
    %256 = vector.multi_reduction <add>, %255, %cst_143 [1] : vector<8x32xf32> to vector<8xf32>
    %257 = vector.shape_cast %256 : vector<8xf32> to vector<8x1xf32>
    %cst_144 = arith.constant 3.200000e+01 : f32
    %258 = vector.broadcast %cst_144 : f32 to vector<8x1xf32>
    %259 = arith.divf %257, %258 : vector<8x1xf32>
    %260 = vector.broadcast %259 : vector<8x1xf32> to vector<8x32xf32>
    %261 = arith.subf %255, %260 : vector<8x32xf32>
    %262 = arith.mulf %261, %261 : vector<8x32xf32>
    %cst_145 = arith.constant dense<0.000000e+00> : vector<8xf32>
    %263 = vector.multi_reduction <add>, %262, %cst_145 [1] : vector<8x32xf32> to vector<8xf32>
    %264 = vector.shape_cast %263 : vector<8xf32> to vector<8x1xf32>
    %cst_146 = arith.constant 3.200000e+01 : f32
    %265 = vector.broadcast %cst_146 : f32 to vector<8x1xf32>
    %266 = arith.divf %264, %265 : vector<8x1xf32>
    %267 = vector.broadcast %259 : vector<8x1xf32> to vector<8x32xf32>
    %268 = arith.subf %255, %267 : vector<8x32xf32>
    %cst_147 = arith.constant 9.99999974E-6 : f32
    %269 = vector.broadcast %cst_147 : f32 to vector<8x1xf32>
    %270 = arith.addf %266, %269 : vector<8x1xf32>
    %271 = math.rsqrt %270 : vector<8x1xf32>
    %272 = vector.broadcast %271 : vector<8x1xf32> to vector<8x32xf32>
    %273 = arith.mulf %268, %272 : vector<8x32xf32>
    %274 = vector.broadcast %181 : vector<1x32xf32> to vector<8x32xf32>
    %275 = arith.mulf %273, %274 : vector<8x32xf32>
    %276 = vector.broadcast %183 : vector<1x32xf32> to vector<8x32xf32>
    %277 = arith.addf %275, %276 : vector<8x32xf32>
    %c0_148 = arith.constant 0 : index
    %c0_149 = arith.constant 0 : index
    %c0_150 = arith.constant 0 : index
    %278 = vector.load %arg4[%c0_148, %c0_149, %c0_150] : memref<1x1x32xf32, #tpu.memory_space<vmem>>, vector<1x1x32xf32>
    %279 = vector.shape_cast %278 : vector<1x1x32xf32> to vector<1x32xf32>
    %cst_151 = arith.constant 5.000000e-01 : f32
    %280 = vector.broadcast %cst_151 : f32 to vector<1x8xf32>
    %281 = arith.cmpf ogt, %5, %280 : vector<1x8xf32>
    %c2 = arith.constant 2 : index
    %c0_152 = arith.constant 0 : index
    %c0_153 = arith.constant 0 : index
    %c0_154 = arith.constant 0 : index
    %282 = vector.load %arg9[%c2, %c0_152, %c0_153, %c0_154] : memref<3x4x32x8xf32, #tpu.memory_space<vmem>>, vector<1x4x32x8xf32>
    %283 = vector.shape_cast %282 : vector<1x4x32x8xf32> to vector<4x32x8xf32>
    %c2_155 = arith.constant 2 : index
    %c0_156 = arith.constant 0 : index
    %c0_157 = arith.constant 0 : index
    %c0_158 = arith.constant 0 : index
    %284 = vector.load %arg10[%c2_155, %c0_156, %c0_157, %c0_158] : memref<3x4x1x8xf32, #tpu.memory_space<vmem>>, vector<1x4x1x8xf32>
    %285 = vector.shape_cast %284 : vector<1x4x1x8xf32> to vector<4x1x8xf32>
    %c2_159 = arith.constant 2 : index
    %c0_160 = arith.constant 0 : index
    %c0_161 = arith.constant 0 : index
    %c0_162 = arith.constant 0 : index
    %286 = vector.load %arg11[%c2_159, %c0_160, %c0_161, %c0_162] : memref<3x4x32x8xf32, #tpu.memory_space<vmem>>, vector<1x4x32x8xf32>
    %287 = vector.shape_cast %286 : vector<1x4x32x8xf32> to vector<4x32x8xf32>
    %c2_163 = arith.constant 2 : index
    %c0_164 = arith.constant 0 : index
    %c0_165 = arith.constant 0 : index
    %c0_166 = arith.constant 0 : index
    %288 = vector.load %arg12[%c2_163, %c0_164, %c0_165, %c0_166] : memref<3x4x1x8xf32, #tpu.memory_space<vmem>>, vector<1x4x1x8xf32>
    %289 = vector.shape_cast %288 : vector<1x4x1x8xf32> to vector<4x1x8xf32>
    %c2_167 = arith.constant 2 : index
    %c0_168 = arith.constant 0 : index
    %c0_169 = arith.constant 0 : index
    %c0_170 = arith.constant 0 : index
    %290 = vector.load %arg13[%c2_167, %c0_168, %c0_169, %c0_170] : memref<3x4x32x8xf32, #tpu.memory_space<vmem>>, vector<1x4x32x8xf32>
    %291 = vector.shape_cast %290 : vector<1x4x32x8xf32> to vector<4x32x8xf32>
    %c2_171 = arith.constant 2 : index
    %c0_172 = arith.constant 0 : index
    %c0_173 = arith.constant 0 : index
    %c0_174 = arith.constant 0 : index
    %292 = vector.load %arg14[%c2_171, %c0_172, %c0_173, %c0_174] : memref<3x4x1x8xf32, #tpu.memory_space<vmem>>, vector<1x4x1x8xf32>
    %293 = vector.shape_cast %292 : vector<1x4x1x8xf32> to vector<4x1x8xf32>
    %c2_175 = arith.constant 2 : index
    %c0_176 = arith.constant 0 : index
    %c0_177 = arith.constant 0 : index
    %294 = vector.load %arg15[%c2_175, %c0_176, %c0_177] : memref<3x32x32xf32, #tpu.memory_space<vmem>>, vector<1x32x32xf32>
    %295 = vector.shape_cast %294 : vector<1x32x32xf32> to vector<32x32xf32>
    %c2_178 = arith.constant 2 : index
    %c0_179 = arith.constant 0 : index
    %c0_180 = arith.constant 0 : index
    %296 = vector.load %arg16[%c2_178, %c0_179, %c0_180] : memref<3x1x32xf32, #tpu.memory_space<vmem>>, vector<1x1x32xf32>
    %297 = vector.shape_cast %296 : vector<1x1x32xf32> to vector<1x32xf32>
    %c2_181 = arith.constant 2 : index
    %c0_182 = arith.constant 0 : index
    %c0_183 = arith.constant 0 : index
    %298 = vector.load %arg17[%c2_181, %c0_182, %c0_183] : memref<3x1x32xf32, #tpu.memory_space<vmem>>, vector<1x1x32xf32>
    %299 = vector.shape_cast %298 : vector<1x1x32xf32> to vector<1x32xf32>
    %c2_184 = arith.constant 2 : index
    %c0_185 = arith.constant 0 : index
    %c0_186 = arith.constant 0 : index
    %300 = vector.load %arg18[%c2_184, %c0_185, %c0_186] : memref<3x1x32xf32, #tpu.memory_space<vmem>>, vector<1x1x32xf32>
    %301 = vector.shape_cast %300 : vector<1x1x32xf32> to vector<1x32xf32>
    %c2_187 = arith.constant 2 : index
    %c0_188 = arith.constant 0 : index
    %c0_189 = arith.constant 0 : index
    %302 = vector.load %arg19[%c2_187, %c0_188, %c0_189] : memref<3x1x32xf32, #tpu.memory_space<vmem>>, vector<1x1x32xf32>
    %303 = vector.shape_cast %302 : vector<1x1x32xf32> to vector<1x32xf32>
    %c2_190 = arith.constant 2 : index
    %c0_191 = arith.constant 0 : index
    %c0_192 = arith.constant 0 : index
    %304 = vector.load %arg20[%c2_190, %c0_191, %c0_192] : memref<3x1x32xf32, #tpu.memory_space<vmem>>, vector<1x1x32xf32>
    %305 = vector.shape_cast %304 : vector<1x1x32xf32> to vector<1x32xf32>
    %306 = vector.shape_cast %279 : vector<1x32xf32> to vector<1x1x32xf32>
    %307 = vector.shape_cast %306 : vector<1x1x32xf32> to vector<1x1x32xf32>
    %308 = vector.broadcast %307 : vector<1x1x32xf32> to vector<4x1x32xf32>
    %309 = vector.shape_cast %277 : vector<8x32xf32> to vector<1x8x32xf32>
    %310 = vector.shape_cast %309 : vector<1x8x32xf32> to vector<1x8x32xf32>
    %311 = vector.broadcast %310 : vector<1x8x32xf32> to vector<4x8x32xf32>
    "tpu.trace_start"() <{level = 10 : i32, message = "hqe,hed->hqd"}> : () -> ()
    %cst_193 = arith.constant dense<0.000000e+00> : vector<4x1x8xf32>
    %312 = tpu.matmul %308, %283, %cst_193 {dimension_numbers = #tpu.dot_dimension_numbers<[2], [1], [1], [2], [0, 0, 0, 1, 1, 2], [0], [0]>} : vector<4x1x32xf32>, vector<4x32x8xf32>, vector<4x1x8xf32> -> vector<4x1x8xf32>
    "tpu.trace_stop"() : () -> ()
    %313 = arith.addf %312, %285 : vector<4x1x8xf32>
    "tpu.trace_start"() <{level = 10 : i32, message = "hke,hed->hkd"}> : () -> ()
    %cst_194 = arith.constant dense<0.000000e+00> : vector<4x8x8xf32>
    %314 = tpu.matmul %311, %287, %cst_194 {dimension_numbers = #tpu.dot_dimension_numbers<[2], [1], [1], [2], [0, 0, 0, 1, 1, 2], [0], [0]>} : vector<4x8x32xf32>, vector<4x32x8xf32>, vector<4x8x8xf32> -> vector<4x8x8xf32>
    "tpu.trace_stop"() : () -> ()
    %315 = vector.broadcast %289 : vector<4x1x8xf32> to vector<4x8x8xf32>
    %316 = arith.addf %314, %315 : vector<4x8x8xf32>
    "tpu.trace_start"() <{level = 10 : i32, message = "hke,hed->hkd"}> : () -> ()
    %cst_195 = arith.constant dense<0.000000e+00> : vector<4x8x8xf32>
    %317 = tpu.matmul %311, %291, %cst_195 {dimension_numbers = #tpu.dot_dimension_numbers<[2], [1], [1], [2], [0, 0, 0, 1, 1, 2], [0], [0]>} : vector<4x8x32xf32>, vector<4x32x8xf32>, vector<4x8x8xf32> -> vector<4x8x8xf32>
    "tpu.trace_stop"() : () -> ()
    %318 = vector.broadcast %293 : vector<4x1x8xf32> to vector<4x8x8xf32>
    %319 = arith.addf %317, %318 : vector<4x8x8xf32>
    "tpu.trace_start"() <{level = 10 : i32, message = "hqd,hkd->hqk"}> : () -> ()
    %cst_196 = arith.constant dense<0.000000e+00> : vector<4x1x8xf32>
    %320 = tpu.matmul %313, %316, %cst_196 {dimension_numbers = #tpu.dot_dimension_numbers<[2], [2], [1], [1], [0, 0, 0, 1, 1, 1], [0], [0]>} : vector<4x1x8xf32>, vector<4x8x8xf32>, vector<4x1x8xf32> -> vector<4x1x8xf32>
    "tpu.trace_stop"() : () -> ()
    %cst_197 = arith.constant 0.353553385 : f32
    %321 = vector.broadcast %cst_197 : f32 to vector<4x1x8xf32>
    %322 = arith.mulf %320, %321 : vector<4x1x8xf32>
    %323 = vector.shape_cast %281 : vector<1x8xi1> to vector<1x1x8xi1>
    %cst_198 = arith.constant -3.40282347E+38 : f32
    %324 = vector.shape_cast %323 : vector<1x1x8xi1> to vector<1x1x8xi1>
    %325 = vector.broadcast %324 : vector<1x1x8xi1> to vector<4x1x8xi1>
    %326 = vector.broadcast %cst_198 : f32 to vector<4x1x8xf32>
    %327 = arith.select %325, %322, %326 : vector<4x1x8xi1>, vector<4x1x8xf32>
    %cst_199 = arith.constant dense<0xFF800000> : vector<4x1xf32>
    %328 = vector.multi_reduction <maximumf>, %327, %cst_199 [2] : vector<4x1x8xf32> to vector<4x1xf32>
    %329 = vector.shape_cast %328 : vector<4x1xf32> to vector<4x1x1xf32>
    %330 = vector.broadcast %329 : vector<4x1x1xf32> to vector<4x1x8xf32>
    %331 = arith.subf %327, %330 : vector<4x1x8xf32>
    %332 = math.exp %331 : vector<4x1x8xf32>
    %cst_200 = arith.constant dense<0.000000e+00> : vector<4x1xf32>
    %333 = vector.multi_reduction <add>, %332, %cst_200 [2] : vector<4x1x8xf32> to vector<4x1xf32>
    %334 = vector.shape_cast %333 : vector<4x1xf32> to vector<4x1x1xf32>
    %335 = tpu.reciprocal %334 {approx = true} : vector<4x1x1xf32> -> vector<4x1x1xf32>
    %336 = vector.broadcast %335 : vector<4x1x1xf32> to vector<4x1x8xf32>
    %337 = arith.mulf %332, %336 : vector<4x1x8xf32>
    "tpu.trace_start"() <{level = 10 : i32, message = "hqk,hkd->hqd"}> : () -> ()
    %cst_201 = arith.constant dense<0.000000e+00> : vector<4x1x8xf32>
    %338 = tpu.matmul %337, %319, %cst_201 {dimension_numbers = #tpu.dot_dimension_numbers<[2], [1], [1], [2], [0, 0, 0, 1, 1, 2], [0], [0]>} : vector<4x1x8xf32>, vector<4x8x8xf32>, vector<4x1x8xf32> -> vector<4x1x8xf32>
    "tpu.trace_stop"() : () -> ()
    %339 = arith.addf %313, %338 : vector<4x1x8xf32>
    %340 = vector.extract_strided_slice %339 {offsets = [0, 0, 0], sizes = [1, 1, 8], strides = [1, 1, 1]} : vector<4x1x8xf32> to vector<1x1x8xf32>
    %341 = vector.shape_cast %340 : vector<1x1x8xf32> to vector<1x8xf32>
    %342 = vector.extract_strided_slice %339 {offsets = [1, 0, 0], sizes = [1, 1, 8], strides = [1, 1, 1]} : vector<4x1x8xf32> to vector<1x1x8xf32>
    %343 = vector.shape_cast %342 : vector<1x1x8xf32> to vector<1x8xf32>
    %344 = vector.extract_strided_slice %339 {offsets = [2, 0, 0], sizes = [1, 1, 8], strides = [1, 1, 1]} : vector<4x1x8xf32> to vector<1x1x8xf32>
    %345 = vector.shape_cast %344 : vector<1x1x8xf32> to vector<1x8xf32>
    %346 = vector.extract_strided_slice %339 {offsets = [3, 0, 0], sizes = [1, 1, 8], strides = [1, 1, 1]} : vector<4x1x8xf32> to vector<1x1x8xf32>
    %347 = vector.shape_cast %346 : vector<1x1x8xf32> to vector<1x8xf32>
    %348 = tpu.concatenate %341, %343, %345, %347 in 1 : vector<1x8xf32>, vector<1x8xf32>, vector<1x8xf32>, vector<1x8xf32> -> vector<1x32xf32>
    %cst_202 = arith.constant dense<0.000000e+00> : vector<1xf32>
    %349 = vector.multi_reduction <add>, %348, %cst_202 [1] : vector<1x32xf32> to vector<1xf32>
    %350 = vector.shape_cast %349 : vector<1xf32> to vector<1x1xf32>
    %cst_203 = arith.constant 3.200000e+01 : f32
    %351 = vector.broadcast %cst_203 : f32 to vector<1x1xf32>
    %352 = arith.divf %350, %351 : vector<1x1xf32>
    %353 = vector.broadcast %352 : vector<1x1xf32> to vector<1x32xf32>
    %354 = arith.subf %348, %353 : vector<1x32xf32>
    %355 = arith.mulf %354, %354 : vector<1x32xf32>
    %cst_204 = arith.constant dense<0.000000e+00> : vector<1xf32>
    %356 = vector.multi_reduction <add>, %355, %cst_204 [1] : vector<1x32xf32> to vector<1xf32>
    %357 = vector.shape_cast %356 : vector<1xf32> to vector<1x1xf32>
    %cst_205 = arith.constant 3.200000e+01 : f32
    %358 = vector.broadcast %cst_205 : f32 to vector<1x1xf32>
    %359 = arith.divf %357, %358 : vector<1x1xf32>
    %360 = vector.broadcast %352 : vector<1x1xf32> to vector<1x32xf32>
    %361 = arith.subf %348, %360 : vector<1x32xf32>
    %cst_206 = arith.constant 9.99999974E-6 : f32
    %362 = vector.broadcast %cst_206 : f32 to vector<1x1xf32>
    %363 = arith.addf %359, %362 : vector<1x1xf32>
    %364 = math.rsqrt %363 : vector<1x1xf32>
    %365 = vector.broadcast %364 : vector<1x1xf32> to vector<1x32xf32>
    %366 = arith.mulf %361, %365 : vector<1x32xf32>
    %367 = arith.mulf %366, %299 : vector<1x32xf32>
    %368 = arith.addf %367, %301 : vector<1x32xf32>
    %cst_207 = arith.constant dense<0.000000e+00> : vector<1x32xf32>
    %369 = tpu.matmul %368, %295, %cst_207 {dimension_numbers = #tpu.dot_dimension_numbers<[1], [0], [0], [1], [0, 0, 1, 1], [], []>} : vector<1x32xf32>, vector<32x32xf32>, vector<1x32xf32> -> vector<1x32xf32>
    %370 = arith.addf %369, %297 : vector<1x32xf32>
    %cst_208 = arith.constant 0.000000e+00 : f32
    %371 = vector.broadcast %cst_208 : f32 to vector<1x32xf32>
    %372 = arith.maximumf %370, %371 : vector<1x32xf32>
    %373 = arith.addf %368, %372 : vector<1x32xf32>
    %cst_209 = arith.constant dense<0.000000e+00> : vector<1xf32>
    %374 = vector.multi_reduction <add>, %373, %cst_209 [1] : vector<1x32xf32> to vector<1xf32>
    %375 = vector.shape_cast %374 : vector<1xf32> to vector<1x1xf32>
    %cst_210 = arith.constant 3.200000e+01 : f32
    %376 = vector.broadcast %cst_210 : f32 to vector<1x1xf32>
    %377 = arith.divf %375, %376 : vector<1x1xf32>
    %378 = vector.broadcast %377 : vector<1x1xf32> to vector<1x32xf32>
    %379 = arith.subf %373, %378 : vector<1x32xf32>
    %380 = arith.mulf %379, %379 : vector<1x32xf32>
    %cst_211 = arith.constant dense<0.000000e+00> : vector<1xf32>
    %381 = vector.multi_reduction <add>, %380, %cst_211 [1] : vector<1x32xf32> to vector<1xf32>
    %382 = vector.shape_cast %381 : vector<1xf32> to vector<1x1xf32>
    %cst_212 = arith.constant 3.200000e+01 : f32
    %383 = vector.broadcast %cst_212 : f32 to vector<1x1xf32>
    %384 = arith.divf %382, %383 : vector<1x1xf32>
    %385 = vector.broadcast %377 : vector<1x1xf32> to vector<1x32xf32>
    %386 = arith.subf %373, %385 : vector<1x32xf32>
    %cst_213 = arith.constant 9.99999974E-6 : f32
    %387 = vector.broadcast %cst_213 : f32 to vector<1x1xf32>
    %388 = arith.addf %384, %387 : vector<1x1xf32>
    %389 = math.rsqrt %388 : vector<1x1xf32>
    %390 = vector.broadcast %389 : vector<1x1xf32> to vector<1x32xf32>
    %391 = arith.mulf %386, %390 : vector<1x32xf32>
    %392 = arith.mulf %391, %303 : vector<1x32xf32>
    %393 = arith.addf %392, %305 : vector<1x32xf32>
    %c0_214 = arith.constant 0 : index
    %c0_215 = arith.constant 0 : index
    %c0_216 = arith.constant 0 : index
    %394 = vector.load %arg21[%c0_214, %c0_215, %c0_216] : memref<1x1x32xf32, #tpu.memory_space<vmem>>, vector<1x1x32xf32>
    %395 = vector.shape_cast %394 : vector<1x1x32xf32> to vector<1x32xf32>
    %396 = vector.shape_cast %393 : vector<1x32xf32> to vector<1x1x32xf32>
    tpu.vector_store %arg21[%c0_214, %c0_215, %c0_216], %396 {strides = array<i32>} : memref<1x1x32xf32, #tpu.memory_space<vmem>>, vector<1x1x32xf32>,
    return
  }
  func.func @transform_0(%arg0: i32) -> (i32, i32, i32) {
    %c0_i32 = arith.constant 0 : i32
    %c0_i32_0 = arith.constant 0 : i32
    %c0_i32_1 = arith.constant 0 : i32
    return %arg0, %c0_i32, %c0_i32_0 : i32, i32, i32
  }
  func.func @transform_1(%arg0: i32) -> (i32, i32, i32) {
    %c0_i32 = arith.constant 0 : i32
    %c0_i32_0 = arith.constant 0 : i32
    %c0_i32_1 = arith.constant 0 : i32
    return %arg0, %c0_i32, %c0_i32_0 : i32, i32, i32
  }
  func.func @transform_2(%arg0: i32) -> (i32, i32, i32) {
    %c0_i32 = arith.constant 0 : i32
    %c0_i32_0 = arith.constant 0 : i32
    %c0_i32_1 = arith.constant 0 : i32
    return %arg0, %c0_i32, %c0_i32_0 : i32, i32, i32
  }
  func.func @transform_3(%arg0: i32) -> (i32, i32, i32) {
    %c0_i32 = arith.constant 0 : i32
    %c0_i32_0 = arith.constant 0 : i32
    %c0_i32_1 = arith.constant 0 : i32
    %c0_i32_2 = arith.constant 0 : i32
    return %c0_i32, %c0_i32_0, %c0_i32_1 : i32, i32, i32
  }
  func.func @transform_4(%arg0: i32) -> (i32, i32) {
    %c0_i32 = arith.constant 0 : i32
    %c0_i32_0 = arith.constant 0 : i32
    %c0_i32_1 = arith.constant 0 : i32
    return %c0_i32, %c0_i32_0 : i32, i32
  }
  func.func @transform_5(%arg0: i32) -> (i32, i32) {
    %c0_i32 = arith.constant 0 : i32
    %c0_i32_0 = arith.constant 0 : i32
    %c0_i32_1 = arith.constant 0 : i32
    return %c0_i32, %c0_i32_0 : i32, i32
  }
  func.func @transform_6(%arg0: i32) -> (i32, i32) {
    %c0_i32 = arith.constant 0 : i32
    %c0_i32_0 = arith.constant 0 : i32
    %c0_i32_1 = arith.constant 0 : i32
    return %c0_i32, %c0_i32_0 : i32, i32
  }
  func.func @transform_7(%arg0: i32) -> (i32, i32) {
    %c0_i32 = arith.constant 0 : i32
    %c0_i32_0 = arith.constant 0 : i32
    %c0_i32_1 = arith.constant 0 : i32
    return %c0_i32, %c0_i32_0 : i32, i32
  }
  func.func @transform_8(%arg0: i32) -> (i32, i32, i32, i32) {
    %c0_i32 = arith.constant 0 : i32
    %c0_i32_0 = arith.constant 0 : i32
    %c0_i32_1 = arith.constant 0 : i32
    %c0_i32_2 = arith.constant 0 : i32
    %c0_i32_3 = arith.constant 0 : i32
    return %c0_i32, %c0_i32_0, %c0_i32_1, %c0_i32_2 : i32, i32, i32, i32
  }
  func.func @transform_9(%arg0: i32) -> (i32, i32, i32, i32) {
    %c0_i32 = arith.constant 0 : i32
    %c0_i32_0 = arith.constant 0 : i32
    %c0_i32_1 = arith.constant 0 : i32
    %c0_i32_2 = arith.constant 0 : i32
    %c0_i32_3 = arith.constant 0 : i32
    return %c0_i32, %c0_i32_0, %c0_i32_1, %c0_i32_2 : i32, i32, i32, i32
  }
  func.func @transform_10(%arg0: i32) -> (i32, i32, i32, i32) {
    %c0_i32 = arith.constant 0 : i32
    %c0_i32_0 = arith.constant 0 : i32
    %c0_i32_1 = arith.constant 0 : i32
    %c0_i32_2 = arith.constant 0 : i32
    %c0_i32_3 = arith.constant 0 : i32
    return %c0_i32, %c0_i32_0, %c0_i32_1, %c0_i32_2 : i32, i32, i32, i32
  }
  func.func @transform_11(%arg0: i32) -> (i32, i32, i32, i32) {
    %c0_i32 = arith.constant 0 : i32
    %c0_i32_0 = arith.constant 0 : i32
    %c0_i32_1 = arith.constant 0 : i32
    %c0_i32_2 = arith.constant 0 : i32
    %c0_i32_3 = arith.constant 0 : i32
    return %c0_i32, %c0_i32_0, %c0_i32_1, %c0_i32_2 : i32, i32, i32, i32
  }
  func.func @transform_12(%arg0: i32) -> (i32, i32, i32, i32) {
    %c0_i32 = arith.constant 0 : i32
    %c0_i32_0 = arith.constant 0 : i32
    %c0_i32_1 = arith.constant 0 : i32
    %c0_i32_2 = arith.constant 0 : i32
    %c0_i32_3 = arith.constant 0 : i32
    return %c0_i32, %c0_i32_0, %c0_i32_1, %c0_i32_2 : i32, i32, i32, i32
  }
  func.func @transform_13(%arg0: i32) -> (i32, i32, i32, i32) {
    %c0_i32 = arith.constant 0 : i32
    %c0_i32_0 = arith.constant 0 : i32
    %c0_i32_1 = arith.constant 0 : i32
    %c0_i32_2 = arith.constant 0 : i32
    %c0_i32_3 = arith.constant 0 : i32
    return %c0_i32, %c0_i32_0, %c0_i32_1, %c0_i32_2 : i32, i32, i32, i32
  }
  func.func @transform_14(%arg0: i32) -> (i32, i32, i32) {
    %c0_i32 = arith.constant 0 : i32
    %c0_i32_0 = arith.constant 0 : i32
    %c0_i32_1 = arith.constant 0 : i32
    %c0_i32_2 = arith.constant 0 : i32
    return %c0_i32, %c0_i32_0, %c0_i32_1 : i32, i32, i32
  }
  func.func @transform_15(%arg0: i32) -> (i32, i32, i32) {
    %c0_i32 = arith.constant 0 : i32
    %c0_i32_0 = arith.constant 0 : i32
    %c0_i32_1 = arith.constant 0 : i32
    %c0_i32_2 = arith.constant 0 : i32
    return %c0_i32, %c0_i32_0, %c0_i32_1 : i32, i32, i32
  }
  func.func @transform_16(%arg0: i32) -> (i32, i32, i32) {
    %c0_i32 = arith.constant 0 : i32
    %c0_i32_0 = arith.constant 0 : i32
    %c0_i32_1 = arith.constant 0 : i32
    %c0_i32_2 = arith.constant 0 : i32
    return %c0_i32, %c0_i32_0, %c0_i32_1 : i32, i32, i32
  }
  func.func @transform_17(%arg0: i32) -> (i32, i32, i32) {
    %c0_i32 = arith.constant 0 : i32
    %c0_i32_0 = arith.constant 0 : i32
    %c0_i32_1 = arith.constant 0 : i32
    %c0_i32_2 = arith.constant 0 : i32
    return %c0_i32, %c0_i32_0, %c0_i32_1 : i32, i32, i32
  }
  func.func @transform_18(%arg0: i32) -> (i32, i32, i32) {
    %c0_i32 = arith.constant 0 : i32
    %c0_i32_0 = arith.constant 0 : i32
    %c0_i32_1 = arith.constant 0 : i32
    %c0_i32_2 = arith.constant 0 : i32
    return %c0_i32, %c0_i32_0, %c0_i32_1 : i32, i32, i32
  }
  func.func @transform_19(%arg0: i32) -> (i32, i32, i32) {
    %c0_i32 = arith.constant 0 : i32
    %c0_i32_0 = arith.constant 0 : i32
    %c0_i32_1 = arith.constant 0 : i32
    %c0_i32_2 = arith.constant 0 : i32
    return %c0_i32, %c0_i32_0, %c0_i32_1 : i32, i32, i32
  }
  func.func @transform_20(%arg0: i32) -> (i32, i32, i32) {
    %c0_i32 = arith.constant 0 : i32
    %c0_i32_0 = arith.constant 0 : i32
    %c0_i32_1 = arith.constant 0 : i32
    return %arg0, %c0_i32, %c0_i32_0 : i32, i32, i32
  }
}

</mosaic_0001>

<bundles_post_ra>
// kernel: set_transformer_forward.1
= control target key start
LH: loop header
LB: loop body
LE: loop exit
PB: predicated region body
PF: predicated region fallthrough
CT: control target
= control target key end

     0   :  { %s9061_s0 = inlined_call_operand.vmem [shape: f32[2,8,4], index: 0, kind: input, shape index: {}]   ;;  %s9062_s1 = inlined_call_operand.vmem [shape: f32[2,8,1], index: 1, kind: input, shape index: {}]   ;;  %s9063_s2 = inlined_call_operand.vmem [shape: f32[2,1,8], index: 2, kind: input, shape index: {}]   ;;  %s9064_s3 = inlined_call_operand.vmem [shape: f32[1,1,32], index: 3, kind: input, shape index: {}]   ;;  %s9065_s4 = inlined_call_operand.vmem [shape: f32[4,32], index: 4, kind: input, shape index: {}]   ;;  %s9066_s5 = inlined_call_operand.vmem [shape: f32[1,32], index: 5, kind: input, shape index: {}]   ;;  %s9067_s6 = inlined_call_operand.vmem [shape: f32[1,32], index: 6, kind: input, shape index: {}]   ;;  %s9068_s7 = inlined_call_operand.vmem [shape: f32[1,32], index: 7, kind: input, shape index: {}]   ;;  %s9069_s8 = inlined_call_operand.vmem [shape: f32[3,4,32,8], index: 8, kind: input, shape index: {}]   ;;  %s9070_s9 = inlined_call_operand.vmem [shape: f32[3,4,1,8], index: 9, kind: input, shape index: {}]   ;;  %s9071_s10 = inlined_call_operand.vmem [shape: f32[3,4,32,8], index: 10, kind: input, shape index: {}]   ;;  %s9072_s11 = inlined_call_operand.vmem [shape: f32[3,4,1,8], index: 11, kind: input, shape index: {}]   ;;  %s9073_s12 = inlined_call_operand.vmem [shape: f32[3,4,32,8], index: 12, kind: input, shape index: {}]   ;;  %s9074_s13 = inlined_call_operand.vmem [shape: f32[3,4,1,8], index: 13, kind: input, shape index: {}]   ;;  %s9075_s14 = inlined_call_operand.vmem [shape: f32[3,32,32], index: 14, kind: input, shape index: {}]   ;;  %s9076_s15 = inlined_call_operand.vmem [shape: f32[3,1,32], index: 15, kind: input, shape index: {}]   ;;  %s9077_s16 = inlined_call_operand.vmem [shape: f32[3,1,32], index: 16, kind: input, shape index: {}]   ;;  %s9078_s17 = inlined_call_operand.vmem [shape: f32[3,1,32], index: 17, kind: input, shape index: {}]   ;;  %s9079_s18 = inlined_call_operand.vmem [shape: f32[3,1,32], index: 18, kind: input, shape index: {}]   ;;  %s9080_s19 = inlined_call_operand.vmem [shape: f32[3,1,32], index: 19, kind: input, shape index: {}]   ;;  %s9081_s20 = inlined_call_operand.hbm [shape: f32[2,1,32], index: 20, kind: output, shape index: {}]  }
   0x1   :  { %9095 = sst [smem:[#allocation11_spill]] %s9061_s0 }
   0x2   :  { %9096 = sst [smem:[#allocation12_spill]] %s9062_s1 }
   0x3   :  { %9097 = sst [smem:[#allocation13_spill]] %s9063_s2 }
   0x4   :  { %9098 = sst [smem:[#allocation14_spill]] %s9064_s3 }
   0x5   :  { %9099 = sst [smem:[#allocation15_spill]] %s9065_s4 }
   0x6   :  { %9100 = sst [smem:[#allocation16_spill]] %s9066_s5 }
   0x7   :  { %9101 = sst [smem:[#allocation17_spill]] %s9067_s6 }
   0x8   :  { %9102 = sst [smem:[#allocation18_spill]] %s9068_s7 }
   0x9   :  { %25 = vsyncpa [#allocation3], 0 }
   0xa   :  { %27 = vsyncpa [#allocation3 + $0x1], 0  ;;  %s7812_s1 = smov 0   ;;  %s7814_s22 = smov 0  }
   0xb   :  { %s7816_s23 = smov 0   ;;  %s7818_s24 = smov 0  }
   0xc LB: > { %9103 = sst [smem:[#allocation5_spill]] %s7685_s1  ;;  %s7833_s2 = sadd.s32 4294967295, %s7697_s24   ;;  %s7697_s24 = sphi %s7818_s24, %s9126_s24   ;;  %s7693_s23 = sphi %s7816_s23, %s9128_s23   ;;  %s7689_s22 = sphi %s7814_s22, %s9130_s22   ;;  %s7685_s1 = sphi %s7812_s1, %s9129_s1  }
   0xd   : > { %9104 = sst [smem:[#allocation6_spill]] %s7693_s23  ;;  %s6221_s25 = sadd.s32 4294967294, %s7697_s24  }
   0xe   : > { %9105 = sst [smem:[#allocation7_spill]] %s7697_s24  ;;  %s7837_s3 = sadd.s32 1, %s7697_s24  }
   0xf   : > { %9106 = sst [smem:[#allocation8_spill]] %s7837_s3  ;;  %s475_s26 = sadd.s32 1, %s7693_s23 }
  0x10   : > { %s472_s27 = ssub.s32 %s7697_s24, %s7837_s3  ;;  %p485_p0 = scmp.ne.s32.totalorder %s7693_s23, %s7689_s22 }
  0x11   : > { %p473_p1 = scmp.eq.s32.totalorder %s472_s27, 0  ;;  %p486_p2 = scmp.eq.s32.totalorder %s7833_s2, 1 }
  0x12   : > { %p491_p3 = scmp.ne.s32.totalorder %s7689_s22, %s7685_s1  ;;  %p492_p4 = scmp.eq.s32.totalorder %s6221_s25, 1 }
  0x13   : > { %s7848_s28 = scalar_select %p473_p1, %s7693_s23, %s475_s26  }
  0x14   : > { %p7850_p5 = por %p486_p2, %p485_p0  ;;  %p7854_p6 = por %p492_p4, %p491_p3 }
  0x15   : > { %9107 = sst [smem:[#allocation9_spill]] %s7848_s28  ;;  %p6224_p7 = scmp.ge.s32.totalorder %s7697_s24, 1 }
  0x16   : > { %s9109_s29 = scalar_select %p7854_p6, 1, 0 }
  0x17   : > { %p581_p8 = scmp.lt.s32.totalorder %s7697_s24, 3 }
  0x18   : > { %9110 = sst [smem:[#allocation10_spill]] %s9109_s29 }
  0x19   : > { %p582_p9 = pnand %p6224_p7, %p581_p8 }
  0x1a   : > { %s9111_s21 = sld [smem:[#allocation15_spill]] (!%p582_p9)  ;;  %vm670_vm0 = vcmask (!%p582_p9), 1043456   ;;  %p644_p10 = scmp.lt.s32.totalorder (!%p582_p9), %s7833_s2, 1  ;;  %v7699_v1 = vmov (!%p582_p9), 0.0   ;;  %vm7700_vm1 = vmmov (!%p582_p9), 0   ;;  %vm666_vm2 = vcmask (!%p582_p9), 31744  }
  0x1b   : > { %585 = sbr.rel (%p582_p9) target bundleno = 6407 (0x1907), region = 100  ;;  %6735 = vmatprep.subr.mxu0 (!%p582_p9), %v7699_v1  ;;  %6737 = vmatprep.mubr.msk.f32.mxu0 (!%p582_p9), %vm7700_vm1, %v7699_v1  ;;  %s9112_s0 = sld [smem:[#allocation11_spill]] (!%p582_p9)  ;;  %vm746_vm3 = vcmask (!%p582_p9), 261120   ;;  %v789_v13 = vld [vmem:[%s9069_s8] sm:$0xff] (!%p582_p9)  ;;  %v790_v14 = vld [vmem:[%s9069_s8 + $0x8] sm:$0xff] (!%p582_p9)  ;;  %v7701_v18 = vmov (!%p582_p9), 0.0|0.0  }
  0x1c   : > { %6748 = vmatprep.mubr.msk.f32.mxu1 (!%p582_p9), %vm7700_vm1, %v7699_v1  ;;  %s9113_s5 = sld [smem:[#allocation16_spill]] (!%p582_p9)  ;;  %v793_v15 = vld [vmem:[%s9069_s8 + $0x20] sm:$0xff] (!%p582_p9)  ;;  %v7290_v16 = vpack.c.bf16 (!%p582_p9), %v790_v14, %v789_v13  ;;  %v794_v17 = vld [vmem:[%s9069_s8 + $0x28] sm:$0xff] (!%p582_p9)  ;;  %7289 = vmatprep.subr.bf16.mxu1 (!%p582_p9), %v7701_v18  ;;  %v791_v20 = vld [vmem:[%s9069_s8 + $0x10] sm:$0xff] (!%p582_p9)  ;;  %s9114_s6 = sld [smem:[#allocation17_spill]] (!%p582_p9)  ;;  %vm1773_vm4 = vcmask (!%p582_p9), 64512  }
  0x1d   : > { %v7296_v19 = vpack.c.bf16 (!%p582_p9), %v794_v17, %v793_v15  ;;  %v792_v21 = vld [vmem:[%s9069_s8 + $0x18] sm:$0xff] (!%p582_p9)  ;;  %v795_v22 = vld [vmem:[%s9069_s8 + $0x30] sm:$0xff] (!%p582_p9)  ;;  %s9115_s7 = sld [smem:[#allocation18_spill]] (!%p582_p9)  ;;  %v797_v33 = vld [vmem:[%s9069_s8 + $0x40] sm:$0xff] (!%p582_p9)  ;;  %s9117_s3 = sld [smem:[#allocation12_spill]] (!%p582_p9)  ;;  %vm2441_vm6 = vcmask (!%p582_p9), 130048  }
  0x1e   : > { %7291 = vmatpush3.bf16.msra.mxu1 (!%p582_p9), %v7290_v16  ;;  %v7293_v23 = vpack.c.bf16 (!%p582_p9), %v792_v21, %v791_v20  ;;  %v796_v24 = vld [vmem:[%s9069_s8 + $0x38] sm:$0xff] (!%p582_p9)  ;;  %v798_v35 = vld [vmem:[%s9069_s8 + $0x48] sm:$0xff] (!%p582_p9)  ;;  %v801_v36 = vld [vmem:[%s9069_s8 + $0x60] sm:$0xff] (!%p582_p9)  ;;  %s9118_s30 = sld [smem:[#allocation13_spill]] (!%p582_p9)  ;;  %vm2443_vm7 = vcmask (!%p582_p9), 195584   ;;  %s9120_s28 = smov (!%p582_p9), 16  }
  0x1f   : > { %7292 = vmatprep.subr.bf16.mxu1 (!%p582_p9), %v7701_v18  ;;  %v7299_v25 = vpack.c.bf16 (!%p582_p9), %v796_v24, %v795_v22  ;;  %v802_v37 = vld [vmem:[%s9069_s8 + $0x68] sm:$0xff] (!%p582_p9)  ;;  %v7302_v39 = vpack.c.bf16 (!%p582_p9), %v798_v35, %v797_v33  ;;  %v799_v41 = vld [vmem:[%s9069_s8 + $0x50] sm:$0xff] (!%p582_p9)  ;;  %v800_v43 = vld [vmem:[%s9069_s8 + $0x58] sm:$0xff] (!%p582_p9)  ;;  %vm5669_vm9 = vcmask (!%p582_p9), 57344   ;;  %vm6025_vm10 = vcmask (!%p582_p9), 253952  }
  0x20   : > { %v658_v0 = vld [vmem:[%s9111_s21] sm:$0xf] (!%p582_p9)  ;;  %v7308_v40 = vpack.c.bf16 (!%p582_p9), %v802_v37, %v801_v36  ;;  %v803_v44 = vld [vmem:[%s9069_s8 + $0x70] sm:$0xff] (!%p582_p9)  ;;  %v804_v45 = vld [vmem:[%s9069_s8 + $0x78] sm:$0xff] (!%p582_p9)  ;;  %v7305_v46 = vpack.c.bf16 (!%p582_p9), %v800_v43, %v799_v41 }
  0x21   : > { %6736 = vmatpush3.msk.msra.mxu0 (!%p582_p9), %vm670_vm0, %v658_v0  ;;  %v7311_v47 = vpack.c.bf16 (!%p582_p9), %v804_v45, %v803_v44  ;;  %v809_v48 = vld [vmem:[%s9071_s10] sm:$0xff] (!%p582_p9)  ;;  %v810_v49 = vld [vmem:[%s9071_s10 + $0x8] sm:$0xff] (!%p582_p9)  ;;  %v811_v54 = vld [vmem:[%s9071_s10 + $0x10] sm:$0xff] (!%p582_p9) }
  0x22   : > { %s7868_s25 = scalar_select %p644_p10, %s7833_s2, 1  ;;  %v6227_v3 = vld [vmem:[%s9113_s5] ss:$0 sm:$0xff]  ;;  %7295 = vmatprep.subr.bf16.mxu0 %v7701_v18  ;;  %7294 = vmatpush3.bf16.msra.mxu1 %v7293_v23  ;;  %v814_v51 = vld [vmem:[%s9071_s10 + $0x28] sm:$0xff]  ;;  %v7314_v52 = vpack.c.bf16 %v810_v49, %v809_v48  ;;  %v812_v55 = vld [vmem:[%s9071_s10 + $0x18] sm:$0xff] }
  0x23   : > { %7301 = vmatprep.subr.bf16.mxu1 %v7701_v18  ;;  %v6230_v30 = vld [vmem:[%s9114_s6] ss:$0 sm:$0xff]  ;;  %v815_v56 = vld [vmem:[%s9071_s10 + $0x30] sm:$0xff]  ;;  %v816_v57 = vld [vmem:[%s9071_s10 + $0x38] sm:$0xff]  ;;  %v7317_v58 = vpack.c.bf16 %v812_v55, %v811_v54  ;;  %s6487_s6 = sshll.u32 %s7833_s2, 4  ;;  %s7706_s2 = smov [#allocation2]  }
  0x24   : > { %s9083_s26 = sshll.u32 %s7868_s25, 3  ;;  %v6231_v32 = vld [vmem:[%s9115_s7] ss:$0 sm:$0xff]  ;;  %v7323_v59 = vpack.c.bf16 %v816_v57, %v815_v56  ;;  %v818_v61 = vld [vmem:[%s9071_s10 + $0x48] sm:$0xff]  ;;  %v831_v15 = vld [vmem:[%s9073_s12 + $0x10] sm:$0xff]  ;;  %s9116_s5 = sshll.u32 %s7868_s25, 3 }
  0x25   : > { %s647_s21 = scalar_lea.vmem %s9112_s0, %s9083_s26  ;;  %v813_v50 = vld [vmem:[%s9071_s10 + $0x20] sm:$0xff]  ;;  %v822_v63 = vld [vmem:[%s9071_s10 + $0x68] sm:$0xff]  ;;  %v832_v16 = vld [vmem:[%s9073_s12 + $0x18] sm:$0xff]  ;;  %s651_s29 = scalar_lea.vmem %s9117_s3, %s9116_s5 }
  0x26   : > { %v655_v2 = vld [vmem:[%s647_s21] sm:$0xff]  ;;  %v7320_v53 = vpack.c.bf16 %v814_v51, %v813_v50  ;;  %v835_v17 = vld [vmem:[%s9073_s12 + $0x30] sm:$0xff]  ;;  %v7341_v20 = vpack.c.bf16 %v832_v16, %v831_v15  ;;  %v838_v23 = vld [vmem:[%s9073_s12 + $0x48] sm:$0xff]  ;;  %s8188_s23 = scalar_lea.vmem %s9118_s30, %s7868_s25  ;;  %s9091_s0 = smov 8  }
  0x27   : > { %6738 = vmatmul.mubr.msk.f32.vlgmr.msra.gmra.mrb[0].mxu0 %vm666_vm2, %v655_v2  ;;  %v817_v60 = vld [vmem:[%s9071_s10 + $0x40] sm:$0xff]  ;;  %s9089_s3 = smov 16   ;;  %s9121_s5 = smov 24  }
  0x28   : > { %6759 = vmatprep.mubr.msk.f32.mxu0 %vm7700_vm1, %v7699_v1  ;;  %7297 = vmatpush3.bf16.msra.mxu0 %v7296_v19  ;;  %v821_v62 = vld [vmem:[%s9071_s10 + $0x60] sm:$0xff]  ;;  %v7326_v0 = vpack.c.bf16 %v818_v61, %v817_v60  ;;  %v836_v19 = vld [vmem:[%s9073_s12 + $0x38] sm:$0xff]  ;;  %s9018_s24 = scalar_lea.hbm %s9081_s20, %s6487_s6  ;;  %s7639_s30 = sshll.u32 %s7706_s2, 4  ;;  %s7640_s30 = int_to_ptr.vmem [resolvable:$false] %s7639_s30 }
  0x29   : > { %7298 = vmatprep.subr.bf16.mxu0 %v7701_v18  ;;  %v7332_v2 = vpack.c.bf16 %v822_v63, %v821_v62  ;;  %v7347_v21 = vpack.c.bf16 %v836_v19, %v835_v17  ;;  %v837_v22 = vld [vmem:[%s9073_s12 + $0x40] sm:$0xff]  ;;  %s7641_s25 = scalar_lea.vmem %s7640_s30, 32 }
  0x2a   : > { %v841_v24 = vld [vmem:[%s9073_s12 + $0x60] sm:$0xff] }
  0x2b   : > { %v656_v35 = vld [vmem:[%s651_s29] sm:$0xff]  ;;  %s9087_s29 = smov 24  }
  0x2c   : > { %7300 = vmatpush3.bf16.msra.mxu0 %v7299_v25  ;;  %v842_v25 = vld [vmem:[%s9073_s12 + $0x68] sm:$0xff]  ;;  %v6240_v44 = vld [vmem:[%s9072_s11] ss:$0 sm:$0xff]  ;;  %v6241_v51 = vld [vmem:[%s9072_s11 + $0x1] ss:$0 sm:$0xff] }
  0x2d   : > { %7307 = vmatprep.subr.bf16.mxu0 %v7701_v18  ;;  %v6242_v55 = vld [vmem:[%s9072_s11 + $0x2] ss:$0 sm:$0xff]  ;;  %v6243_v56 = vld [vmem:[%s9072_s11 + $0x3] ss:$0 sm:$0xff]  ;;  %v7634_v17 = vld [vmem:[%s8188_s23] ss:$0 sm:$0xff] }
  0x2e   : > { %v6234_v60 = vld [vmem:[%s9070_s9 + $0x2] ss:$0 sm:$0xff]  ;;  %v6235_v61 = vld [vmem:[%s9070_s9 + $0x3] ss:$0 sm:$0xff] }
  0xfa   : > { %v740_v4 = vpop.f32.mrb[0].mxu0 }
  0xfb   : > { %v741_v5 = vadd.f32 %v6227_v3, %v740_v4  ;;  %v6739_v6 = vpop.f32.mrb[1].mxu0  ;;  %v819_v3 = vld [vmem:[%s9071_s10 + $0x50] sm:$0xff]  ;;  %v820_v4 = vld [vmem:[%s9071_s10 + $0x58] sm:$0xff] }
  0xfc   : > { %v824_v6 = vld [vmem:[%s9071_s10 + $0x78] sm:$0xff] }
  0xfd   : > { %v747_v7 = vsel %vm746_vm3, %v741_v5, 0.0 }
  0xfe   : > { %748 = vadd.xlane.f32.xlu0 %v747_v7  ;;  %v7329_v7 = vpack.c.bf16 %v820_v4, %v819_v3 }
 0x18b   : > { %v749_v8 = vpop.xlane.xlu0 %748 }
 0x18c   : > { %v751_v9 = vmul.f32 0.03125, %v749_v8 }
 0x18e   : > { %v752_v10 = vsub.f32 %v741_v5, %v751_v9  ;;  %v823_v5 = vld [vmem:[%s9071_s10 + $0x70] sm:$0xff]  ;;  %v829_v9 = vld [vmem:[%s9073_s12] sm:$0xff] }
 0x18f   : > { %v7335_v8 = vpack.c.bf16 %v824_v6, %v823_v5  ;;  %v6248_v5 = vld [vmem:[%s9074_s13] ss:$0 sm:$0xff]  ;;  %v6249_v6 = vld [vmem:[%s9074_s13 + $0x1] ss:$0 sm:$0xff] }
 0x190   : > { %v753_v11 = vmul.f32 %v752_v10, %v752_v10 }
 0x192   : > { %v754_v12 = vsel %vm746_vm3, %v753_v11, 0.0  ;;  %v833_v11 = vld [vmem:[%s9073_s12 + $0x20] sm:$0xff] }
 0x193   : > { %755 = vadd.xlane.f32.xlu0 %v754_v12  ;;  %v834_v12 = vld [vmem:[%s9073_s12 + $0x28] sm:$0xff] }
 0x194   : > { %v7344_v14 = vpack.c.bf16 %v834_v12, %v833_v11 }
 0x220   : > { %v756_v26 = vpop.xlane.xlu0 %755 }
 0x221   : > { %v757_v27 = vmul.f32 0.03125, %v756_v26  ;;  %v7350_v26 = vpack.c.bf16 %v838_v23, %v837_v22 }
 0x223   : > { %v758_v28 = vadd.f32 1e-05, %v757_v27  ;;  %v7356_v27 = vpack.c.bf16 %v842_v25, %v841_v24 }
 0x225   : > { %7571 = vrsqrt.f32 %v758_v28  ;;  %v839_v28 = vld [vmem:[%s9073_s12 + $0x50] sm:$0xff] }
 0x22f   : > { %v7572_v29 = vpop.eup %7571 }
 0x230   : > { %v760_v31 = vmul.f32 %v7572_v29, %v752_v10  ;;  %v830_v10 = vld [vmem:[%s9073_s12 + $0x8] sm:$0xff]  ;;  %v840_v29 = vld [vmem:[%s9073_s12 + $0x58] sm:$0xff] }
 0x231   : > { %v7338_v13 = vpack.c.bf16 %v830_v10, %v829_v9 }
 0x232   : > { %v767_v34 = vmul.f32 %v6230_v30, %v760_v31  ;;  %v843_v30 = vld [vmem:[%s9073_s12 + $0x70] sm:$0xff]  ;;  %v844_v31 = vld [vmem:[%s9073_s12 + $0x78] sm:$0xff] }
 0x233   : > { %v7359_v33 = vpack.c.bf16 %v844_v31, %v843_v30 }
 0x234   : > { %v774_v38 = vadd.f32 %v6231_v32, %v767_v34  ;;  %v7353_v32 = vpack.c.bf16 %v840_v29, %v839_v28  ;;  %v7702_v34 = vmov 0  }
 0x235   : > { %7569 = vset.pattern.permute.xlu1 %v7702_v34  ;;  %7570 = vset.pattern.permute.xlu0 %v7702_v34 }
 0x236   : > { %v7936_v42 = vmax.f32 %v774_v38, 0.0  ;;  %778 = vperm.xlu1 %7569, %v656_v35  }
 0x238   : > { %6749 = vmatmul.mubr.msk.f32.vlgmr.msra.gmra.mrb[0].mxu1 %vm746_vm3, %v7936_v42  ;;  %6760 = vmatmul.mubr.msk.f32.vlgmr.msra.gmra.mrb[2].mxu0 %vm746_vm3, %v7936_v42 }
 0x239   : > { %7303 = vmatpush3.bf16.msra.mxu1 %v7302_v39  ;;  %7309 = vmatpush3.bf16.msra.mxu0 %v7308_v40 }
 0x23a   : > { %7304 = vmatprep.subr.bf16.mxu1 %v7701_v18  ;;  %7310 = vmatprep.subr.bf16.mxu0 %v7701_v18 }
 0x23b   : > { %6770 = vmatprep.mubr.msk.f32.mxu1 %vm7700_vm1, %v7699_v1  ;;  %6781 = vmatprep.mubr.msk.f32.mxu0 %vm7700_vm1, %v7699_v1 }
 0x23d   : > { %7306 = vmatpush3.bf16.msra.mxu1 %v7305_v46  ;;  %7312 = vmatpush3.bf16.msra.mxu0 %v7311_v47  ;;  %v6232_v47 = vld [vmem:[%s9070_s9] ss:$0 sm:$0xff] }
 0x23e   : > { %7313 = vmatprep.subr.bf16.mxu1 %v7701_v18  ;;  %7319 = vmatprep.subr.bf16.mxu0 %v7701_v18 }
 0x240   : > { %6771 = vmatmul.mubr.msk.f32.vlgmr.msra.gmra.mrb[2].mxu1 %vm746_vm3, %v7936_v42  ;;  %6782 = vmatmul.mubr.msk.f32.vlgmr.msra.gmra.mrb[4].mxu0 %vm746_vm3, %v7936_v42 }
 0x241   : > { %7315 = vmatpush3.bf16.msra.mxu1 %v7314_v52  ;;  %7321 = vmatpush3.bf16.msra.mxu0 %v7320_v53  ;;  %v6233_v53 = vld [vmem:[%s9070_s9 + $0x1] ss:$0 sm:$0xff] }
 0x242   : > { %7316 = vmatprep.subr.bf16.mxu1 %v7701_v18  ;;  %7322 = vmatprep.subr.bf16.mxu0 %v7701_v18 }
 0x243   : > { %6792 = vmatprep.mubr.msk.f32.mxu1 %vm7700_vm1, %v7699_v1  ;;  %6803 = vmatprep.mubr.msk.f32.mxu0 %vm7700_vm1, %v7699_v1 }
 0x245   : > { %7318 = vmatpush3.bf16.msra.mxu1 %v7317_v58  ;;  %7324 = vmatpush3.bf16.msra.mxu0 %v7323_v59 }
 0x246   : > { %7325 = vmatprep.subr.bf16.mxu1 %v7701_v18  ;;  %7331 = vmatprep.subr.bf16.mxu0 %v7701_v18 }
 0x248   : > { %6793 = vmatmul.mubr.msk.f32.vlgmr.msra.gmra.mrb[4].mxu1 %vm746_vm3, %v7936_v42  ;;  %6804 = vmatmul.mubr.msk.f32.vlgmr.msra.gmra.mrb[6].mxu0 %vm746_vm3, %v7936_v42 }
 0x249   : > { %7327 = vmatpush3.bf16.msra.mxu1 %v7326_v0  ;;  %7333 = vmatpush3.bf16.msra.mxu0 %v7332_v2 }
 0x24a   : > { %7328 = vmatprep.subr.bf16.mxu1 %v7701_v18  ;;  %7334 = vmatprep.subr.bf16.mxu0 %v7701_v18 }
 0x24b   : > { %6814 = vmatprep.mubr.msk.f32.mxu1 %vm7700_vm1, %v7699_v1  ;;  %6825 = vmatprep.mubr.msk.f32.mxu0 %vm7700_vm1, %v7699_v1 }
 0x24d   : > { %7330 = vmatpush3.bf16.msra.mxu1 %v7329_v7  ;;  %7336 = vmatpush3.bf16.msra.mxu0 %v7335_v8 }
 0x24e   : > { %7337 = vmatprep.subr.bf16.mxu1 %v7701_v18  ;;  %7343 = vmatprep.subr.bf16.mxu0 %v7701_v18 }
 0x250   : > { %6815 = vmatmul.mubr.msk.f32.vlgmr.msra.gmra.mrb[6].mxu1 %vm746_vm3, %v7936_v42  ;;  %6826 = vmatmul.mubr.msk.f32.vlgmr.msra.gmra.mrb[8].mxu0 %vm746_vm3, %v7936_v42 }
 0x251   : > { %7339 = vmatpush3.bf16.msra.mxu1 %v7338_v13  ;;  %7345 = vmatpush3.bf16.msra.mxu0 %v7344_v14 }
 0x252   : > { %7340 = vmatprep.subr.bf16.mxu1 %v7701_v18  ;;  %7346 = vmatprep.subr.bf16.mxu0 %v7701_v18 }
 0x253   : > { %6836 = vmatprep.mubr.msk.f32.mxu1 %vm7700_vm1, %v7699_v1  ;;  %6847 = vmatprep.mubr.msk.f32.mxu0 %vm7700_vm1, %v7699_v1 }
 0x255   : > { %7342 = vmatpush3.bf16.msra.mxu1 %v7341_v20  ;;  %7348 = vmatpush3.bf16.msra.mxu0 %v7347_v21 }
 0x256   : > { %7349 = vmatprep.subr.bf16.mxu1 %v7701_v18  ;;  %7355 = vmatprep.subr.bf16.mxu0 %v7701_v18 }
 0x258   : > { %6837 = vmatmul.mubr.msk.f32.vlgmr.msra.gmra.mrb[8].mxu1 %vm746_vm3, %v7936_v42  ;;  %6848 = vmatmul.mubr.msk.f32.vlgmr.msra.gmra.mrb[10].mxu0 %vm746_vm3, %v7936_v42 }
 0x259   : > { %7351 = vmatpush3.bf16.msra.mxu1 %v7350_v26  ;;  %7357 = vmatpush3.bf16.msra.mxu0 %v7356_v27 }
 0x25a   : > { %7352 = vmatprep.subr.bf16.mxu1 %v7701_v18  ;;  %7358 = vmatprep.subr.bf16.mxu0 %v7701_v18 }
 0x25b   : > { %6858 = vmatprep.mubr.msk.f32.mxu1 %vm7700_vm1, %v7699_v1  ;;  %6869 = vmatprep.mubr.msk.f32.mxu0 %vm7700_vm1, %v7699_v1 }
 0x25d   : > { %7354 = vmatpush3.bf16.msra.mxu1 %v7353_v32  ;;  %7360 = vmatpush3.bf16.msra.mxu0 %v7359_v33 }
 0x25e   : > { %6872 = vmatprep.subr.mxu0 %v7699_v1  ;;  %6882 = vmatprep.subr.mxu1 %v7699_v1 }
 0x260   : > { %6859 = vmatmul.mubr.msk.f32.vlgmr.msra.gmra.mrb[10].mxu1 %vm746_vm3, %v7936_v42  ;;  %6870 = vmatmul.mubr.msk.f32.vlgmr.msra.gmra.mrb[12].mxu0 %vm746_vm3, %v7936_v42 }
 0x261   : > { %6874 = vmatprep.mubr.msk.f32.mxu0 %vm7700_vm1, %v7699_v1  ;;  %6884 = vmatprep.mubr.msk.f32.mxu1 %vm7700_vm1, %v7699_v1 }
 0x2b5   : > { %v779_v19 = vpop.permute.xlu1 %778 }
 0x2b6   : > { %v8191_v20 = vmul.f32 %v7634_v17, %v779_v19 }
 0x2b8   : > { %vm788_vm5 = vcmp.gt.f32.partialorder %v8191_v20, 0.5 }
 0x30b   : > { %v951_v36 = vpop.f32.mrb[0].mxu1  ;;  %v1021_v37 = vpop.f32.mrb[2].mxu0 }
 0x30c   : > { %v6750_v38 = vpop.f32.mrb[1].mxu1  ;;  %v6761_v39 = vpop.f32.mrb[3].mxu0  ;;  %v8126_v52 = vadd.f32 %v6232_v47, %v951_v36  ;;  %v8143_v57 = vadd.f32 %v6233_v53, %v1021_v37 }
 0x313   : > { %v1091_v40 = vpop.f32.mrb[2].mxu1  ;;  %v1161_v41 = vpop.f32.mrb[4].mxu0 }
 0x314   : > { %v6772_v42 = vpop.f32.mrb[3].mxu1  ;;  %v6783_v43 = vpop.f32.mrb[5].mxu0  ;;  %v8156_v3 = vadd.f32 %v6234_v60, %v1091_v40  ;;  %v8158_v4 = vadd.f32 %v6235_v61, %v1161_v41 }
 0x31b   : > { %v1255_v45 = vpop.f32.mrb[4].mxu1  ;;  %v1325_v46 = vpop.f32.mrb[6].mxu0 }
 0x31c   : > { %v1256_v48 = vadd.f32 %v6240_v44, %v1255_v45  ;;  %v6794_v49 = vpop.f32.mrb[5].mxu1  ;;  %v6805_v50 = vpop.f32.mrb[7].mxu0  ;;  %v1326_v54 = vadd.f32 %v6241_v51, %v1325_v46 }
 0x31e   : > { %6873 = vmatpush3.xpose.msk.msra.mxu0 %vm1773_vm4, %v1256_v48 }
 0x31f   : > { %6877 = vmatprep.subr.mxu0 %v7699_v1 }
 0x321   : > { %6875 = vmatmul.mubr.msk.f32.vlgmr.msra.gmra.mrb[14].mxu0 %vm1773_vm4, %v8126_v52 }
 0x322   : > { %6878 = vmatpush3.xpose.msk.msra.mxu0 %vm1773_vm4, %v1326_v54  ;;  %6879 = vmatprep.mubr.msk.f32.mxu0 %vm7700_vm1, %v7699_v1 }
 0x323   : > { %v1395_v58 = vpop.f32.mrb[6].mxu1  ;;  %v1465_v59 = vpop.f32.mrb[8].mxu0  ;;  %6887 = vmatprep.subr.mxu0 %v7699_v1 }
 0x324   : > { %v1396_v62 = vadd.f32 %v6242_v55, %v1395_v58  ;;  %v1466_v63 = vadd.f32 %v6243_v56, %v1465_v59  ;;  %v6816_v0 = vpop.f32.mrb[7].mxu1  ;;  %v6827_v2 = vpop.f32.mrb[9].mxu0 }
 0x325   : > { %6880 = vmatmul.mubr.msk.f32.vlgmr.msra.gmra.mrb[16].mxu0 %vm1773_vm4, %v8143_v57 }
 0x326   : > { %6883 = vmatpush3.xpose.msk.msra.mxu1 %vm1773_vm4, %v1396_v62  ;;  %6888 = vmatpush3.xpose.msk.msra.mxu0 %vm1773_vm4, %v1466_v63 }
 0x327   : > { %6889 = vmatprep.mubr.msk.f32.mxu0 %vm7700_vm1, %v7699_v1  ;;  %6892 = vmatprep.subr.mxu1 %v7699_v1 }
 0x328   : > { %6897 = vmatprep.subr.mxu0 %v7699_v1 }
 0x329   : > { %6885 = vmatmul.mubr.msk.f32.vlgmr.msra.gmra.mrb[12].mxu1 %vm1773_vm4, %v8156_v3  ;;  %6890 = vmatmul.mubr.msk.f32.vlgmr.msra.gmra.mrb[18].mxu0 %vm1773_vm4, %v8158_v4 }
 0x32a   : > { %6894 = vmatprep.mubr.msk.f32.mxu1 %vm7700_vm1, %v7699_v1  ;;  %6899 = vmatprep.mubr.msk.f32.mxu0 %vm7700_vm1, %v7699_v1 }
 0x32b   : > { %v1559_v7 = vpop.f32.mrb[8].mxu1  ;;  %v1629_v8 = vpop.f32.mrb[10].mxu0 }
 0x32c   : > { %v1560_v9 = vadd.f32 %v6248_v5, %v1559_v7  ;;  %v1630_v10 = vadd.f32 %v6249_v6, %v1629_v8  ;;  %v6838_v11 = vpop.f32.mrb[9].mxu1  ;;  %v6849_v12 = vpop.f32.mrb[11].mxu0  ;;  %v6250_v5 = vld [vmem:[%s9074_s13 + $0x2] ss:$0 sm:$0xff] }
 0x32e   : > { %6893 = vmatpush3.msra.mxu1 %v1560_v9  ;;  %6898 = vmatpush3.msra.mxu0 %v1630_v10  ;;  %v6251_v10 = vld [vmem:[%s9074_s13 + $0x3] ss:$0 sm:$0xff] }
 0x32f   : > { %6902 = vmatprep.subr.mxu1 %v7699_v1  ;;  %6907 = vmatprep.subr.mxu0 %v7699_v1 }
 0x333   : > { %v8180_v13 = vpop.f32.mrb[10].mxu1  ;;  %v8182_v14 = vpop.f32.mrb[12].mxu0 }
 0x334   : > { %v6860_v15 = vpop.f32.mrb[11].mxu1  ;;  %v6871_v16 = vpop.f32.mrb[13].mxu0  ;;  %v1700_v9 = vadd.f32 %v6250_v5, %v8180_v13 }
 0x335   : > { %v1770_v15 = vadd.f32 %v6251_v10, %v8182_v14  ;;  %v6278_v10 = vld [vmem:[%s9069_s8 + $0xa0] sm:$0xff] }
 0x3f4   : > { %v1846_v21 = vpop.f32.mrb[14].mxu0 }
 0x3f5   : > { %v2078_v22 = vmul.f32 0.35355338, %v1846_v21  ;;  %v6876_v23 = vpop.f32.mrb[15].mxu0 }
 0x3f7   : > { %v2084_v24 = vsel %vm788_vm5, %v2078_v22, -3.4028235e+38 }
 0x3f8   : > { %v1922_v25 = vpop.f32.mrb[16].mxu0  ;;  %v2088_v26 = vsel %vm1773_vm4, %v2084_v24, -inf }
 0x3f9   : > { %v2079_v27 = vmul.f32 0.35355338, %v1922_v25  ;;  %2089 = vmax.xlane.f32.xlu1 %v2088_v26  ;;  %v6881_v28 = vpop.f32.mrb[17].mxu0 }
 0x3fb   : > { %v2085_v29 = vsel %vm788_vm5, %v2079_v27, -3.4028235e+38 }
 0x3fc   : > { %v1998_v30 = vpop.f32.mrb[12].mxu1  ;;  %v2074_v31 = vpop.f32.mrb[18].mxu0  ;;  %v2091_v32 = vsel %vm1773_vm4, %v2085_v29, -inf }
 0x3fd   : > { %v2080_v33 = vmul.f32 0.35355338, %v1998_v30  ;;  %v2081_v34 = vmul.f32 0.35355338, %v2074_v31  ;;  %v6886_v35 = vpop.f32.mrb[13].mxu1  ;;  %2092 = vmax.xlane.f32.xlu0 %v2091_v32  ;;  %v6891_v36 = vpop.f32.mrb[19].mxu0 }
 0x3ff   : > { %v2086_v37 = vsel %vm788_vm5, %v2080_v33, -3.4028235e+38  ;;  %v2087_v39 = vsel %vm788_vm5, %v2081_v34, -3.4028235e+38 }
 0x400   : > { %v2094_v38 = vsel %vm1773_vm4, %v2086_v37, -inf  ;;  %v2097_v40 = vsel %vm1773_vm4, %v2087_v39, -inf }
 0x401   : > { %2095 = vmax.xlane.f32.xlu0 %v2094_v38 }
 0x405   : > { %2098 = vmax.xlane.f32.xlu0 %v2097_v40 }
 0x486   : > { %v2090_v41 = vpop.xlane.xlu1 %2089 }
 0x487   : > { %v2100_v42 = vsub.f32 %v2084_v24, %v2090_v41  ;;  %v850_v41 = vld [vmem:[%s9075_s14 + $0x8] sm:$0xff] }
 0x489   : > { %v2104_v43 = vmul.f32 1.442695, %v2100_v42 }
 0x48a   : > { %v2093_v44 = vpop.xlane.xlu0 %2092 }
 0x48b   : > { %7573 = vpow2.f32 %v2104_v43  ;;  %v2101_v45 = vsub.f32 %v2085_v29, %v2093_v44  ;;  %v851_v43 = vld [vmem:[%s9075_s14 + $0x10] sm:$0xff]  ;;  %v852_v44 = vld [vmem:[%s9075_s14 + $0x18] sm:$0xff] }
 0x48d   : > { %v2106_v46 = vmul.f32 1.442695, %v2101_v45  ;;  %v7365_v45 = vpack.c.bf16 %v852_v44, %v851_v43 }
 0x48e   : > { %v2096_v47 = vpop.xlane.xlu0 %2095 }
 0x48f   : > { %7575 = vpow2.f32 %v2106_v46  ;;  %v2102_v48 = vsub.f32 %v2086_v37, %v2096_v47 }
 0x491   : > { %v2108_v49 = vmul.f32 1.442695, %v2102_v48 }
 0x492   : > { %v2099_v50 = vpop.xlane.xlu0 %2098 }
 0x493   : > { %7577 = vpow2.f32 %v2108_v49  ;;  %v2103_v51 = vsub.f32 %v2087_v39, %v2099_v50  ;;  %v6268_v50 = vld [vmem:[%s9077_s16] ss:$0 sm:$0xff] }
 0x495   : > { %v7574_v53 = vpop.eup %7573  ;;  %v2110_v54 = vmul.f32 1.442695, %v2103_v51 }
 0x496   : > { %v2112_v55 = vsel %vm1773_vm4, %v7574_v53, 0.0 }
 0x497   : > { %7579 = vpow2.f32 %v2110_v54  ;;  %2113 = vadd.xlane.f32.xlu0 %v2112_v55 }
 0x499   : > { %v7576_v56 = vpop.eup %7575 }
 0x49a   : > { %v2115_v58 = vsel %vm1773_vm4, %v7576_v56, 0.0 }
 0x49b   : > { %2116 = vadd.xlane.f32.xlu0 %v2115_v58 }
 0x49d   : > { %v7578_v59 = vpop.eup %7577 }
 0x49e   : > { %v2118_v60 = vsel %vm1773_vm4, %v7578_v59, 0.0 }
 0x49f   : > { %2119 = vadd.xlane.f32.xlu0 %v2118_v60 }
 0x4a1   : > { %v7580_v61 = vpop.eup %7579 }
 0x4a2   : > { %v2121_v62 = vsel %vm1773_vm4, %v7580_v61, 0.0 }
 0x4a3   : > { %2122 = vadd.xlane.f32.xlu0 %v2121_v62 }
 0x524   : > { %v2114_v63 = vpop.xlane.xlu0 %2113 }
 0x525   : > { %7581 = vrcp.f32 %v2114_v63 }
 0x528   : > { %v2117_v0 = vpop.xlane.xlu0 %2116 }
 0x529   : > { %7583 = vrcp.f32 %v2117_v0 }
 0x52c   : > { %v2120_v2 = vpop.xlane.xlu0 %2119 }
 0x52d   : > { %7585 = vrcp.f32 %v2120_v2 }
 0x52f   : > { %v7582_v6 = vpop.eup %7581 }
 0x530   : > { %v2128_v7 = vmul.f32 %v7582_v6, %v7574_v53  ;;  %v2123_v8 = vpop.xlane.xlu0 %2122  ;;  %v6269_v53 = vld [vmem:[%s9078_s17] ss:$0 sm:$0xff] }
 0x531   : > { %7587 = vrcp.f32 %v2123_v8  ;;  %v6274_v8 = vld [vmem:[%s9069_s8 + $0x80] sm:$0xff] }
 0x532   : > { %6895 = vmatmul.mubr.msk.f32.vlgmr.msra.gmra.mrb[14].mxu1 %vm1773_vm4, %v2128_v7 }
 0x533   : > { %v7584_v11 = vpop.eup %7583  ;;  %6903 = vmatpush3.msra.mxu1 %v1700_v9  ;;  %6904 = vmatprep.mubr.msk.f32.mxu1 %vm7700_vm1, %v7699_v1  ;;  %v6275_v9 = vld [vmem:[%s9069_s8 + $0x88] sm:$0xff] }
 0x534   : > { %v2129_v12 = vmul.f32 %v7584_v11, %v7576_v56  ;;  %7361 = vmatprep.subr.bf16.mxu1 %v7701_v18  ;;  %v6270_v56 = vld [vmem:[%s9076_s15] ss:$0 sm:$0xff]  ;;  %v7368_v11 = vpack.c.bf16 %v6275_v9, %v6274_v8 }
 0x536   : > { %6900 = vmatmul.mubr.msk.f32.vlgmr.msra.gmra.mrb[20].mxu0 %vm1773_vm4, %v2129_v12  ;;  %v6279_v12 = vld [vmem:[%s9069_s8 + $0xa8] sm:$0xff] }
 0x537   : > { %v7586_v13 = vpop.eup %7585  ;;  %6908 = vmatpush3.msra.mxu0 %v1770_v15  ;;  %6909 = vmatprep.mubr.msk.f32.mxu0 %vm7700_vm1, %v7699_v1  ;;  %v7374_v15 = vpack.c.bf16 %v6279_v12, %v6278_v10  ;;  %v6316_v10 = vld [vmem:[%s9073_s12 + $0x90] sm:$0xff] }
 0x538   : > { %v2130_v16 = vmul.f32 %v7586_v13, %v7578_v59  ;;  %7367 = vmatprep.subr.bf16.mxu0 %v7701_v18  ;;  %v6276_v13 = vld [vmem:[%s9069_s8 + $0x90] sm:$0xff] }
 0x539   : > { %v6320_v12 = vld [vmem:[%s9073_s12 + $0xb0] sm:$0xff] }
 0x53a   : > { %6905 = vmatmul.mubr.msk.f32.vlgmr.msra.gmra.mrb[16].mxu1 %vm1773_vm4, %v2130_v16  ;;  %v6277_v16 = vld [vmem:[%s9069_s8 + $0x98] sm:$0xff] }
 0x53b   : > { %v7588_v17 = vpop.eup %7587  ;;  %6920 = vmatprep.mubr.msk.f32.mxu1 %vm7700_vm1, %v7699_v1 }
 0x53c   : > { %v2131_v19 = vmul.f32 %v7588_v17, %v7580_v61  ;;  %v6280_v17 = vld [vmem:[%s9069_s8 + $0xb0] sm:$0xff] }
 0x53e   : > { %6910 = vmatmul.mubr.msk.f32.vlgmr.msra.gmra.mrb[22].mxu0 %vm1773_vm4, %v2131_v19  ;;  %v7371_v19 = vpack.c.bf16 %v6277_v16, %v6276_v13 }
 0x53f   : > { %6931 = vmatprep.mubr.msk.f32.mxu0 %vm7700_vm1, %v7699_v1  ;;  %7369 = vmatpush3.bf16.msra.mxu0 %v7368_v11  ;;  %v6317_v11 = vld [vmem:[%s9073_s12 + $0x98] sm:$0xff] }
 0x540   : > { %7370 = vmatprep.subr.bf16.mxu0 %v7701_v18  ;;  %v7419_v13 = vpack.c.bf16 %v6317_v11, %v6316_v10 }
 0x543   : > { %7372 = vmatpush3.bf16.msra.mxu0 %v7371_v19  ;;  %v6323_v19 = vld [vmem:[%s9073_s12 + $0xc8] sm:$0xff] }
 0x544   : > { %7379 = vmatprep.subr.bf16.mxu0 %v7701_v18 }
 0x605   : > { %v2201_v14 = vpop.f32.mrb[14].mxu1 }
 0x606   : > { %v6896_v21 = vpop.f32.mrb[15].mxu1  ;;  %v2424_v32 = vadd.f32 %v2201_v14, %v8126_v52  ;;  %v849_v52 = vld [vmem:[%s9075_s14] sm:$0xff]  ;;  %v6281_v14 = vld [vmem:[%s9069_s8 + $0xb8] sm:$0xff] }
 0x607   : > { %v7362_v42 = vpack.c.bf16 %v850_v41, %v849_v52  ;;  %v7377_v21 = vpack.c.bf16 %v6281_v14, %v6280_v17  ;;  %v6295_v52 = vld [vmem:[%s9071_s10 + $0x88] sm:$0xff]  ;;  %v6298_v41 = vld [vmem:[%s9071_s10 + $0xa0] sm:$0xff] }
 0x608   : > { %v6322_v17 = vld [vmem:[%s9073_s12 + $0xc0] sm:$0xff] }
 0x609   : > { %v2274_v22 = vpop.f32.mrb[20].mxu0  ;;  %7363 = vmatpush3.bf16.msra.mxu1 %v7362_v42  ;;  %v6299_v42 = vld [vmem:[%s9071_s10 + $0xa8] sm:$0xff]  ;;  %v6326_v14 = vld [vmem:[%s9073_s12 + $0xe0] sm:$0xff] }
 0x60a   : > { %v2425_v23 = vadd.f32 %v2274_v22, %v8143_v57  ;;  %v6901_v24 = vpop.f32.mrb[21].mxu0  ;;  %7364 = vmatprep.subr.bf16.mxu1 %v7701_v18  ;;  %v7398_v44 = vpack.c.bf16 %v6299_v42, %v6298_v41  ;;  %v6352_v41 = vld [vmem:[%s9072_s11 + $0x5] ss:$0 sm:$0xff] }
 0x60c   : > { %2429 = vrot.lane.b32.xlu0 %v2425_v23, %s9091_s0  ;;  %s9122_s0 = sld [smem:[#allocation14_spill]] }
 0x60d   : > { %v2347_v25 = vpop.f32.mrb[16].mxu1  ;;  %7366 = vmatpush3.bf16.msra.mxu1 %v7365_v45  ;;  %v6296_v45 = vld [vmem:[%s9071_s10 + $0x90] sm:$0xff] }
 0x60e   : > { %v2426_v26 = vadd.f32 %v2347_v25, %v8156_v3  ;;  %v6906_v27 = vpop.f32.mrb[17].mxu1  ;;  %7373 = vmatprep.subr.bf16.mxu1 %v7701_v18 }
 0x60f   : > { %v6282_v27 = vld [vmem:[%s9069_s8 + $0xc0] sm:$0xff] }
 0x610   : > { %2433 = vrot.lane.b32.xlu1 %v2426_v26, %s9089_s3  ;;  %v6272_v26 = vld [vmem:[%s9079_s18] ss:$0 sm:$0xff] }
 0x611   : > { %v2420_v28 = vpop.f32.mrb[22].mxu0 }
 0x612   : > { %v2427_v29 = vadd.f32 %v2420_v28, %v8158_v4  ;;  %v6911_v30 = vpop.f32.mrb[23].mxu0 }
 0x613   : > { %v6286_v30 = vld [vmem:[%s9069_s8 + $0xe0] sm:$0xff] }
 0x614   : > { %2437 = vrot.lane.b32.xlu1 %v2427_v29, %s9087_s29  ;;  %v6283_v29 = vld [vmem:[%s9069_s8 + $0xc8] sm:$0xff]  ;;  %s9119_s29 = smov 8  }
 0x67e   : > { %v2430_v31 = vpop.permute.xlu0 %2429 }
 0x67f   : > { %v2440_v33 = vsel %vm1773_vm4, %v2424_v32, %v2430_v31  ;;  %v6287_v31 = vld [vmem:[%s9069_s8 + $0xe8] sm:$0xff] }
 0x682   : > { %v2434_v57 = vpop.permute.xlu1 %2433 }
 0x683   : > { %v2442_v3 = vsel %vm2441_vm6, %v2440_v33, %v2434_v57  ;;  %v6273_v57 = vld [vmem:[%s9080_s19] ss:$0 sm:$0xff]  ;;  %v7380_v33 = vpack.c.bf16 %v6283_v29, %v6282_v27  ;;  %v6329_v27 = vld [vmem:[%s9073_s12 + $0xf8] sm:$0xff] }
 0x686   : > { %v2438_v34 = vpop.permute.xlu1 %2437 }
 0x687   : > { %v2444_v35 = vsel %vm2443_vm7, %v2442_v3, %v2438_v34  ;;  %v7386_v3 = vpack.c.bf16 %v6287_v31, %v6286_v30  ;;  %v6284_v34 = vld [vmem:[%s9069_s8 + $0xd0] sm:$0xff] }
 0x688   : > { %v2445_v36 = vsel %vm746_vm3, %v2444_v35, 0.0 }
 0x689   : > { %2446 = vadd.xlane.f32.xlu0 %v2445_v36  ;;  %v6285_v36 = vld [vmem:[%s9069_s8 + $0xd8] sm:$0xff] }
 0x716   : > { %v2447_v4 = vpop.xlane.xlu0 %2446 }
 0x717   : > { %v2448_v37 = vmul.f32 0.03125, %v2447_v4  ;;  %v6288_v4 = vld [vmem:[%s9069_s8 + $0xf0] sm:$0xff] }
 0x719   : > { %v2449_v38 = vsub.f32 %v2444_v35, %v2448_v37  ;;  %v6289_v37 = vld [vmem:[%s9069_s8 + $0xf8] sm:$0xff] }
 0x71b   : > { %v2450_v39 = vmul.f32 %v2449_v38, %v2449_v38 }
 0x71d   : > { %v2451_v40 = vsel %vm746_vm3, %v2450_v39, 0.0  ;;  %v7389_v39 = vpack.c.bf16 %v6289_v37, %v6288_v4  ;;  %v6351_v4 = vld [vmem:[%s9072_s11 + $0x4] ss:$0 sm:$0xff] }
 0x71e   : > { %2452 = vadd.xlane.f32.xlu1 %v2451_v40  ;;  %v6294_v40 = vld [vmem:[%s9071_s10 + $0x80] sm:$0xff] }
 0x71f   : > { %v7392_v43 = vpack.c.bf16 %v6295_v52, %v6294_v40 }
 0x7ab   : > { %v2453_v46 = vpop.xlane.xlu1 %2452 }
 0x7ac   : > { %v2454_v47 = vmul.f32 0.03125, %v2453_v46  ;;  %v6297_v46 = vld [vmem:[%s9071_s10 + $0x98] sm:$0xff] }
 0x7ae   : > { %v2455_v48 = vadd.f32 1e-05, %v2454_v47  ;;  %v6300_v47 = vld [vmem:[%s9071_s10 + $0xb0] sm:$0xff] }
 0x7b0   : > { %7589 = vrsqrt.f32 %v2455_v48  ;;  %v6301_v48 = vld [vmem:[%s9071_s10 + $0xb8] sm:$0xff] }
 0x7ba   : > { %v7590_v49 = vpop.eup %7589 }
 0x7bb   : > { %v2457_v51 = vmul.f32 %v7590_v49, %v2449_v38  ;;  %v7383_v38 = vpack.c.bf16 %v6285_v36, %v6284_v34  ;;  %v7395_v49 = vpack.c.bf16 %v6297_v46, %v6296_v45  ;;  %v6353_v45 = vld [vmem:[%s9072_s11 + $0x6] ss:$0 sm:$0xff]  ;;  %v6354_v46 = vld [vmem:[%s9072_s11 + $0x7] ss:$0 sm:$0xff] }
 0x7bd   : > { %v2464_v54 = vmul.f32 %v6268_v50, %v2457_v51  ;;  %v7401_v50 = vpack.c.bf16 %v6301_v48, %v6300_v47  ;;  %v6302_v51 = vld [vmem:[%s9071_s10 + $0xc0] sm:$0xff] }
 0x7bf   : > { %v2471_v55 = vadd.f32 %v6269_v53, %v2464_v54  ;;  %v6303_v53 = vld [vmem:[%s9071_s10 + $0xc8] sm:$0xff]  ;;  %v6306_v54 = vld [vmem:[%s9071_s10 + $0xe0] sm:$0xff] }
 0x7c1   : > { %6921 = vmatmul.mubr.msk.f32.vlgmr.msra.gmra.mrb[18].mxu1 %vm746_vm3, %v2471_v55 }
 0x7c2   : > { %6942 = vmatprep.mubr.msk.f32.mxu1 %vm7700_vm1, %v7699_v1  ;;  %7375 = vmatpush3.bf16.msra.mxu1 %v7374_v15  ;;  %v6321_v15 = vld [vmem:[%s9073_s12 + $0xb8] sm:$0xff] }
 0x7c3   : > { %7376 = vmatprep.subr.bf16.mxu1 %v7701_v18  ;;  %v7425_v16 = vpack.c.bf16 %v6321_v15, %v6320_v12 }
 0x7c6   : > { %7378 = vmatpush3.bf16.msra.mxu1 %v7377_v21  ;;  %v6327_v21 = vld [vmem:[%s9073_s12 + $0xe8] sm:$0xff] }
 0x7c7   : > { %7385 = vmatprep.subr.bf16.mxu1 %v7701_v18 }
 0x894   : > { %v2547_v58 = vpop.f32.mrb[18].mxu1 }
 0x895   : > { %v2548_v59 = vadd.f32 %v6270_v56, %v2547_v58  ;;  %v6922_v60 = vpop.f32.mrb[19].mxu1  ;;  %v7404_v56 = vpack.c.bf16 %v6303_v53, %v6302_v51  ;;  %v6346_v51 = vld [vmem:[%s9070_s9 + $0x7] ss:$0 sm:$0xff] }
 0x896   : > { %v6305_v60 = vld [vmem:[%s9071_s10 + $0xd8] sm:$0xff] }
 0x897   : > { %v2551_v61 = vmax.f32 %v2548_v59, 0.0  ;;  %v6304_v59 = vld [vmem:[%s9071_s10 + $0xd0] sm:$0xff] }
 0x899   : > { %v2552_v62 = vadd.f32 %v2551_v61, %v2471_v55  ;;  %v6307_v55 = vld [vmem:[%s9071_s10 + $0xe8] sm:$0xff]  ;;  %v6308_v61 = vld [vmem:[%s9071_s10 + $0xf0] sm:$0xff] }
 0x89a   : > { %v7410_v58 = vpack.c.bf16 %v6307_v55, %v6306_v54 }
 0x89b   : > { %v2553_v63 = vsel %vm746_vm3, %v2552_v62, 0.0 }
 0x89c   : > { %2554 = vadd.xlane.f32.xlu0 %v2553_v63  ;;  %v7407_v63 = vpack.c.bf16 %v6305_v60, %v6304_v59  ;;  %v6359_v60 = vld [vmem:[%s9074_s13 + $0x4] ss:$0 sm:$0xff] }
 0x929   : > { %v2555_v0 = vpop.xlane.xlu0 %2554 }
 0x92a   : > { %v2556_v2 = vmul.f32 0.03125, %v2555_v0 }
 0x92c   : > { %v2557_v5 = vsub.f32 %v2552_v62, %v2556_v2  ;;  %v6309_v62 = vld [vmem:[%s9071_s10 + $0xf8] sm:$0xff]  ;;  %v6314_v2 = vld [vmem:[%s9073_s12 + $0x80] sm:$0xff] }
 0x92d   : > { %v7413_v0 = vpack.c.bf16 %v6309_v62, %v6308_v61  ;;  %v6360_v61 = vld [vmem:[%s9074_s13 + $0x5] ss:$0 sm:$0xff] }
 0x92e   : > { %v2558_v6 = vmul.f32 %v2557_v5, %v2557_v5 }
 0x930   : > { %v2559_v7 = vsel %vm746_vm3, %v2558_v6, 0.0  ;;  %v6318_v6 = vld [vmem:[%s9073_s12 + $0xa0] sm:$0xff] }
 0x931   : > { %2560 = vadd.xlane.f32.xlu0 %v2559_v7  ;;  %v6319_v7 = vld [vmem:[%s9073_s12 + $0xa8] sm:$0xff] }
 0x932   : > { %v7422_v9 = vpack.c.bf16 %v6319_v7, %v6318_v6 }
 0x9be   : > { %v2561_v22 = vpop.xlane.xlu0 %2560 }
 0x9bf   : > { %v2562_v23 = vmul.f32 0.03125, %v2561_v22  ;;  %v7428_v22 = vpack.c.bf16 %v6323_v19, %v6322_v17 }
 0x9c1   : > { %v2563_v24 = vadd.f32 1e-05, %v2562_v23  ;;  %v7434_v23 = vpack.c.bf16 %v6327_v21, %v6326_v14 }
 0x9c3   : > { %7591 = vrsqrt.f32 %v2563_v24  ;;  %v6324_v24 = vld [vmem:[%s9073_s12 + $0xd0] sm:$0xff] }
 0x9cd   : > { %v7592_v25 = vpop.eup %7591 }
 0x9ce   : > { %v2565_v28 = vmul.f32 %v7592_v25, %v2557_v5  ;;  %v6315_v5 = vld [vmem:[%s9073_s12 + $0x88] sm:$0xff]  ;;  %v6325_v25 = vld [vmem:[%s9073_s12 + $0xd8] sm:$0xff] }
 0x9cf   : > { %v7416_v8 = vpack.c.bf16 %v6315_v5, %v6314_v2 }
 0x9d0   : > { %v2572_v32 = vmul.f32 %v6272_v26, %v2565_v28  ;;  %v6328_v26 = vld [vmem:[%s9073_s12 + $0xf0] sm:$0xff]  ;;  %v7431_v28 = vpack.c.bf16 %v6325_v25, %v6324_v24 }
 0x9d1   : > { %v7437_v29 = vpack.c.bf16 %v6329_v27, %v6328_v26 }
 0x9d2   : > { %v8321_v35 = vadd.f32 %v6273_v57, %v2572_v32 }
 0x9d4   : > { %6932 = vmatmul.mubr.msk.f32.vlgmr.msra.gmra.mrb[24].mxu0 %vm746_vm3, %v8321_v35  ;;  %6943 = vmatmul.mubr.msk.f32.vlgmr.msra.gmra.mrb[20].mxu1 %vm746_vm3, %v8321_v35 }
 0x9d5   : > { %7381 = vmatpush3.bf16.msra.mxu0 %v7380_v33  ;;  %7387 = vmatpush3.bf16.msra.mxu1 %v7386_v3 }
 0x9d6   : > { %7382 = vmatprep.subr.bf16.mxu0 %v7701_v18  ;;  %7388 = vmatprep.subr.bf16.mxu1 %v7701_v18 }
 0x9d7   : > { %6953 = vmatprep.mubr.msk.f32.mxu0 %vm7700_vm1, %v7699_v1  ;;  %6964 = vmatprep.mubr.msk.f32.mxu1 %vm7700_vm1, %v7699_v1 }
 0x9d9   : > { %7384 = vmatpush3.bf16.msra.mxu0 %v7383_v38  ;;  %7390 = vmatpush3.bf16.msra.mxu1 %v7389_v39  ;;  %v6343_v38 = vld [vmem:[%s9070_s9 + $0x4] ss:$0 sm:$0xff] }
 0x9da   : > { %7391 = vmatprep.subr.bf16.mxu0 %v7701_v18  ;;  %7397 = vmatprep.subr.bf16.mxu1 %v7701_v18 }
 0x9dc   : > { %6954 = vmatmul.mubr.msk.f32.vlgmr.msra.gmra.mrb[26].mxu0 %vm746_vm3, %v8321_v35  ;;  %6965 = vmatmul.mubr.msk.f32.vlgmr.msra.gmra.mrb[22].mxu1 %vm746_vm3, %v8321_v35 }
 0x9dd   : > { %7393 = vmatpush3.bf16.msra.mxu0 %v7392_v43  ;;  %7399 = vmatpush3.bf16.msra.mxu1 %v7398_v44  ;;  %v6344_v43 = vld [vmem:[%s9070_s9 + $0x5] ss:$0 sm:$0xff] }
 0x9de   : > { %7394 = vmatprep.subr.bf16.mxu0 %v7701_v18  ;;  %7400 = vmatprep.subr.bf16.mxu1 %v7701_v18 }
 0x9df   : > { %6975 = vmatprep.mubr.msk.f32.mxu0 %vm7700_vm1, %v7699_v1  ;;  %6986 = vmatprep.mubr.msk.f32.mxu1 %vm7700_vm1, %v7699_v1 }
 0x9e1   : > { %7396 = vmatpush3.bf16.msra.mxu0 %v7395_v49  ;;  %7402 = vmatpush3.bf16.msra.mxu1 %v7401_v50  ;;  %v6345_v50 = vld [vmem:[%s9070_s9 + $0x6] ss:$0 sm:$0xff] }
 0x9e2   : > { %7403 = vmatprep.subr.bf16.mxu0 %v7701_v18  ;;  %7409 = vmatprep.subr.bf16.mxu1 %v7701_v18 }
 0x9e4   : > { %6976 = vmatmul.mubr.msk.f32.vlgmr.msra.gmra.mrb[28].mxu0 %vm746_vm3, %v8321_v35  ;;  %6987 = vmatmul.mubr.msk.f32.vlgmr.msra.gmra.mrb[24].mxu1 %vm746_vm3, %v8321_v35 }
 0x9e5   : > { %7405 = vmatpush3.bf16.msra.mxu0 %v7404_v56  ;;  %7411 = vmatpush3.bf16.msra.mxu1 %v7410_v58 }
 0x9e6   : > { %7406 = vmatprep.subr.bf16.mxu0 %v7701_v18  ;;  %7412 = vmatprep.subr.bf16.mxu1 %v7701_v18 }
 0x9e7   : > { %6997 = vmatprep.mubr.msk.f32.mxu0 %vm7700_vm1, %v7699_v1  ;;  %7008 = vmatprep.mubr.msk.f32.mxu1 %vm7700_vm1, %v7699_v1 }
 0x9e9   : > { %7408 = vmatpush3.bf16.msra.mxu0 %v7407_v63  ;;  %7414 = vmatpush3.bf16.msra.mxu1 %v7413_v0 }
 0x9ea   : > { %7415 = vmatprep.subr.bf16.mxu0 %v7701_v18  ;;  %7421 = vmatprep.subr.bf16.mxu1 %v7701_v18 }
 0x9ec   : > { %6998 = vmatmul.mubr.msk.f32.vlgmr.msra.gmra.mrb[30].mxu0 %vm746_vm3, %v8321_v35  ;;  %7009 = vmatmul.mubr.msk.f32.vlgmr.msra.gmra.mrb[26].mxu1 %vm746_vm3, %v8321_v35 }
 0x9ed   : > { %7417 = vmatpush3.bf16.msra.mxu0 %v7416_v8  ;;  %7423 = vmatpush3.bf16.msra.mxu1 %v7422_v9 }
 0x9ee   : > { %7418 = vmatprep.subr.bf16.mxu0 %v7701_v18  ;;  %7424 = vmatprep.subr.bf16.mxu1 %v7701_v18 }
 0x9ef   : > { %7019 = vmatprep.mubr.msk.f32.mxu0 %vm7700_vm1, %v7699_v1  ;;  %7030 = vmatprep.mubr.msk.f32.mxu1 %vm7700_vm1, %v7699_v1 }
 0x9f1   : > { %7420 = vmatpush3.bf16.msra.mxu0 %v7419_v13  ;;  %7426 = vmatpush3.bf16.msra.mxu1 %v7425_v16 }
 0x9f2   : > { %7427 = vmatprep.subr.bf16.mxu0 %v7701_v18  ;;  %7433 = vmatprep.subr.bf16.mxu1 %v7701_v18 }
 0x9f4   : > { %7020 = vmatmul.mubr.msk.f32.vlgmr.msra.gmra.mrb[32].mxu0 %vm746_vm3, %v8321_v35  ;;  %7031 = vmatmul.mubr.msk.f32.vlgmr.msra.gmra.mrb[28].mxu1 %vm746_vm3, %v8321_v35 }
 0x9f5   : > { %7429 = vmatpush3.bf16.msra.mxu0 %v7428_v22  ;;  %7435 = vmatpush3.bf16.msra.mxu1 %v7434_v23 }
 0x9f6   : > { %7430 = vmatprep.subr.bf16.mxu0 %v7701_v18  ;;  %7436 = vmatprep.subr.bf16.mxu1 %v7701_v18 }
 0x9f7   : > { %7041 = vmatprep.mubr.msk.f32.mxu0 %vm7700_vm1, %v7699_v1  ;;  %7052 = vmatprep.mubr.msk.f32.mxu1 %vm7700_vm1, %v7699_v1 }
 0x9f9   : > { %7432 = vmatpush3.bf16.msra.mxu0 %v7431_v28  ;;  %7438 = vmatpush3.bf16.msra.mxu1 %v7437_v29 }
 0x9fa   : > { %7055 = vmatprep.subr.mxu0 %v7699_v1  ;;  %7065 = vmatprep.subr.mxu1 %v7699_v1 }
 0x9fc   : > { %7042 = vmatmul.mubr.msk.f32.vlgmr.msra.gmra.mrb[34].mxu0 %vm746_vm3, %v8321_v35  ;;  %7053 = vmatmul.mubr.msk.f32.vlgmr.msra.gmra.mrb[30].mxu1 %vm746_vm3, %v8321_v35 }
 0x9fd   : > { %7057 = vmatprep.mubr.msk.f32.mxu0 %vm7700_vm1, %v7699_v1  ;;  %7067 = vmatprep.mubr.msk.f32.mxu1 %vm7700_vm1, %v7699_v1 }
 0xaa7   : > { %v2754_v30 = vpop.f32.mrb[24].mxu0  ;;  %v2824_v31 = vpop.f32.mrb[20].mxu1 }
 0xaa8   : > { %v6933_v57 = vpop.f32.mrb[25].mxu0  ;;  %v6944_v32 = vpop.f32.mrb[21].mxu1  ;;  %v8506_v42 = vadd.f32 %v6343_v38, %v2754_v30  ;;  %v8523_v47 = vadd.f32 %v6344_v43, %v2824_v31 }
 0xaaf   : > { %v2894_v33 = vpop.f32.mrb[26].mxu0  ;;  %v2964_v3 = vpop.f32.mrb[22].mxu1 }
 0xab0   : > { %v6955_v34 = vpop.f32.mrb[27].mxu0  ;;  %v6966_v36 = vpop.f32.mrb[23].mxu1  ;;  %v8536_v58 = vadd.f32 %v6345_v50, %v2894_v33  ;;  %v8538_v59 = vadd.f32 %v6346_v51, %v2964_v3 }
 0xab7   : > { %v3058_v37 = vpop.f32.mrb[28].mxu0  ;;  %v3128_v35 = vpop.f32.mrb[24].mxu1 }
 0xab8   : > { %v3059_v39 = vadd.f32 %v6351_v4, %v3058_v37  ;;  %v6977_v40 = vpop.f32.mrb[29].mxu0  ;;  %v6988_v52 = vpop.f32.mrb[25].mxu1  ;;  %v3129_v44 = vadd.f32 %v6352_v41, %v3128_v35 }
 0xaba   : > { %7056 = vmatpush3.xpose.msk.msra.mxu0 %vm1773_vm4, %v3059_v39 }
 0xabb   : > { %7060 = vmatprep.subr.mxu0 %v7699_v1 }
 0xabd   : > { %7058 = vmatmul.mubr.msk.f32.vlgmr.msra.gmra.mrb[36].mxu0 %vm1773_vm4, %v8506_v42 }
 0xabe   : > { %7061 = vmatpush3.xpose.msk.msra.mxu0 %vm1773_vm4, %v3129_v44  ;;  %7062 = vmatprep.mubr.msk.f32.mxu0 %vm7700_vm1, %v7699_v1 }
 0xabf   : > { %v3198_v48 = vpop.f32.mrb[30].mxu0  ;;  %v3268_v49 = vpop.f32.mrb[26].mxu1  ;;  %7070 = vmatprep.subr.mxu0 %v7699_v1 }
 0xac0   : > { %v3199_v53 = vadd.f32 %v6353_v45, %v3198_v48  ;;  %v3269_v54 = vadd.f32 %v6354_v46, %v3268_v49  ;;  %v6999_v55 = vpop.f32.mrb[31].mxu0  ;;  %v7010_v56 = vpop.f32.mrb[27].mxu1 }
 0xac1   : > { %7063 = vmatmul.mubr.msk.f32.vlgmr.msra.gmra.mrb[38].mxu0 %vm1773_vm4, %v8523_v47  ;;  %v6361_v55 = vld [vmem:[%s9074_s13 + $0x6] ss:$0 sm:$0xff] }
 0xac2   : > { %7066 = vmatpush3.xpose.msk.msra.mxu1 %vm1773_vm4, %v3199_v53  ;;  %7071 = vmatpush3.xpose.msk.msra.mxu0 %vm1773_vm4, %v3269_v54 }
 0xac3   : > { %7072 = vmatprep.mubr.msk.f32.mxu0 %vm7700_vm1, %v7699_v1  ;;  %7075 = vmatprep.subr.mxu1 %v7699_v1 }
 0xac4   : > { %7080 = vmatprep.subr.mxu0 %v7699_v1 }
 0xac5   : > { %7068 = vmatmul.mubr.msk.f32.vlgmr.msra.gmra.mrb[32].mxu1 %vm1773_vm4, %v8536_v58  ;;  %7073 = vmatmul.mubr.msk.f32.vlgmr.msra.gmra.mrb[40].mxu0 %vm1773_vm4, %v8538_v59 }
 0xac6   : > { %7077 = vmatprep.mubr.msk.f32.mxu1 %vm7700_vm1, %v7699_v1  ;;  %7082 = vmatprep.mubr.msk.f32.mxu0 %vm7700_vm1, %v7699_v1 }
 0xac7   : > { %v3362_v62 = vpop.f32.mrb[32].mxu0  ;;  %v3432_v63 = vpop.f32.mrb[28].mxu1 }
 0xac8   : > { %v3363_v0 = vadd.f32 %v6359_v60, %v3362_v62  ;;  %v3433_v2 = vadd.f32 %v6360_v61, %v3432_v63  ;;  %v7021_v5 = vpop.f32.mrb[33].mxu0  ;;  %v7032_v6 = vpop.f32.mrb[29].mxu1  ;;  %v6362_v62 = vld [vmem:[%s9074_s13 + $0x7] ss:$0 sm:$0xff] }
 0xaca   : > { %7076 = vmatpush3.msra.mxu1 %v3363_v0  ;;  %7081 = vmatpush3.msra.mxu0 %v3433_v2 }
 0xacb   : > { %7085 = vmatprep.subr.mxu1 %v7699_v1  ;;  %7090 = vmatprep.subr.mxu0 %v7699_v1 }
 0xacf   : > { %v8560_v7 = vpop.f32.mrb[34].mxu0  ;;  %v8562_v8 = vpop.f32.mrb[30].mxu1 }
 0xad0   : > { %v7043_v9 = vpop.f32.mrb[35].mxu0  ;;  %v7054_v10 = vpop.f32.mrb[31].mxu1  ;;  %v3503_v61 = vadd.f32 %v6361_v55, %v8560_v7  ;;  %v3573_v2 = vadd.f32 %v6362_v62, %v8562_v8  ;;  %v6390_v55 = vld [vmem:[%s9069_s8 + $0x128] sm:$0xff] }
 0xb90   : > { %v3648_v11 = vpop.f32.mrb[36].mxu0 }
 0xb91   : > { %v3880_v12 = vmul.f32 0.35355338, %v3648_v11  ;;  %v7059_v15 = vpop.f32.mrb[37].mxu0 }
 0xb93   : > { %v3884_v13 = vsel %vm788_vm5, %v3880_v12, -3.4028235e+38 }
 0xb94   : > { %v3724_v16 = vpop.f32.mrb[38].mxu0  ;;  %v3888_v17 = vsel %vm1773_vm4, %v3884_v13, -inf }
 0xb95   : > { %v3881_v19 = vmul.f32 0.35355338, %v3724_v16  ;;  %3889 = vmax.xlane.f32.xlu0 %v3888_v17  ;;  %v7064_v14 = vpop.f32.mrb[39].mxu0 }
 0xb97   : > { %v3885_v21 = vsel %vm788_vm5, %v3881_v19, -3.4028235e+38 }
 0xb98   : > { %v3800_v22 = vpop.f32.mrb[32].mxu1  ;;  %v3876_v23 = vpop.f32.mrb[40].mxu0  ;;  %v3891_v24 = vsel %vm1773_vm4, %v3885_v21, -inf }
 0xb99   : > { %v3882_v25 = vmul.f32 0.35355338, %v3800_v22  ;;  %v3883_v26 = vmul.f32 0.35355338, %v3876_v23  ;;  %v7069_v27 = vpop.f32.mrb[33].mxu1  ;;  %3892 = vmax.xlane.f32.xlu1 %v3891_v24  ;;  %v7074_v28 = vpop.f32.mrb[41].mxu0 }
 0xb9b   : > { %v3886_v29 = vsel %vm788_vm5, %v3882_v25, -3.4028235e+38  ;;  %v3887_v30 = vsel %vm788_vm5, %v3883_v26, -3.4028235e+38 }
 0xb9c   : > { %v3894_v31 = vsel %vm1773_vm4, %v3886_v29, -inf  ;;  %v3897_v57 = vsel %vm1773_vm4, %v3887_v30, -inf }
 0xb9d   : > { %3895 = vmax.xlane.f32.xlu0 %v3894_v31  ;;  %3898 = vmax.xlane.f32.xlu1 %v3897_v57  ;;  %v6335_v57 = vld [vmem:[%s9075_s14 + $0x28] sm:$0xff] }
 0xc22   : > { %v3890_v32 = vpop.xlane.xlu0 %3889 }
 0xc23   : > { %v3900_v33 = vsub.f32 %v3884_v13, %v3890_v32 }
 0xc25   : > { %v3904_v3 = vmul.f32 1.442695, %v3900_v33  ;;  %v6336_v33 = vld [vmem:[%s9075_s14 + $0x30] sm:$0xff] }
 0xc26   : > { %v3893_v34 = vpop.xlane.xlu1 %3892 }
 0xc27   : > { %7593 = vpow2.f32 %v3904_v3  ;;  %v3901_v36 = vsub.f32 %v3885_v21, %v3893_v34  ;;  %v6337_v3 = vld [vmem:[%s9075_s14 + $0x38] sm:$0xff] }
 0xc28   : > { %v7443_v34 = vpack.c.bf16 %v6337_v3, %v6336_v33 }
 0xc29   : > { %v3906_v4 = vmul.f32 1.442695, %v3901_v36 }
 0xc2a   : > { %v3896_v37 = vpop.xlane.xlu0 %3895  ;;  %v3899_v35 = vpop.xlane.xlu1 %3898 }
 0xc2b   : > { %7595 = vpow2.f32 %v3906_v4  ;;  %v3902_v38 = vsub.f32 %v3886_v29, %v3896_v37  ;;  %v3903_v39 = vsub.f32 %v3887_v30, %v3899_v35 }
 0xc2d   : > { %v3908_v20 = vmul.f32 1.442695, %v3902_v38  ;;  %v3910_v40 = vmul.f32 1.442695, %v3903_v39  ;;  %v6379_v38 = vld [vmem:[%s9077_s16 + $0x1] ss:$0 sm:$0xff] }
 0xc2f   : > { %7597 = vpow2.f32 %v3908_v20  ;;  %v6380_v20 = vld [vmem:[%s9078_s17 + $0x1] ss:$0 sm:$0xff] }
 0xc30   : > { %7599 = vpow2.f32 %v3910_v40 }
 0xc31   : > { %v7594_v52 = vpop.eup %7593 }
 0xc32   : > { %v3912_v41 = vsel %vm1773_vm4, %v7594_v52, 0.0 }
 0xc33   : > { %3913 = vadd.xlane.f32.xlu0 %v3912_v41  ;;  %v6381_v41 = vld [vmem:[%s9076_s15 + $0x1] ss:$0 sm:$0xff] }
 0xc35   : > { %v7596_v43 = vpop.eup %7595 }
 0xc36   : > { %v3915_v44 = vsel %vm1773_vm4, %v7596_v43, 0.0 }
 0xc37   : > { %3916 = vadd.xlane.f32.xlu1 %v3915_v44 }
 0xc39   : > { %v7598_v45 = vpop.eup %7597 }
 0xc3a   : > { %v7600_v46 = vpop.eup %7599  ;;  %v3918_v48 = vsel %vm1773_vm4, %v7598_v45, 0.0 }
 0xc3b   : > { %3919 = vadd.xlane.f32.xlu0 %v3918_v48  ;;  %v3921_v49 = vsel %vm1773_vm4, %v7600_v46, 0.0 }
 0xc3c   : > { %3922 = vadd.xlane.f32.xlu1 %v3921_v49 }
 0xcc0   : > { %v3914_v50 = vpop.xlane.xlu0 %3913 }
 0xcc1   : > { %7601 = vrcp.f32 %v3914_v50  ;;  %v6385_v50 = vld [vmem:[%s9069_s8 + $0x100] sm:$0xff] }
 0xcc4   : > { %v3917_v51 = vpop.xlane.xlu1 %3916 }
 0xcc5   : > { %7603 = vrcp.f32 %v3917_v51  ;;  %v6386_v51 = vld [vmem:[%s9069_s8 + $0x108] sm:$0xff] }
 0xcc8   : > { %v3920_v53 = vpop.xlane.xlu0 %3919 }
 0xcc9   : > { %7605 = vrcp.f32 %v3920_v53  ;;  %v3923_v54 = vpop.xlane.xlu1 %3922  ;;  %v6389_v53 = vld [vmem:[%s9069_s8 + $0x120] sm:$0xff] }
 0xcca   : > { %7607 = vrcp.f32 %v3923_v54  ;;  %v7446_v54 = vpack.c.bf16 %v6386_v51, %v6385_v50  ;;  %v6425_v51 = vld [vmem:[%s9073_s12 + $0x100] sm:$0xff] }
 0xccb   : > { %v7602_v56 = vpop.eup %7601 }
 0xccc   : > { %v3928_v60 = vmul.f32 %v7602_v56, %v7594_v52  ;;  %v7452_v56 = vpack.c.bf16 %v6390_v55, %v6389_v53  ;;  %v6426_v53 = vld [vmem:[%s9073_s12 + $0x108] sm:$0xff] }
 0xccd   : > { %v6430_v55 = vld [vmem:[%s9073_s12 + $0x128] sm:$0xff] }
 0xcce   : > { %7078 = vmatmul.mubr.msk.f32.vlgmr.msra.gmra.mrb[34].mxu1 %vm1773_vm4, %v3928_v60 }
 0xccf   : > { %v7604_v63 = vpop.eup %7603  ;;  %7086 = vmatpush3.msra.mxu1 %v3503_v61  ;;  %7087 = vmatprep.mubr.msk.f32.mxu1 %vm7700_vm1, %v7699_v1 }
 0xcd0   : > { %v3929_v0 = vmul.f32 %v7604_v63, %v7596_v43  ;;  %7439 = vmatprep.subr.bf16.mxu1 %v7701_v18 }
 0xcd2   : > { %7083 = vmatmul.mubr.msk.f32.vlgmr.msra.gmra.mrb[42].mxu0 %vm1773_vm4, %v3929_v0 }
 0xcd3   : > { %v7606_v5 = vpop.eup %7605  ;;  %7091 = vmatpush3.msra.mxu0 %v3573_v2  ;;  %7092 = vmatprep.mubr.msk.f32.mxu0 %vm7700_vm1, %v7699_v1  ;;  %v6387_v2 = vld [vmem:[%s9069_s8 + $0x110] sm:$0xff] }
 0xcd4   : > { %v7608_v6 = vpop.eup %7607  ;;  %v3930_v7 = vmul.f32 %v7606_v5, %v7598_v45  ;;  %7445 = vmatprep.subr.bf16.mxu0 %v7701_v18  ;;  %v6388_v5 = vld [vmem:[%s9069_s8 + $0x118] sm:$0xff] }
 0xcd5   : > { %v3931_v9 = vmul.f32 %v7608_v6, %v7600_v46  ;;  %v6391_v6 = vld [vmem:[%s9069_s8 + $0x130] sm:$0xff] }
 0xcd6   : > { %7088 = vmatmul.mubr.msk.f32.vlgmr.msra.gmra.mrb[36].mxu1 %vm1773_vm4, %v3930_v7  ;;  %v7449_v7 = vpack.c.bf16 %v6388_v5, %v6387_v2 }
 0xcd7   : > { %7093 = vmatmul.mubr.msk.f32.vlgmr.msra.gmra.mrb[44].mxu0 %vm1773_vm4, %v3931_v9  ;;  %7103 = vmatprep.mubr.msk.f32.mxu1 %vm7700_vm1, %v7699_v1  ;;  %v6392_v9 = vld [vmem:[%s9069_s8 + $0x138] sm:$0xff] }
 0xcd8   : > { %7114 = vmatprep.mubr.msk.f32.mxu0 %vm7700_vm1, %v7699_v1  ;;  %7447 = vmatpush3.bf16.msra.mxu0 %v7446_v54  ;;  %v6429_v54 = vld [vmem:[%s9073_s12 + $0x120] sm:$0xff] }
 0xcd9   : > { %7448 = vmatprep.subr.bf16.mxu0 %v7701_v18 }
 0xcdc   : > { %7450 = vmatpush3.bf16.msra.mxu0 %v7449_v7  ;;  %v6434_v7 = vld [vmem:[%s9073_s12 + $0x148] sm:$0xff] }
 0xcdd   : > { %7457 = vmatprep.subr.bf16.mxu0 %v7701_v18 }
 0xda1   : > { %v4001_v8 = vpop.f32.mrb[34].mxu1 }
 0xda2   : > { %v7079_v10 = vpop.f32.mrb[35].mxu1  ;;  %v4224_v24 = vadd.f32 %v4001_v8, %v8506_v42  ;;  %v6334_v42 = vld [vmem:[%s9075_s14 + $0x20] sm:$0xff]  ;;  %v7455_v8 = vpack.c.bf16 %v6392_v9, %v6391_v6 }
 0xda3   : > { %v7440_v32 = vpack.c.bf16 %v6335_v57, %v6334_v42  ;;  %v6393_v10 = vld [vmem:[%s9069_s8 + $0x140] sm:$0xff]  ;;  %v6412_v42 = vld [vmem:[%s9071_s10 + $0x138] sm:$0xff] }
 0xda4   : > { %v6433_v6 = vld [vmem:[%s9073_s12 + $0x140] sm:$0xff] }
 0xda5   : > { %v4074_v11 = vpop.f32.mrb[42].mxu0  ;;  %7441 = vmatpush3.bf16.msra.mxu1 %v7440_v32  ;;  %v6437_v9 = vld [vmem:[%s9073_s12 + $0x160] sm:$0xff] }
 0xda6   : > { %v4225_v12 = vadd.f32 %v4074_v11, %v8523_v47  ;;  %v7084_v15 = vpop.f32.mrb[43].mxu0  ;;  %7442 = vmatprep.subr.bf16.mxu1 %v7701_v18  ;;  %v6394_v11 = vld [vmem:[%s9069_s8 + $0x148] sm:$0xff] }
 0xda7   : > { %v4378_v15 = vld [vmem:[%s9122_s0] sm:$0x1]  ;;  %s642_s0 = sand.u32 1, %s7689_s22  }
 0xda8   : > { %4229 = vrot.lane.b32.xlu0 %v4225_v12, %s9119_s29  ;;  %v6397_v12 = vld [vmem:[%s9069_s8 + $0x160] sm:$0xff]  ;;  %7115 = vmatmul.mubr.msk.f32.vlgmr.msra.gmra.mrb[46].mxu0 %vm746_vm3, %v4378_v15  ;;  %s643_s7 = scalar_lea.vmem [#allocation2], %s642_s0  ;;  %s6133_s27 = scalar_lea.sflag [#allocation3], %s642_s0 }
 0xda9   : > { %v4147_v13 = vpop.f32.mrb[36].mxu1  ;;  %7444 = vmatpush3.bf16.msra.mxu1 %v7443_v34  ;;  %7136 = vmatprep.mubr.msk.f32.mxu0 %vm7700_vm1, %v7699_v1  ;;  %s6145_s26 = sshll.u32 %s643_s7, 4  ;;  %s9020_s26 = int_to_ptr.vmem [resolvable:$true] %s6145_s26 }
 0xdaa   : > { %v4226_v16 = vadd.f32 %v4147_v13, %v8536_v58  ;;  %v4220_v17 = vpop.f32.mrb[44].mxu0  ;;  %v7089_v19 = vpop.f32.mrb[37].mxu1  ;;  %7451 = vmatprep.subr.bf16.mxu1 %v7701_v18  ;;  %v7458_v13 = vpack.c.bf16 %v6394_v11, %v6393_v10  ;;  %v7506_v10 = vpack.c.bf16 %v6434_v7, %v6433_v6  ;;  %p7642_p0 = scmp.lt.s32.totalorder %s9020_s26, %s7640_s30 }
 0xdab   : > { %v7094_v14 = vpop.f32.mrb[45].mxu0  ;;  %v4227_v21 = vadd.f32 %v4220_v17, %v8538_v59  ;;  %v6395_v19 = vld [vmem:[%s9069_s8 + $0x150] sm:$0xff] }
 0xdac   : > { %4233 = vrot.lane.b32.xlu1 %v4226_v16, %s9120_s28  ;;  %v6398_v16 = vld [vmem:[%s9069_s8 + $0x168] sm:$0xff]  ;;  %7459 = vmatpush3.bf16.msra.mxu0 %v7458_v13  ;;  %v6396_v14 = vld [vmem:[%s9069_s8 + $0x158] sm:$0xff]  ;;  %v6439_v13 = vld [vmem:[%s9073_s12 + $0x170] sm:$0xff] }
 0xdad   : > { %v7464_v17 = vpack.c.bf16 %v6398_v16, %v6397_v12  ;;  %7460 = vmatprep.subr.bf16.mxu0 %v7701_v18  ;;  %v6435_v12 = vld [vmem:[%s9073_s12 + $0x150] sm:$0xff]  ;;  %v6440_v16 = vld [vmem:[%s9073_s12 + $0x178] sm:$0xff] }
 0xdb0   : > { %4237 = vrot.lane.b32.xlu1 %v4227_v21, %s9121_s5  ;;  %v6399_v21 = vld [vmem:[%s9069_s8 + $0x170] sm:$0xff] }
 0xe1a   : > { %v4230_v22 = vpop.permute.xlu0 %4229 }
 0xe1b   : > { %v4240_v47 = vsel %vm1773_vm4, %v4224_v24, %v4230_v22  ;;  %v7461_v22 = vpack.c.bf16 %v6396_v14, %v6395_v19  ;;  %v7515_v19 = vpack.c.bf16 %v6440_v16, %v6439_v13 }
 0xe1d   : > { %7462 = vmatpush3.bf16.msra.mxu0 %v7461_v22 }
 0xe1e   : > { %v4234_v23 = vpop.permute.xlu1 %4233  ;;  %7469 = vmatprep.subr.bf16.mxu0 %v7701_v18 }
 0xe1f   : > { %v4241_v25 = vsel %vm2441_vm6, %v4240_v47, %v4234_v23  ;;  %v6400_v23 = vld [vmem:[%s9069_s8 + $0x178] sm:$0xff]  ;;  %v6405_v47 = vld [vmem:[%s9071_s10 + $0x100] sm:$0xff] }
 0xe20   : > { %v7467_v24 = vpack.c.bf16 %v6400_v23, %v6399_v21  ;;  %7137 = vmatmul.mubr.msk.f32.vlgmr.msra.gmra.mrb[48].mxu0 %vm746_vm3, %v4378_v15 }
 0xe21   : > { %7158 = vmatprep.mubr.msk.f32.mxu0 %vm7700_vm1, %v7699_v1 }
 0xe22   : > { %v4238_v26 = vpop.permute.xlu1 %4237 }
 0xe23   : > { %v4242_v58 = vsel %vm2443_vm7, %v4241_v25, %v4238_v26  ;;  %v6406_v25 = vld [vmem:[%s9071_s10 + $0x108] sm:$0xff]  ;;  %v6409_v26 = vld [vmem:[%s9071_s10 + $0x120] sm:$0xff] }
 0xe24   : > { %v4243_v27 = vsel %vm746_vm3, %v4242_v58, 0.0 }
 0xe25   : > { %4244 = vadd.xlane.f32.xlu1 %v4243_v27  ;;  %v6410_v27 = vld [vmem:[%s9071_s10 + $0x128] sm:$0xff] }
 0xe7b   : > { %v4530_v14 = vpop.f32.mrb[46].mxu0 }
 0xe7c   : > { %v7116_v21 = vpop.f32.mrb[47].mxu0 }
 0xeb2   : > { %v4245_v28 = vpop.xlane.xlu1 %4244 }
 0xeb3   : > { %v4246_v29 = vmul.f32 0.03125, %v4245_v28  ;;  %v7476_v28 = vpack.c.bf16 %v6410_v27, %v6409_v26 }
 0xeb5   : > { %v4247_v30 = vsub.f32 %v4242_v58, %v4246_v29  ;;  %v7470_v58 = vpack.c.bf16 %v6406_v25, %v6405_v47  ;;  %v6407_v29 = vld [vmem:[%s9071_s10 + $0x110] sm:$0xff] }
 0xeb7   : > { %v4248_v59 = vmul.f32 %v4247_v30, %v4247_v30  ;;  %7471 = vmatpush3.bf16.msra.mxu0 %v7470_v58  ;;  %v6458_v58 = vld [vmem:[%s9072_s11 + $0x8] ss:$0 sm:$0xff] }
 0xeb8   : > { %7472 = vmatprep.subr.bf16.mxu0 %v7701_v18 }
 0xeb9   : > { %v4249_v31 = vsel %vm746_vm3, %v4248_v59, 0.0  ;;  %v6411_v59 = vld [vmem:[%s9071_s10 + $0x130] sm:$0xff] }
 0xeba   : > { %4250 = vadd.xlane.f32.xlu0 %v4249_v31  ;;  %v7479_v57 = vpack.c.bf16 %v6412_v42, %v6411_v59  ;;  %v6459_v42 = vld [vmem:[%s9072_s11 + $0x9] ss:$0 sm:$0xff] }
 0xf47   : > { %v4251_v36 = vpop.xlane.xlu0 %4250 }
 0xf48   : > { %v4252_v4 = vmul.f32 0.03125, %v4251_v36  ;;  %v6383_v36 = vld [vmem:[%s9079_s18 + $0x1] ss:$0 sm:$0xff] }
 0xf4a   : > { %v4253_v37 = vadd.f32 1e-05, %v4252_v4  ;;  %v6413_v4 = vld [vmem:[%s9071_s10 + $0x140] sm:$0xff] }
 0xf4c   : > { %7609 = vrsqrt.f32 %v4253_v37 }
 0xf56   : > { %v7610_v35 = vpop.eup %7609 }
 0xf57   : > { %v4255_v39 = vmul.f32 %v7610_v35, %v4247_v30  ;;  %v6408_v30 = vld [vmem:[%s9071_s10 + $0x118] sm:$0xff]  ;;  %v6414_v35 = vld [vmem:[%s9071_s10 + $0x148] sm:$0xff] }
 0xf58   : > { %v7473_v31 = vpack.c.bf16 %v6408_v30, %v6407_v29  ;;  %v6401_v29 = vld [vmem:[%s9070_s9 + $0x8] sm:$0x1] }
 0xf59   : > { %v4262_v40 = vmul.f32 %v6379_v38, %v4255_v39  ;;  %v6417_v38 = vld [vmem:[%s9071_s10 + $0x160] sm:$0xff]  ;;  %v6418_v39 = vld [vmem:[%s9071_s10 + $0x168] sm:$0xff] }
 0xf5a   : > { %7474 = vmatpush3.bf16.msra.mxu0 %v7473_v31 }
 0xf5b   : > { %v4269_v52 = vadd.f32 %v6380_v20, %v4262_v40  ;;  %7481 = vmatprep.subr.bf16.mxu0 %v7701_v18  ;;  %v6384_v20 = vld [vmem:[%s9080_s19 + $0x1] ss:$0 sm:$0xff] }
 0xf5d   : > { %7104 = vmatmul.mubr.msk.f32.vlgmr.msra.gmra.mrb[38].mxu1 %vm746_vm3, %v4269_v52 }
 0xf5e   : > { %7125 = vmatprep.mubr.msk.f32.mxu1 %vm7700_vm1, %v7699_v1  ;;  %7453 = vmatpush3.bf16.msra.mxu1 %v7452_v56  ;;  %v7494_v56 = vpack.c.bf16 %v6426_v53, %v6425_v51 }
 0xf5f   : > { %7454 = vmatprep.subr.bf16.mxu1 %v7701_v18 }
 0xf62   : > { %7456 = vmatpush3.bf16.msra.mxu1 %v7455_v8  ;;  %v6438_v8 = vld [vmem:[%s9073_s12 + $0x168] sm:$0xff] }
 0xf63   : > { %7463 = vmatprep.subr.bf16.mxu1 %v7701_v18  ;;  %v7512_v11 = vpack.c.bf16 %v6438_v8, %v6437_v9 }
 0xf65   : > { %7126 = vmatmul.mubr.msk.f32.vlgmr.msra.gmra.mrb[40].mxu1 %vm746_vm3, %v4378_v15 }
 0xf66   : > { %7465 = vmatpush3.bf16.msra.mxu1 %v7464_v17  ;;  %7147 = vmatprep.mubr.msk.f32.mxu1 %vm7700_vm1, %v7699_v1 }
 0xf67   : > { %7466 = vmatprep.subr.bf16.mxu1 %v7701_v18 }
 0xf6a   : > { %7468 = vmatpush3.bf16.msra.mxu1 %v7467_v24  ;;  %v4670_v24 = vpop.f32.mrb[48].mxu0 }
 0xf6b   : > { %7475 = vmatprep.subr.bf16.mxu1 %v7701_v18  ;;  %v7138_v47 = vpop.f32.mrb[49].mxu0 }
 0xf6d   : > { %7148 = vmatmul.mubr.msk.f32.vlgmr.msra.gmra.mrb[42].mxu1 %vm746_vm3, %v4378_v15  ;;  %v6436_v15 = vld [vmem:[%s9073_s12 + $0x158] sm:$0xff] }
 0xf6e   : > { %7477 = vmatpush3.bf16.msra.mxu1 %v7476_v28  ;;  %7169 = vmatprep.mubr.msk.f32.mxu1 %vm7700_vm1, %v7699_v1  ;;  %v7509_v17 = vpack.c.bf16 %v6436_v15, %v6435_v12 }
 0xf6f   : > { %7478 = vmatprep.subr.bf16.mxu1 %v7701_v18 }
 0xf72   : > { %7480 = vmatpush3.bf16.msra.mxu1 %v7479_v57  ;;  %v8880_v57 = vadd.f32 %v6401_v29, %v4530_v14 }
 0xf73   : > { %7487 = vmatprep.subr.bf16.mxu1 %v7701_v18 }
0x1030   : > { %v4345_v43 = vpop.f32.mrb[38].mxu1 }
0x1031   : > { %v4346_v44 = vadd.f32 %v6381_v41, %v4345_v43  ;;  %v7105_v45 = vpop.f32.mrb[39].mxu1  ;;  %v7488_v41 = vpack.c.bf16 %v6418_v39, %v6417_v38  ;;  %v6415_v43 = vld [vmem:[%s9071_s10 + $0x150] sm:$0xff]  ;;  %v6404_v38 = vld [vmem:[%s9070_s9 + $0xb] sm:$0x1] }
0x1032   : > { %v6416_v45 = vld [vmem:[%s9071_s10 + $0x158] sm:$0xff] }
0x1033   : > { %v4349_v46 = vmax.f32 %v4346_v44, 0.0 }
0x1035   : > { %v4350_v48 = vadd.f32 %v4349_v46, %v4269_v52  ;;  %v7482_v52 = vpack.c.bf16 %v6414_v35, %v6413_v4  ;;  %v6419_v46 = vld [vmem:[%s9071_s10 + $0x170] sm:$0xff]  ;;  %v6403_v35 = vld [vmem:[%s9070_s9 + $0xa] sm:$0x1] }
0x1037   : > { %v4351_v49 = vsel %vm746_vm3, %v4350_v48, 0.0 }
0x1038   : > { %4352 = vadd.xlane.f32.xlu0 %v4351_v49  ;;  %v7485_v49 = vpack.c.bf16 %v6416_v45, %v6415_v43  ;;  %v4600_v22 = vpop.f32.mrb[40].mxu1  ;;  %v6467_v45 = vld [vmem:[%s9074_s13 + $0x9] ss:$0 sm:$0xff] }
0x1039   : > { %v7127_v23 = vpop.f32.mrb[41].mxu1 }
0x1040   : > { %v4740_v25 = vpop.f32.mrb[42].mxu1 }
0x1041   : > { %v7149_v26 = vpop.f32.mrb[43].mxu1  ;;  %v8912_v43 = vadd.f32 %v6404_v38, %v4740_v25 }
0x10c5   : > { %v4353_v60 = vpop.xlane.xlu0 %4352 }
0x10c6   : > { %v4354_v61 = vmul.f32 0.03125, %v4353_v60  ;;  %v7500_v60 = vpack.c.bf16 %v6430_v55, %v6429_v54 }
0x10c8   : > { %v8655_v62 = vsub.f32 %v4350_v48, %v4354_v61  ;;  %v6420_v48 = vld [vmem:[%s9071_s10 + $0x178] sm:$0xff]  ;;  %v6427_v61 = vld [vmem:[%s9073_s12 + $0x110] sm:$0xff] }
0x10c9   : > { %v7491_v50 = vpack.c.bf16 %v6420_v48, %v6419_v46 }
0x10ca   : > { %v4356_v63 = vmul.f32 %v8655_v62, %v8655_v62 }
0x10cc   : > { %v4357_v0 = vsel %vm746_vm3, %v4356_v63, 0.0  ;;  %v6431_v63 = vld [vmem:[%s9073_s12 + $0x130] sm:$0xff] }
0x10cd   : > { %4358 = vadd.xlane.f32.xlu0 %v4357_v0  ;;  %v6432_v0 = vld [vmem:[%s9073_s12 + $0x138] sm:$0xff] }
0x10ce   : > { %v7503_v5 = vpack.c.bf16 %v6432_v0, %v6431_v63 }
0x115a   : > { %v4359_v32 = vpop.xlane.xlu0 %4358 }
0x115b   : > { %v4360_v33 = vmul.f32 0.03125, %v4359_v32  ;;  %v6402_v32 = vld [vmem:[%s9070_s9 + $0x9] sm:$0x1] }
0x115d   : > { %v4361_v3 = vadd.f32 1e-05, %v4360_v33 }
0x115f   : > { %7611 = vrsqrt.f32 %v4361_v3  ;;  %v6460_v3 = vld [vmem:[%s9072_s11 + $0xa] ss:$0 sm:$0xff] }
0x1169   : > { %v7612_v34 = vpop.eup %7611 }
0x116a   : > { %v4363_v37 = vmul.f32 %v7612_v34, %v8655_v62  ;;  %v6428_v62 = vld [vmem:[%s9073_s12 + $0x118] sm:$0xff]  ;;  %v6461_v34 = vld [vmem:[%s9072_s11 + $0xb] ss:$0 sm:$0xff] }
0x116b   : > { %v7497_v2 = vpack.c.bf16 %v6428_v62, %v6427_v61  ;;  %v7633_v61 = vld [vmem:[%s8188_s23] sm:$0x1]  ;;  %s7635_s23 = scalar_lea.vmem %s9020_s26, 16 }
0x116c   : > { %v4370_v40 = vmul.f32 %v6383_v36, %v4363_v37  ;;  %v8897_v36 = vadd.f32 %v6402_v32, %v4600_v22  ;;  %vm4379_vm8 = vcmp.gt.f32.partialorder %v7633_v61, 0.5  ;;  %p7636_p11 = scmp.ne.s32.totalorder %s9020_s26, %s7635_s23  ;;  %p7643_p1 = scmp.lt.s32.totalorder %s7641_s25, %s7635_s23 }
0x116e   : > { %v8767_v44 = vadd.f32 %v6384_v20, %v4370_v40  ;;  %p7637_p12 = pnand %p7636_p11, %p7850_p5  ;;  %p7644_p2 = por %p7643_p1, %p7642_p0 }
0x1170   : > { %7159 = vmatmul.mubr.msk.f32.vlgmr.msra.gmra.mrb[50].mxu0 %vm746_vm3, %v8767_v44  ;;  %7170 = vmatmul.mubr.msk.f32.vlgmr.msra.gmra.mrb[44].mxu1 %vm746_vm3, %v8767_v44  ;;  %p7638_p13 = pneg %p7637_p12 }
0x1171   : > { %7483 = vmatpush3.bf16.msra.mxu0 %v7482_v52  ;;  %7489 = vmatpush3.bf16.msra.mxu1 %v7488_v41  ;;  %v8910_v41 = vadd.f32 %v6403_v35, %v4670_v24 }
0x1172   : > { %7484 = vmatprep.subr.bf16.mxu0 %v7701_v18  ;;  %7490 = vmatprep.subr.bf16.mxu1 %v7701_v18  ;;  %p7645_p3 = pnand %p7644_p2, %p7638_p13 }
0x1173   : > { %7180 = vmatprep.mubr.msk.f32.mxu0 %vm7700_vm1, %v7699_v1  ;;  %7191 = vmatprep.mubr.msk.f32.mxu1 %vm7700_vm1, %v7699_v1 }
0x1175   : > { %7486 = vmatpush3.bf16.msra.mxu0 %v7485_v49  ;;  %7492 = vmatpush3.bf16.msra.mxu1 %v7491_v50 }
0x1176   : > { %7493 = vmatprep.subr.bf16.mxu0 %v7701_v18  ;;  %7499 = vmatprep.subr.bf16.mxu1 %v7701_v18 }
0x1178   : > { %7181 = vmatmul.mubr.msk.f32.vlgmr.msra.gmra.mrb[52].mxu0 %vm746_vm3, %v8767_v44  ;;  %7192 = vmatmul.mubr.msk.f32.vlgmr.msra.gmra.mrb[46].mxu1 %vm746_vm3, %v8767_v44 }
0x1179   : > { %7495 = vmatpush3.bf16.msra.mxu0 %v7494_v56  ;;  %7501 = vmatpush3.bf16.msra.mxu1 %v7500_v60 }
0x117a   : > { %7496 = vmatprep.subr.bf16.mxu0 %v7701_v18  ;;  %7502 = vmatprep.subr.bf16.mxu1 %v7701_v18 }
0x117b   : > { %7202 = vmatprep.mubr.msk.f32.mxu0 %vm7700_vm1, %v7699_v1  ;;  %7213 = vmatprep.mubr.msk.f32.mxu1 %vm7700_vm1, %v7699_v1 }
0x117d   : > { %7498 = vmatpush3.bf16.msra.mxu0 %v7497_v2  ;;  %7504 = vmatpush3.bf16.msra.mxu1 %v7503_v5 }
0x117e   : > { %7505 = vmatprep.subr.bf16.mxu0 %v7701_v18  ;;  %7511 = vmatprep.subr.bf16.mxu1 %v7701_v18 }
0x1180   : > { %7203 = vmatmul.mubr.msk.f32.vlgmr.msra.gmra.mrb[54].mxu0 %vm746_vm3, %v8767_v44  ;;  %7214 = vmatmul.mubr.msk.f32.vlgmr.msra.gmra.mrb[48].mxu1 %vm746_vm3, %v8767_v44 }
0x1181   : > { %7507 = vmatpush3.bf16.msra.mxu0 %v7506_v10  ;;  %7513 = vmatpush3.bf16.msra.mxu1 %v7512_v11 }
0x1182   : > { %7508 = vmatprep.subr.bf16.mxu0 %v7701_v18  ;;  %7514 = vmatprep.subr.bf16.mxu1 %v7701_v18 }
0x1183   : > { %7224 = vmatprep.mubr.msk.f32.mxu0 %vm7700_vm1, %v7699_v1  ;;  %7235 = vmatprep.mubr.msk.f32.mxu1 %vm7700_vm1, %v7699_v1 }
0x1185   : > { %7510 = vmatpush3.bf16.msra.mxu0 %v7509_v17  ;;  %7516 = vmatpush3.bf16.msra.mxu1 %v7515_v19 }
0x1186   : > { %7238 = vmatprep.subr.mxu0 %v7699_v1  ;;  %7248 = vmatprep.subr.mxu1 %v7699_v1 }
0x1188   : > { %7225 = vmatmul.mubr.msk.f32.vlgmr.msra.gmra.mrb[56].mxu0 %vm746_vm3, %v8767_v44  ;;  %7236 = vmatmul.mubr.msk.f32.vlgmr.msra.gmra.mrb[50].mxu1 %vm746_vm3, %v8767_v44  ;;  %v6466_v44 = vld [vmem:[%s9074_s13 + $0x8] ss:$0 sm:$0xff] }
0x1189   : > { %7240 = vmatprep.mubr.msk.f32.mxu0 %vm7700_vm1, %v7699_v1  ;;  %7250 = vmatprep.mubr.msk.f32.mxu1 %vm7700_vm1, %v7699_v1 }
0x1243   : > { %v4837_v27 = vpop.f32.mrb[50].mxu0  ;;  %v4907_v28 = vpop.f32.mrb[44].mxu1 }
0x1244   : > { %v4838_v30 = vadd.f32 %v6458_v58, %v4837_v27  ;;  %v7160_v59 = vpop.f32.mrb[51].mxu0  ;;  %v7171_v31 = vpop.f32.mrb[45].mxu1  ;;  %v4908_v33 = vadd.f32 %v6459_v42, %v4907_v28 }
0x1246   : > { %7239 = vmatpush3.xpose.msk.msra.mxu0 %vm1773_vm4, %v4838_v30 }
0x1247   : > { %7243 = vmatprep.subr.mxu0 %v7699_v1 }
0x1249   : > { %7241 = vmatmul.mubr.msk.f32.vlgmr.msra.gmra.mrb[58].mxu0 %vm1773_vm4, %v8880_v57 }
0x124a   : > { %7244 = vmatpush3.xpose.msk.msra.mxu0 %vm1773_vm4, %v4908_v33  ;;  %7245 = vmatprep.mubr.msk.f32.mxu0 %vm7700_vm1, %v7699_v1 }
0x124b   : > { %v4977_v4 = vpop.f32.mrb[52].mxu0  ;;  %v5047_v37 = vpop.f32.mrb[46].mxu1  ;;  %7253 = vmatprep.subr.mxu0 %v7699_v1 }
0x124c   : > { %v4978_v39 = vadd.f32 %v6460_v3, %v4977_v4  ;;  %v5048_v20 = vadd.f32 %v6461_v34, %v5047_v37  ;;  %v7182_v40 = vpop.f32.mrb[53].mxu0  ;;  %v7193_v52 = vpop.f32.mrb[47].mxu1 }
0x124d   : > { %7246 = vmatmul.mubr.msk.f32.vlgmr.msra.gmra.mrb[60].mxu0 %vm1773_vm4, %v8897_v36  ;;  %v6468_v52 = vld [vmem:[%s9074_s13 + $0xa] ss:$0 sm:$0xff] }
0x124e   : > { %7249 = vmatpush3.xpose.msk.msra.mxu1 %vm1773_vm4, %v4978_v39  ;;  %7254 = vmatpush3.xpose.msk.msra.mxu0 %vm1773_vm4, %v5048_v20 }
0x124f   : > { %7255 = vmatprep.mubr.msk.f32.mxu0 %vm7700_vm1, %v7699_v1  ;;  %7258 = vmatprep.subr.mxu1 %v7699_v1 }
0x1250   : > { %7263 = vmatprep.subr.mxu0 %v7699_v1 }
0x1251   : > { %7251 = vmatmul.mubr.msk.f32.vlgmr.msra.gmra.mrb[52].mxu1 %vm1773_vm4, %v8910_v41  ;;  %7256 = vmatmul.mubr.msk.f32.vlgmr.msra.gmra.mrb[62].mxu0 %vm1773_vm4, %v8912_v43 }
0x1252   : > { %7260 = vmatprep.mubr.msk.f32.mxu1 %vm7700_vm1, %v7699_v1  ;;  %7265 = vmatprep.mubr.msk.f32.mxu0 %vm7700_vm1, %v7699_v1 }
0x1253   : > { %v5141_v46 = vpop.f32.mrb[54].mxu0  ;;  %v5211_v48 = vpop.f32.mrb[48].mxu1 }
0x1254   : > { %v5142_v49 = vadd.f32 %v6466_v44, %v5141_v46  ;;  %v5212_v50 = vadd.f32 %v6467_v45, %v5211_v48  ;;  %v7204_v51 = vpop.f32.mrb[55].mxu0  ;;  %v7215_v53 = vpop.f32.mrb[49].mxu1  ;;  %v6469_v48 = vld [vmem:[%s9074_s13 + $0xb] ss:$0 sm:$0xff] }
0x1256   : > { %7259 = vmatpush3.msra.mxu1 %v5142_v49  ;;  %7264 = vmatpush3.msra.mxu0 %v5212_v50 }
0x1257   : > { %7268 = vmatprep.subr.mxu1 %v7699_v1  ;;  %7273 = vmatprep.subr.mxu0 %v7699_v1 }
0x125b   : > { %v8934_v54 = vpop.f32.mrb[56].mxu0  ;;  %v8936_v55 = vpop.f32.mrb[50].mxu1 }
0x125c   : > { %v7226_v56 = vpop.f32.mrb[57].mxu0  ;;  %v7237_v60 = vpop.f32.mrb[51].mxu1  ;;  %v5282_v46 = vadd.f32 %v6468_v52, %v8934_v54  ;;  %v5352_v51 = vadd.f32 %v6469_v48, %v8936_v55 }
0x131c   : > { %v5427_v62 = vpop.f32.mrb[58].mxu0 }
0x131d   : > { %v5659_v63 = vmul.f32 0.35355338, %v5427_v62  ;;  %v7242_v0 = vpop.f32.mrb[59].mxu0 }
0x131f   : > { %v5665_v2 = vsel %vm4379_vm8, %v5659_v63, -3.4028235e+38 }
0x1320   : > { %v5503_v5 = vpop.f32.mrb[60].mxu0  ;;  %v5670_v6 = vsel %vm5669_vm9, %v5665_v2, -inf }
0x1321   : > { %v5660_v7 = vmul.f32 0.35355338, %v5503_v5  ;;  %5671 = vmax.xlane.f32.xlu1 %v5670_v6  ;;  %v7247_v9 = vpop.f32.mrb[61].mxu0 }
0x1323   : > { %v5666_v8 = vsel %vm4379_vm8, %v5660_v7, -3.4028235e+38 }
0x1324   : > { %v5579_v10 = vpop.f32.mrb[52].mxu1  ;;  %v5655_v11 = vpop.f32.mrb[62].mxu0  ;;  %v5673_v12 = vsel %vm5669_vm9, %v5666_v8, -inf }
0x1325   : > { %v5661_v15 = vmul.f32 0.35355338, %v5579_v10  ;;  %v7252_v13 = vpop.f32.mrb[53].mxu1  ;;  %v5662_v16 = vmul.f32 0.35355338, %v5655_v11  ;;  %5674 = vmax.xlane.f32.xlu0 %v5673_v12  ;;  %v7257_v17 = vpop.f32.mrb[63].mxu0 }
0x1327   : > { %v5667_v19 = vsel %vm4379_vm8, %v5661_v15, -3.4028235e+38  ;;  %v5668_v14 = vsel %vm4379_vm8, %v5662_v16, -3.4028235e+38 }
0x1328   : > { %v5676_v21 = vsel %vm5669_vm9, %v5667_v19, -inf  ;;  %v5679_v22 = vsel %vm5669_vm9, %v5668_v14, -inf }
0x1329   : > { %5677 = vmax.xlane.f32.xlu1 %v5676_v21  ;;  %5680 = vmax.xlane.f32.xlu0 %v5679_v22  ;;  %v6446_v21 = vld [vmem:[%s9075_s14 + $0x48] sm:$0xff] }
0x13ae   : > { %v5672_v23 = vpop.xlane.xlu1 %5671 }
0x13af   : > { %v5682_v24 = vsub.f32 %v5665_v2, %v5672_v23  ;;  %v6447_v23 = vld [vmem:[%s9075_s14 + $0x50] sm:$0xff] }
0x13b1   : > { %v5686_v47 = vmul.f32 1.442695, %v5682_v24  ;;  %v6448_v24 = vld [vmem:[%s9075_s14 + $0x58] sm:$0xff] }
0x13b2   : > { %v5675_v25 = vpop.xlane.xlu0 %5674 }
0x13b3   : > { %7613 = vpow2.f32 %v5686_v47  ;;  %v5683_v26 = vsub.f32 %v5666_v8, %v5675_v25  ;;  %v7521_v47 = vpack.c.bf16 %v6448_v24, %v6447_v23 }
0x13b5   : > { %v5688_v58 = vmul.f32 1.442695, %v5683_v26 }
0x13b6   : > { %v5678_v27 = vpop.xlane.xlu1 %5677  ;;  %v5681_v28 = vpop.xlane.xlu0 %5680 }
0x13b7   : > { %7615 = vpow2.f32 %v5688_v58  ;;  %v5684_v29 = vsub.f32 %v5667_v19, %v5678_v27  ;;  %v5685_v30 = vsub.f32 %v5668_v14, %v5681_v28  ;;  %v6450_v28 = vld [vmem:[%s9077_s16 + $0x2] sm:$0x1] }
0x13b9   : > { %v5690_v59 = vmul.f32 1.442695, %v5684_v29  ;;  %v5692_v31 = vmul.f32 1.442695, %v5685_v30  ;;  %v6451_v29 = vld [vmem:[%s9078_s17 + $0x2] sm:$0x1] }
0x13bb   : > { %7617 = vpow2.f32 %v5690_v59 }
0x13bc   : > { %7619 = vpow2.f32 %v5692_v31  ;;  %v6449_v31 = vld [vmem:[%s9076_s15 + $0x2] sm:$0x1] }
0x13bd   : > { %v7614_v42 = vpop.eup %7613 }
0x13be   : > { %v5694_v32 = vsel %vm5669_vm9, %v7614_v42, 0.0 }
0x13bf   : > { %5695 = vadd.xlane.f32.xlu1 %v5694_v32 }
0x13c1   : > { %v7616_v33 = vpop.eup %7615 }
0x13c2   : > { %v5697_v3 = vsel %vm5669_vm9, %v7616_v33, 0.0 }
0x13c3   : > { %5698 = vadd.xlane.f32.xlu0 %v5697_v3 }
0x13c5   : > { %v7618_v34 = vpop.eup %7617 }
0x13c6   : > { %v7620_v4 = vpop.eup %7619  ;;  %v5700_v37 = vsel %vm5669_vm9, %v7618_v34, 0.0 }
0x13c7   : > { %5701 = vadd.xlane.f32.xlu1 %v5700_v37  ;;  %v5703_v35 = vsel %vm5669_vm9, %v7620_v4, 0.0 }
0x13c8   : > { %5704 = vadd.xlane.f32.xlu0 %v5703_v35 }
0x144c   : > { %v5696_v38 = vpop.xlane.xlu1 %5695 }
0x144d   : > { %7621 = vrcp.f32 %v5696_v38 }
0x1450   : > { %v5699_v39 = vpop.xlane.xlu0 %5698 }
0x1451   : > { %7623 = vrcp.f32 %v5699_v39 }
0x1454   : > { %v5702_v20 = vpop.xlane.xlu1 %5701 }
0x1455   : > { %7625 = vrcp.f32 %v5702_v20  ;;  %v5705_v40 = vpop.xlane.xlu0 %5704 }
0x1456   : > { %7627 = vrcp.f32 %v5705_v40 }
0x1457   : > { %v7622_v44 = vpop.eup %7621 }
0x1458   : > { %v5710_v45 = vmul.f32 %v7622_v44, %v7614_v42 }
0x145a   : > { %7261 = vmatmul.mubr.msk.f32.vlgmr.msra.gmra.mrb[54].mxu1 %vm1773_vm4, %v5710_v45 }
0x145b   : > { %v7624_v49 = vpop.eup %7623  ;;  %7269 = vmatpush3.msra.mxu1 %v5282_v46  ;;  %7270 = vmatprep.mubr.msk.f32.mxu1 %vm7700_vm1, %v7699_v1  ;;  %v6452_v46 = vld [vmem:[%s9079_s18 + $0x2] sm:$0x1] }
0x145c   : > { %v5711_v50 = vmul.f32 %v7624_v49, %v7616_v33  ;;  %7517 = vmatprep.subr.bf16.mxu1 %v7701_v18  ;;  %v6453_v49 = vld [vmem:[%s9080_s19 + $0x2] sm:$0x1] }
0x145e   : > { %7266 = vmatmul.mubr.msk.f32.vlgmr.msra.gmra.mrb[64].mxu0 %vm1773_vm4, %v5711_v50 }
0x145f   : > { %v7626_v53 = vpop.eup %7625  ;;  %7274 = vmatpush3.msra.mxu0 %v5352_v51  ;;  %7275 = vmatprep.mubr.msk.f32.mxu0 %vm7700_vm1, %v7699_v1 }
0x1460   : > { %v7628_v54 = vpop.eup %7627  ;;  %v5712_v56 = vmul.f32 %v7626_v53, %v7618_v34 }
0x1461   : > { %v5713_v60 = vmul.f32 %v7628_v54, %v7620_v4 }
0x1462   : > { %7271 = vmatmul.mubr.msk.f32.vlgmr.msra.gmra.mrb[56].mxu1 %vm1773_vm4, %v5712_v56 }
0x1463   : > { %7276 = vmatmul.mubr.msk.f32.vlgmr.msra.gmra.mrb[66].mxu0 %vm1773_vm4, %v5713_v60  ;;  %7286 = vmatprep.mubr.msk.f32.mxu1 %vm7700_vm1, %v7699_v1 }
0x152d   : > { %v5783_v61 = vpop.f32.mrb[54].mxu1 }
0x152e   : > { %v7262_v62 = vpop.f32.mrb[55].mxu1  ;;  %v6006_v10 = vadd.f32 %v5783_v61, %v8880_v57  ;;  %v6445_v57 = vld [vmem:[%s9075_s14 + $0x40] sm:$0xff] }
0x152f   : > { %v7518_v22 = vpack.c.bf16 %v6446_v21, %v6445_v57 }
0x1531   : > { %v5856_v55 = vpop.f32.mrb[64].mxu0  ;;  %7519 = vmatpush3.bf16.msra.mxu1 %v7518_v22 }
0x1532   : > { %v6007_v63 = vadd.f32 %v5856_v55, %v8897_v36  ;;  %v7267_v0 = vpop.f32.mrb[65].mxu0  ;;  %7520 = vmatprep.subr.bf16.mxu1 %v7701_v18 }
0x1534   : > { %6011 = vrot.lane.b32.xlu1 %v6007_v63, %s9119_s29 }
0x1535   : > { %v5929_v2 = vpop.f32.mrb[56].mxu1  ;;  %7522 = vmatpush3.bf16.msra.mxu1 %v7521_v47 }
0x1536   : > { %v6008_v5 = vadd.f32 %v5929_v2, %v8910_v41  ;;  %v7272_v6 = vpop.f32.mrb[57].mxu1  ;;  %v6002_v7 = vpop.f32.mrb[66].mxu0 }
0x1537   : > { %v6009_v9 = vadd.f32 %v6002_v7, %v8912_v43  ;;  %v7277_v8 = vpop.f32.mrb[67].mxu0 }
0x1538   : > { %6015 = vrot.lane.b32.xlu0 %v6008_v5, %s9120_s28 }
0x1539   : > { %6019 = vrot.lane.b32.xlu1 %v6009_v9, %s9121_s5 }
0x15a6   : > { %v6012_v1 = vpop.permute.xlu1 %6011 }
0x15a7   : > { %v6022_v36 = vsel %vm1773_vm4, %v6006_v10, %v6012_v1 }
0x15aa   : > { %v6016_v11 = vpop.permute.xlu0 %6015 }
0x15ab   : > { %v6023_v12 = vsel %vm2441_vm6, %v6022_v36, %v6016_v11  ;;  %v6020_v15 = vpop.permute.xlu1 %6019 }
0x15ac   : > { %v6024_v41 = vsel %vm2443_vm7, %v6023_v12, %v6020_v15 }
0x15ad   : > { %v6026_v13 = vsel %vm6025_vm10, %v6024_v41, 0.0 }
0x15ae   : > { %6027 = vadd.xlane.f32.xlu1 %v6026_v13 }
0x163b   : > { %v6028_v43 = vpop.xlane.xlu1 %6027 }
0x163c   : > { %v6029_v16 = vmul.f32 0.03125, %v6028_v43 }
0x163e   : > { %v6030_v17 = vsub.f32 %v6024_v41, %v6029_v16 }
0x1640   : > { %v6031_v19 = vmul.f32 %v6030_v17, %v6030_v17 }
0x1642   : > { %v6032_v14 = vsel %vm6025_vm10, %v6031_v19, 0.0 }
0x1643   : > { %6033 = vadd.xlane.f32.xlu0 %v6032_v14 }
0x16d0   : > { %v6034_v25 = vpop.xlane.xlu0 %6033 }
0x16d1   : > { %v6035_v26 = vmul.f32 0.03125, %v6034_v25 }
0x16d3   : > { %v6036_v58 = vadd.f32 1e-05, %v6035_v26 }
0x16d5   : > { %7629 = vrsqrt.f32 %v6036_v58 }
0x16df   : > { %v7630_v27 = vpop.eup %7629 }
0x16e0   : > { %v6038_v18 = vmul.f32 %v7630_v27, %v6030_v17 }
0x16e2   : > { %v6039_v30 = vmul.f32 %v6450_v28, %v6038_v18 }
0x16e4   : > { %v6040_v59 = vadd.f32 %v6451_v29, %v6039_v30 }
0x16e6   : > { %7287 = vmatmul.mubr.msk.f32.vlgmr.msra.gmra.mrb[58].mxu1 %vm746_vm3, %v6040_v59 }
0x17b9   : > { %v6110_v42 = vpop.f32.mrb[58].mxu1 }
0x17ba   : > { %v6111_v32 = vadd.f32 %v6449_v31, %v6110_v42  ;;  %v7288_v33 = vpop.f32.mrb[59].mxu1 }
0x17bc   : > { %v6114_v3 = vmax.f32 %v6111_v32, 0.0 }
0x17be   : > { %v6115_v34 = vadd.f32 %v6114_v3, %v6040_v59 }
0x17c0   : > { %v6116_v4 = vsel %vm6025_vm10, %v6115_v34, 0.0 }
0x17c1   : > { %6117 = vadd.xlane.f32.xlu0 %v6116_v4 }
0x184e   : > { %v6118_v37 = vpop.xlane.xlu0 %6117 }
0x184f   : > { %v6119_v35 = vmul.f32 0.03125, %v6118_v37 }
0x1851   : > { %v6120_v38 = vsub.f32 %v6115_v34, %v6119_v35 }
0x1853   : > { %v6121_v39 = vmul.f32 %v6120_v38, %v6120_v38 }
0x1855   : > { %v6122_v20 = vsel %vm6025_vm10, %v6121_v39, 0.0 }
0x1856   : > { %6123 = vadd.xlane.f32.xlu1 %v6122_v20 }
0x18e3   : > { %v6124_v40 = vpop.xlane.xlu1 %6123 }
0x18e4   : > { %v6125_v52 = vmul.f32 0.03125, %v6124_v40 }
0x18e6   : > { %v6126_v44 = vadd.f32 1e-05, %v6125_v52 }
0x18e8   : > { %7631 = vrsqrt.f32 %v6126_v44 }
0x18f2   : > { %v7632_v45 = vpop.eup %7631 }
0x18f3   : > { %v6128_v48 = vmul.f32 %v7632_v45, %v6120_v38 }
0x18f5   : > { %v6129_v50 = vmul.f32 %v6452_v46, %v6128_v48 }
0x18f7   : > { %v6130_v51 = vadd.f32 %v6453_v49, %v6129_v50 }
0x18f9   : > { %6131 = vst.msk [vmem:[%s643_s7] sm:$0x1] %vm6025_vm10, %v6130_v51 }
0x18fa   : > { %7648 = shalt.err (!%p7645_p3)
}
0x18fb   : > { %s7649_s0 = scalar_lea.hbm %s9018_s24, 16  ;;  %s7653_s5 = scalar_lea.hbm %s9081_s20, 32 }
0x18fc   : > { %p7650_p4 = scmp.ne.s32.totalorder %s9018_s24, %s7649_s0  ;;  %p7654_p9 = scmp.lt.u32.totalorder %s9018_s24, %s9081_s20 }
0x18fd   : > { %p7655_p10 = scmp.lt.u32.totalorder %s7653_s5, %s7649_s0  ;;  %p7657_p12 = scmp.lt.u32.totalorder %s7649_s0, %s9018_s24 }
0x18fe   : > { %p7651_p7 = pnand %p7650_p4, %p7850_p5 }
0x18ff   : > { %p7656_p11 = por %p7655_p10, %p7654_p9 }
0x1900   : > { %p7652_p8 = pneg %p7651_p7 }
0x1901   : > { %p7658_p13 = por %p7657_p12, %p7656_p11 }
0x1903   : > { %p7659_p0 = pnand %p7658_p13, %p7652_p8 }
0x1905   : > { %7662 = shalt.err (!%p7659_p0)
}
0x1906   : > { %7523 = dma.vmem_to_hbm [thread:$0]  (%p7850_p5), %s9020_s26, 16, %s9018_s24, %s6133_s27  }
0x1907 PF: > { %s9123_s7 = sld [smem:[#allocation7_spill]]  ;;  %s9124_s21 = sld [smem:[#allocation5_spill]] }
0x190d   : > { %p7529_p1 = scmp.ge.s32.totalorder %s9123_s7, 2  ;;  %s6157_s23 = sand.u32 1, %s9124_s21  }
0x190e   : > { %s6158_s2 = scalar_lea.sflag [#allocation3], %s6157_s23 }
0x190f   : > { %p7526_p2 = pnand %p7529_p1, %p7854_p6 }
0x1911   : > { %7680 = dma.done.wait (!%p7526_p2), %s6158_s2, 16  }
0x1912   : > { %7682 = vsyncadd (!%p7526_p2), %s6158_s2, 4294967280  ;;  %s9126_s24 = sld [smem:[#allocation8_spill]]  ;;  %s9127_s30 = sld [smem:[#allocation6_spill]] }
0x1913   : > { %s9128_s23 = sld [smem:[#allocation9_spill]]  ;;  %s9129_s1 = smov %s7689_s22 }
0x1918   : > { %p30_p3 = scmp.ge.s32.totalorder %s9126_s24, 4   ;;  %s9130_s22 = smov %s9127_s30 }
0x191a   :  { %32 = sbr.rel (!%p30_p3) target bundleno = 12 (0xc), region = 165 }
0x1921   :  { %6162 = vsyncpa [#allocation3], 1 }
0x1922   :  { %6164 = vsyncpa [#allocation3 + $0x1], 1 }

</bundles_post_ra>
